<compile_context>
chip_gen: v7x
topology: tpu7x:2x2x1
jax: 0.10.0
libtpu: 0.0.40
codegen_flags: <defaults>
</compile_context>

<pallas_src>
import math

import jax
import jax.numpy as jnp
from jax.experimental import pallas as pl
from jax.experimental.pallas import tpu as pltpu


# ------------------------------ helpers ------------------------------------

def _round_up(x, m):
    return ((x + m - 1) // m) * m


def _pad2(a, rows, cols):
    return jnp.pad(a, ((0, rows - a.shape[0]), (0, cols - a.shape[1])))


def _conv_tile_cap(KP, OCP, budget=10 * 1024 * 1024):
    """Largest M-tile whose double-buffered conv working set fits `budget`."""
    fixed = 2 * KP * OCP * 2 + 2 * OCP * 4           # resident weights + bias
    per_row = 2 * (4 * KP * 2 + OCP * 2)             # cols + pooled out, x2 buf
    return max(16, ((budget - fixed) // per_row) // 16 * 16)


def _m_tiling(R, max_tile=512):
    """Pick (padded_R, tile) for the row / M grid axis.

    Prefers large tiles (pipeline efficiency) and an even number of grid steps
    (so v7x's two TensorCores balance); tail rows are zero-padded and dropped
    by the caller.  Tiles are multiples of 16 (bf16 sublane packing) unless the
    whole extent is used as a single block.
    """
    max_tile = max(16, (min(512, max_tile) // 16) * 16)
    if R <= 48:
        return R, R                                   # one full-extent block
    steps = max(2, 2 * pl.cdiv(R, 2 * max_tile))      # even, >= 2
    tile = _round_up(pl.cdiv(R, steps), 16)
    return steps * tile, tile


# ----------------------------- Pallas kernels ------------------------------

def _conv_pool_kernel(cols_ref, w_ref, b_ref, o_ref):
    """Fused conv-GEMM + bias + ReLU + 2x2 max-pool.

    cols_ref: (4, tile, KP)  -- 4 pool-offset groups of im2col rows (bf16)
    w_ref:    (KP, OCP)      -- weights, lane-dense, resident across steps
    b_ref:    (1, OCP)       -- bias (f32)
    o_ref:    (tile, OCP)    -- pooled activation (compute dtype)
    """
    g, tile, kp = cols_ref.shape
    # Single MXU matmul per grid step (one RHS push / pipeline fill):
    # layout-preserving merge since tile % 16 == 0 and KP % 128 == 0.
    x = cols_ref[...].reshape(g * tile, kp)
    acc = jnp.dot(x, w_ref[...], preferred_element_type=jnp.float32)
    acc = acc.reshape(g, tile, acc.shape[-1])
    # 2x2 max-pool == max over the 4 pool-offset groups; bias/ReLU are
    # monotone so they commute with the max and are applied once.
    m = jnp.maximum(jnp.maximum(acc[0], acc[1]), jnp.maximum(acc[2], acc[3]))
    o_ref[...] = jnp.maximum(m + b_ref[...], 0.0).astype(o_ref.dtype)


def _fc_fused_kernel(x_ref, scale_ref, w1_ref, b1_ref, w2_ref, b2_ref,
                     w3_ref, b3_ref, o_ref):
    """Fused (hparam scale) + fc1 + ReLU + fc2 + ReLU + fc3 for one row tile."""
    scale = scale_ref[0, 0]
    a1 = jnp.dot(x_ref[...], w1_ref[...], preferred_element_type=jnp.float32)
    # torch: out = out * (1 + hparam); fc1(out * s) == s * (out @ W1^T) + b1
    h1 = jnp.maximum(a1 * scale + b1_ref[...], 0.0).astype(w2_ref.dtype)
    a2 = jnp.dot(h1, w2_ref[...], preferred_element_type=jnp.float32)
    h2 = jnp.maximum(a2 + b2_ref[...], 0.0).astype(w3_ref.dtype)
    a3 = jnp.dot(h2, w3_ref[...], preferred_element_type=jnp.float32)
    o_ref[...] = (a3 + b3_ref[...]).astype(o_ref.dtype)


# ------------------------- conv + relu + pool stage -------------------------

def conv_relu_pool(x_nhwc, w, b, *, compute_dtype=jnp.bfloat16):
    """Valid conv (stride 1) + bias + ReLU + 2x2/2 max-pool, fused in one call.

    x_nhwc: (N, H, W, C)      activation, channels last (C may be lane-padded)
    w:      (OC, Cr, KH, KW)  torch Conv2d layout, Cr <= C real input channels
    b:      (OC,)
    Returns (N, PH, PW, OCP) with OC zero-padded to 128 lanes (padded lanes
    are exactly zero).
    """
    N, H, W, C = x_nhwc.shape
    OC, C_real, KH, KW = w.shape
    assert C_real <= C
    OH, OW = H - KH + 1, W - KW + 1
    PH, PW = OH // 2, OW // 2
    R = N * PH * PW
    K = KH * KW * C
    KP = _round_up(K, 128)
    OCP = _round_up(OC, 128)

    # Cast once, BEFORE the im2col glue, so slices/concat/pad all run in bf16.
    x_c = x_nhwc.astype(compute_dtype)

    # Grouped im2col: one (R, K) patch matrix per 2x2 pool offset (dh, dw),
    # feature order (kh, kw, c).  With C lane-padded to 128 (conv2) every tap
    # slice is 128-lane aligned, so this glue is cheap.
    # TODO(synk): replace with in-kernel tap accumulation at large batch.
    groups = []
    for dh in range(2):
        for dw in range(2):
            taps = []
            for kh in range(KH):
                for kw in range(KW):
                    taps.append(
                        x_c[:, dh + kh:dh + kh + 2 * PH:2,
                            dw + kw:dw + kw + 2 * PW:2, :])
            groups.append(jnp.concatenate(taps, axis=-1).reshape(R, K))
    cols = jnp.stack(groups, axis=0)                              # (4, R, K)

    tile_cap = _conv_tile_cap(KP, OCP)
    RP, tile = _m_tiling(R, max_tile=tile_cap)
    cols = jnp.pad(cols, ((0, 0), (0, RP - R), (0, KP - K)))

    # Weights to (kh, kw, c_in, oc) with zero rows for padded input channels
    # and zero cols for padded output channels; lane-dense (KP, OCP).
    w_hwio = jnp.transpose(w, (2, 3, 1, 0))                       # (KH,KW,Cr,OC)
    w_hwio = jnp.pad(w_hwio, ((0, 0), (0, 0), (0, C - C_real), (0, OCP - OC)))
    w_mat = jnp.pad(w_hwio.reshape(K, OCP), ((0, KP - K), (0, 0)))
    w_mat = w_mat.astype(compute_dtype)
    b_row = _pad2(b.reshape(1, OC).astype(jnp.float32), 1, OCP)

    out = pl.pallas_call(
        _conv_pool_kernel,
        out_shape=jax.ShapeDtypeStruct((RP, OCP), compute_dtype),
        grid=(RP // tile,),
        in_specs=[
            pl.BlockSpec((4, tile, KP), lambda i: (0, i, 0)),
            pl.BlockSpec((KP, OCP), lambda i: (0, 0)),    # resident weights
            pl.BlockSpec((1, OCP), lambda i: (0, 0)),
        ],
        out_specs=pl.BlockSpec((tile, OCP), lambda i: (i, 0)),
        compiler_params=pltpu.CompilerParams(
            dimension_semantics=("parallel",)),
    )(cols, w_mat, b_row)
    return out[:R].reshape(N, PH, PW, OCP)


# ------------------------------ LeNet model --------------------------------

def init_params(key, num_classes=10):
    """Deterministic init mimicking torch defaults (U(-1/sqrt(fan_in), ...))."""
    def uni(k, shape, fan_in):
        bound = 1.0 / math.sqrt(fan_in)
        return jax.random.uniform(k, shape, jnp.float32, -bound, bound)

    ks = jax.random.split(key, 10)
    p = {}
    p["conv1_w"] = uni(ks[0], (20, 1, 5, 5), 1 * 5 * 5)
    p["conv1_b"] = uni(ks[1], (20,), 1 * 5 * 5)
    p["conv2_w"] = uni(ks[2], (50, 20, 5, 5), 20 * 5 * 5)
    p["conv2_b"] = uni(ks[3], (50,), 20 * 5 * 5)
    # Linear weights stored torch-style (out, in); repacked lane-dense at use.
    p["fc1_w"] = uni(ks[4], (120, 800), 800)
    p["fc1_b"] = uni(ks[5], (120,), 800)
    p["fc2_w"] = uni(ks[6], (84, 120), 120)
    p["fc2_b"] = uni(ks[7], (84,), 120)
    p["fc3_w"] = uni(ks[8], (num_classes, 84), 84)
    p["fc3_b"] = uni(ks[9], (num_classes,), 84)
    return p


def lenet_forward(params, x, hparam=None, *, compute_dtype=jnp.bfloat16):
    num_classes = params["fc3_b"].shape[0]
    N = x.shape[0]
    oc2 = params["conv2_w"].shape[0]        # 50

    # NCHW (torch interface) -> NHWC once; channels stay on the lane axis.
    x_nhwc = jnp.transpose(x, (0, 2, 3, 1))

    # conv1 + relu + pool, then conv2 + relu + pool.  conv1's output keeps all
    # 128 padded channels (exactly zero), so conv2's im2col stays lane-aligned.
    a1 = conv_relu_pool(x_nhwc, params["conv1_w"], params["conv1_b"],
                        compute_dtype=compute_dtype)          # (N, 12, 12, 128)
    a2 = conv_relu_pool(a1, params["conv2_w"], params["conv2_b"],
                        compute_dtype=compute_dtype)          # (N, 4, 4, 128)

    _, PH, PW, CP = a2.shape
    K1 = PH * PW * CP                                         # 2048 (800 real)
    H1 = _round_up(params["fc1_b"].shape[0], 128)             # 128 (120)
    H2 = _round_up(params["fc2_b"].shape[0], 128)             # 128 (84)
    NCP = _round_up(num_classes, 128)                         # 128

    # FC input: flatten the NHWC (h, w, c)-ordered, channel-padded activation.
    x_fc = a2.reshape(N, K1)                                  # already bf16

    # fc1 weight repacked to the same (h, w, c) flatten order, zero-padded.
    w1 = params["fc1_w"].reshape(-1, oc2, PH, PW)             # (120, 50, 4, 4)
    w1 = jnp.transpose(w1, (2, 3, 1, 0))                      # (4, 4, 50, 120)
    w1 = jnp.pad(w1, ((0, 0), (0, 0),
                      (0, CP - oc2), (0, H1 - w1.shape[-1])))
    w1 = w1.reshape(K1, H1).astype(compute_dtype)
    b1 = _pad2(params["fc1_b"].reshape(1, -1).astype(jnp.float32), 1, H1)
    w2 = _pad2(params["fc2_w"].T, H1, H2).astype(compute_dtype)
    b2 = _pad2(params["fc2_b"].reshape(1, -1).astype(jnp.float32), 1, H2)
    w3 = _pad2(params["fc3_w"].T, H2, NCP).astype(compute_dtype)
    b3 = _pad2(params["fc3_b"].reshape(1, -1).astype(jnp.float32), 1, NCP)

    # torch: r = out.data * hparam; out += r  ->  out *= (1 + hparam)
    hs = 1.0 if hparam is None else 1.0 + hparam
    scale = jnp.asarray(hs, jnp.float32).reshape(1, 1)

    # Tile the FC tail over batch rows: keeps the x_fc block inside VMEM at
    # any batch, restores pipelining and lets v7x's two TCs split the work.
    NP, ftile = _m_tiling(N, max_tile=512)
    x_fc = jnp.pad(x_fc, ((0, NP - N), (0, 0)))

    logits = pl.pallas_call(
        _fc_fused_kernel,
        out_shape=jax.ShapeDtypeStruct((NP, NCP), jnp.float32),
        grid=(NP // ftile,),
        in_specs=[
            pl.BlockSpec((ftile, K1), lambda i: (i, 0)),
            pl.BlockSpec(memory_space=pltpu.MemorySpace.SMEM),   # hparam scale
            pl.BlockSpec((K1, H1), lambda i: (0, 0)),            # resident
            pl.BlockSpec((1, H1), lambda i: (0, 0)),
            pl.BlockSpec((H1, H2), lambda i: (0, 0)),
            pl.BlockSpec((1, H2), lambda i: (0, 0)),
            pl.BlockSpec((H2, NCP), lambda i: (0, 0)),
            pl.BlockSpec((1, NCP), lambda i: (0, 0)),
        ],
        out_specs=pl.BlockSpec((ftile, NCP), lambda i: (i, 0)),
        compiler_params=pltpu.CompilerParams(
            dimension_semantics=("parallel",)),
    )(x_fc, scale, w1, b1, w2, b2, w3, b3)

    return logits[:N, :num_classes]


if __name__ == "__main__":
    key = jax.random.PRNGKey(0)
    pkey, xkey = jax.random.split(key)
    num_classes = 10
    params = init_params(pkey, num_classes=num_classes)
    # 28x28 single-channel input (so the flattened size is 50*4*4=800).
    x = jax.random.normal(xkey, (2, 1, 28, 28), jnp.float32)

    fwd = jax.jit(lenet_forward)
    out = jax.block_until_ready(fwd(params, x))
    assert out.shape == (2, num_classes), out.shape
    assert out.dtype == jnp.float32
    assert bool(jnp.all(jnp.isfinite(out)))
    print("KERNEL_OK")
</pallas_src>

<mosaic_0001>
module attributes {stable_mosaic.version = 11 : i64} {
  func.func @_conv_pool_kernel(%arg0: i32, %arg1: memref<4x144x128xbf16, #tpu.memory_space<vmem>>, %arg2: memref<128x128xbf16, #tpu.memory_space<vmem>>, %arg3: memref<1x128xf32, #tpu.memory_space<vmem>>, %arg4: memref<144x128xbf16, #tpu.memory_space<vmem>>) attributes {dimension_semantics = [#tpu.dimension_semantics<parallel>], iteration_bounds = array<i64: 2>, scalar_prefetch = 0 : i64, scratch_operands = 0 : i64, tpu.core_type = #tpu.core_type<tc>, window_params = [{transform_indices = @transform_0, window_bounds = array<i64: 4, 144, 128>}, {pipeline_mode = #tpu.pipeline_mode<synchronous>, transform_indices = @transform_1, window_bounds = array<i64: 128, 128>}, {pipeline_mode = #tpu.pipeline_mode<synchronous>, transform_indices = @transform_2, window_bounds = array<i64: 1, 128>}, {transform_indices = @transform_3, window_bounds = array<i64: 144, 128>}]} {
    %c0 = arith.constant 0 : index
    %c0_0 = arith.constant 0 : index
    %c0_1 = arith.constant 0 : index
    %0 = vector.load %arg1[%c0, %c0_0, %c0_1] : memref<4x144x128xbf16, #tpu.memory_space<vmem>>, vector<4x144x128xbf16>
    %1 = vector.shape_cast %0 : vector<4x144x128xbf16> to vector<576x128xbf16>
    %c0_2 = arith.constant 0 : index
    %c0_3 = arith.constant 0 : index
    %2 = vector.load %arg2[%c0_2, %c0_3] : memref<128x128xbf16, #tpu.memory_space<vmem>>, vector<128x128xbf16>
    %cst = arith.constant dense<0.000000e+00> : vector<576x128xf32>
    %3 = tpu.matmul %1, %2, %cst {dimension_numbers = #tpu.dot_dimension_numbers<[1], [0], [0], [1], [0, 0, 1, 1], [], []>} : vector<576x128xbf16>, vector<128x128xbf16>, vector<576x128xf32> -> vector<576x128xf32>
    %4 = vector.shape_cast %3 : vector<576x128xf32> to vector<4x144x128xf32>
    %5 = vector.extract_strided_slice %4 {offsets = [0, 0, 0], sizes = [1, 144, 128], strides = [1, 1, 1]} : vector<4x144x128xf32> to vector<1x144x128xf32>
    %6 = vector.shape_cast %5 : vector<1x144x128xf32> to vector<144x128xf32>
    %7 = vector.extract_strided_slice %4 {offsets = [1, 0, 0], sizes = [1, 144, 128], strides = [1, 1, 1]} : vector<4x144x128xf32> to vector<1x144x128xf32>
    %8 = vector.shape_cast %7 : vector<1x144x128xf32> to vector<144x128xf32>
    %9 = arith.maximumf %6, %8 : vector<144x128xf32>
    %10 = vector.extract_strided_slice %4 {offsets = [2, 0, 0], sizes = [1, 144, 128], strides = [1, 1, 1]} : vector<4x144x128xf32> to vector<1x144x128xf32>
    %11 = vector.shape_cast %10 : vector<1x144x128xf32> to vector<144x128xf32>
    %12 = vector.extract_strided_slice %4 {offsets = [3, 0, 0], sizes = [1, 144, 128], strides = [1, 1, 1]} : vector<4x144x128xf32> to vector<1x144x128xf32>
    %13 = vector.shape_cast %12 : vector<1x144x128xf32> to vector<144x128xf32>
    %14 = arith.maximumf %11, %13 : vector<144x128xf32>
    %15 = arith.maximumf %9, %14 : vector<144x128xf32>
    %c0_4 = arith.constant 0 : index
    %c0_5 = arith.constant 0 : index
    %16 = vector.load %arg3[%c0_4, %c0_5] : memref<1x128xf32, #tpu.memory_space<vmem>>, vector<1x128xf32>
    %17 = vector.broadcast %16 : vector<1x128xf32> to vector<144x128xf32>
    %18 = arith.addf %15, %17 : vector<144x128xf32>
    %cst_6 = arith.constant 0.000000e+00 : f32
    %19 = vector.broadcast %cst_6 : f32 to vector<144x128xf32>
    %20 = arith.maximumf %18, %19 : vector<144x128xf32>
    %21 = arith.truncf %20 : vector<144x128xf32> to vector<144x128xbf16>
    %c0_7 = arith.constant 0 : index
    %c0_8 = arith.constant 0 : index
    %22 = vector.load %arg4[%c0_7, %c0_8] : memref<144x128xbf16, #tpu.memory_space<vmem>>, vector<144x128xbf16>
    tpu.vector_store %arg4[%c0_7, %c0_8], %21 {strides = array<i32>} : memref<144x128xbf16, #tpu.memory_space<vmem>>, vector<144x128xbf16>,
    return
  }
  func.func @transform_0(%arg0: i32) -> (i32, i32, i32) {
    %c0_i32 = arith.constant 0 : i32
    %c0_i32_0 = arith.constant 0 : i32
    %c0_i32_1 = arith.constant 0 : i32
    return %c0_i32, %arg0, %c0_i32_0 : i32, i32, i32
  }
  func.func @transform_1(%arg0: i32) -> (i32, i32) {
    %c0_i32 = arith.constant 0 : i32
    %c0_i32_0 = arith.constant 0 : i32
    %c0_i32_1 = arith.constant 0 : i32
    return %c0_i32, %c0_i32_0 : i32, i32
  }
  func.func @transform_2(%arg0: i32) -> (i32, i32) {
    %c0_i32 = arith.constant 0 : i32
    %c0_i32_0 = arith.constant 0 : i32
    %c0_i32_1 = arith.constant 0 : i32
    return %c0_i32, %c0_i32_0 : i32, i32
  }
  func.func @transform_3(%arg0: i32) -> (i32, i32) {
    %c0_i32 = arith.constant 0 : i32
    %c0_i32_0 = arith.constant 0 : i32
    return %arg0, %c0_i32 : i32, i32
  }
}

module attributes {stable_mosaic.version = 11 : i64} {
  func.func @_conv_pool_kernel(%arg0: i32, %arg1: memref<4x32x3200xbf16, #tpu.memory_space<vmem>>, %arg2: memref<3200x128xbf16, #tpu.memory_space<vmem>>, %arg3: memref<1x128xf32, #tpu.memory_space<vmem>>, %arg4: memref<32x128xbf16, #tpu.memory_space<vmem>>) attributes {dimension_semantics = [#tpu.dimension_semantics<parallel>], iteration_bounds = array<i64: 1>, scalar_prefetch = 0 : i64, scratch_operands = 0 : i64, tpu.core_type = #tpu.core_type<tc>, window_params = [{transform_indices = @transform_0, window_bounds = array<i64: 4, 32, 3200>}, {pipeline_mode = #tpu.pipeline_mode<synchronous>, transform_indices = @transform_1, window_bounds = array<i64: 3200, 128>}, {pipeline_mode = #tpu.pipeline_mode<synchronous>, transform_indices = @transform_2, window_bounds = array<i64: 1, 128>}, {transform_indices = @transform_3, window_bounds = array<i64: 32, 128>}]} {
    %c0 = arith.constant 0 : index
    %c0_0 = arith.constant 0 : index
    %c0_1 = arith.constant 0 : index
    %0 = vector.load %arg1[%c0, %c0_0, %c0_1] : memref<4x32x3200xbf16, #tpu.memory_space<vmem>>, vector<4x32x3200xbf16>
    %1 = vector.shape_cast %0 : vector<4x32x3200xbf16> to vector<128x3200xbf16>
    %c0_2 = arith.constant 0 : index
    %c0_3 = arith.constant 0 : index
    %2 = vector.load %arg2[%c0_2, %c0_3] : memref<3200x128xbf16, #tpu.memory_space<vmem>>, vector<3200x128xbf16>
    %cst = arith.constant dense<0.000000e+00> : vector<128x128xf32>
    %3 = tpu.matmul %1, %2, %cst {dimension_numbers = #tpu.dot_dimension_numbers<[1], [0], [0], [1], [0, 0, 1, 1], [], []>} : vector<128x3200xbf16>, vector<3200x128xbf16>, vector<128x128xf32> -> vector<128x128xf32>
    %4 = vector.shape_cast %3 : vector<128x128xf32> to vector<4x32x128xf32>
    %5 = vector.extract_strided_slice %4 {offsets = [0, 0, 0], sizes = [1, 32, 128], strides = [1, 1, 1]} : vector<4x32x128xf32> to vector<1x32x128xf32>
    %6 = vector.shape_cast %5 : vector<1x32x128xf32> to vector<32x128xf32>
    %7 = vector.extract_strided_slice %4 {offsets = [1, 0, 0], sizes = [1, 32, 128], strides = [1, 1, 1]} : vector<4x32x128xf32> to vector<1x32x128xf32>
    %8 = vector.shape_cast %7 : vector<1x32x128xf32> to vector<32x128xf32>
    %9 = arith.maximumf %6, %8 : vector<32x128xf32>
    %10 = vector.extract_strided_slice %4 {offsets = [2, 0, 0], sizes = [1, 32, 128], strides = [1, 1, 1]} : vector<4x32x128xf32> to vector<1x32x128xf32>
    %11 = vector.shape_cast %10 : vector<1x32x128xf32> to vector<32x128xf32>
    %12 = vector.extract_strided_slice %4 {offsets = [3, 0, 0], sizes = [1, 32, 128], strides = [1, 1, 1]} : vector<4x32x128xf32> to vector<1x32x128xf32>
    %13 = vector.shape_cast %12 : vector<1x32x128xf32> to vector<32x128xf32>
    %14 = arith.maximumf %11, %13 : vector<32x128xf32>
    %15 = arith.maximumf %9, %14 : vector<32x128xf32>
    %c0_4 = arith.constant 0 : index
    %c0_5 = arith.constant 0 : index
    %16 = vector.load %arg3[%c0_4, %c0_5] : memref<1x128xf32, #tpu.memory_space<vmem>>, vector<1x128xf32>
    %17 = vector.broadcast %16 : vector<1x128xf32> to vector<32x128xf32>
    %18 = arith.addf %15, %17 : vector<32x128xf32>
    %cst_6 = arith.constant 0.000000e+00 : f32
    %19 = vector.broadcast %cst_6 : f32 to vector<32x128xf32>
    %20 = arith.maximumf %18, %19 : vector<32x128xf32>
    %21 = arith.truncf %20 : vector<32x128xf32> to vector<32x128xbf16>
    %c0_7 = arith.constant 0 : index
    %c0_8 = arith.constant 0 : index
    %22 = vector.load %arg4[%c0_7, %c0_8] : memref<32x128xbf16, #tpu.memory_space<vmem>>, vector<32x128xbf16>
    tpu.vector_store %arg4[%c0_7, %c0_8], %21 {strides = array<i32>} : memref<32x128xbf16, #tpu.memory_space<vmem>>, vector<32x128xbf16>,
    return
  }
  func.func @transform_0(%arg0: i32) -> (i32, i32, i32) {
    %c0_i32 = arith.constant 0 : i32
    %c0_i32_0 = arith.constant 0 : i32
    %c0_i32_1 = arith.constant 0 : i32
    return %c0_i32, %arg0, %c0_i32_0 : i32, i32, i32
  }
  func.func @transform_1(%arg0: i32) -> (i32, i32) {
    %c0_i32 = arith.constant 0 : i32
    %c0_i32_0 = arith.constant 0 : i32
    %c0_i32_1 = arith.constant 0 : i32
    return %c0_i32, %c0_i32_0 : i32, i32
  }
  func.func @transform_2(%arg0: i32) -> (i32, i32) {
    %c0_i32 = arith.constant 0 : i32
    %c0_i32_0 = arith.constant 0 : i32
    %c0_i32_1 = arith.constant 0 : i32
    return %c0_i32, %c0_i32_0 : i32, i32
  }
  func.func @transform_3(%arg0: i32) -> (i32, i32) {
    %c0_i32 = arith.constant 0 : i32
    %c0_i32_0 = arith.constant 0 : i32
    return %arg0, %c0_i32 : i32, i32
  }
}

module attributes {stable_mosaic.version = 11 : i64} {
  func.func @_fc_fused_kernel(%arg0: i32, %arg1: memref<2x2048xbf16, #tpu.memory_space<vmem>>, %arg2: memref<1x1xf32, #tpu.memory_space<smem>>, %arg3: memref<2048x128xbf16, #tpu.memory_space<vmem>>, %arg4: memref<1x128xf32, #tpu.memory_space<vmem>>, %arg5: memref<128x128xbf16, #tpu.memory_space<vmem>>, %arg6: memref<1x128xf32, #tpu.memory_space<vmem>>, %arg7: memref<128x128xbf16, #tpu.memory_space<vmem>>, %arg8: memref<1x128xf32, #tpu.memory_space<vmem>>, %arg9: memref<2x128xf32, #tpu.memory_space<vmem>>) attributes {dimension_semantics = [#tpu.dimension_semantics<parallel>], iteration_bounds = array<i64: 1>, scalar_prefetch = 0 : i64, scratch_operands = 0 : i64, tpu.core_type = #tpu.core_type<tc>, window_params = [{transform_indices = @transform_0, window_bounds = array<i64: 2, 2048>}, {transform_indices = @transform_1, window_bounds = array<i64: 1, 1>}, {pipeline_mode = #tpu.pipeline_mode<synchronous>, transform_indices = @transform_2, window_bounds = array<i64: 2048, 128>}, {pipeline_mode = #tpu.pipeline_mode<synchronous>, transform_indices = @transform_3, window_bounds = array<i64: 1, 128>}, {pipeline_mode = #tpu.pipeline_mode<synchronous>, transform_indices = @transform_4, window_bounds = array<i64: 128, 128>}, {pipeline_mode = #tpu.pipeline_mode<synchronous>, transform_indices = @transform_5, window_bounds = array<i64: 1, 128>}, {pipeline_mode = #tpu.pipeline_mode<synchronous>, transform_indices = @transform_6, window_bounds = array<i64: 128, 128>}, {pipeline_mode = #tpu.pipeline_mode<synchronous>, transform_indices = @transform_7, window_bounds = array<i64: 1, 128>}, {transform_indices = @transform_8, window_bounds = array<i64: 2, 128>}]} {
    %c0 = arith.constant 0 : index
    %c0_0 = arith.constant 0 : index
    %0 = memref.load %arg2[%c0, %c0_0] : memref<1x1xf32, #tpu.memory_space<smem>>
    %c0_1 = arith.constant 0 : index
    %c0_2 = arith.constant 0 : index
    %1 = vector.load %arg1[%c0_1, %c0_2] : memref<2x2048xbf16, #tpu.memory_space<vmem>>, vector<2x2048xbf16>
    %c0_3 = arith.constant 0 : index
    %c0_4 = arith.constant 0 : index
    %2 = vector.load %arg3[%c0_3, %c0_4] : memref<2048x128xbf16, #tpu.memory_space<vmem>>, vector<2048x128xbf16>
    %cst = arith.constant dense<0.000000e+00> : vector<2x128xf32>
    %3 = tpu.matmul %1, %2, %cst {dimension_numbers = #tpu.dot_dimension_numbers<[1], [0], [0], [1], [0, 0, 1, 1], [], []>} : vector<2x2048xbf16>, vector<2048x128xbf16>, vector<2x128xf32> -> vector<2x128xf32>
    %4 = vector.broadcast %0 : f32 to vector<2x128xf32>
    %5 = arith.mulf %3, %4 : vector<2x128xf32>
    %c0_5 = arith.constant 0 : index
    %c0_6 = arith.constant 0 : index
    %6 = vector.load %arg4[%c0_5, %c0_6] : memref<1x128xf32, #tpu.memory_space<vmem>>, vector<1x128xf32>
    %7 = vector.broadcast %6 : vector<1x128xf32> to vector<2x128xf32>
    %8 = arith.addf %5, %7 : vector<2x128xf32>
    %cst_7 = arith.constant 0.000000e+00 : f32
    %9 = vector.broadcast %cst_7 : f32 to vector<2x128xf32>
    %10 = arith.maximumf %8, %9 : vector<2x128xf32>
    %11 = arith.truncf %10 : vector<2x128xf32> to vector<2x128xbf16>
    %c0_8 = arith.constant 0 : index
    %c0_9 = arith.constant 0 : index
    %12 = vector.load %arg5[%c0_8, %c0_9] : memref<128x128xbf16, #tpu.memory_space<vmem>>, vector<128x128xbf16>
    %cst_10 = arith.constant dense<0.000000e+00> : vector<2x128xf32>
    %13 = tpu.matmul %11, %12, %cst_10 {dimension_numbers = #tpu.dot_dimension_numbers<[1], [0], [0], [1], [0, 0, 1, 1], [], []>} : vector<2x128xbf16>, vector<128x128xbf16>, vector<2x128xf32> -> vector<2x128xf32>
    %c0_11 = arith.constant 0 : index
    %c0_12 = arith.constant 0 : index
    %14 = vector.load %arg6[%c0_11, %c0_12] : memref<1x128xf32, #tpu.memory_space<vmem>>, vector<1x128xf32>
    %15 = vector.broadcast %14 : vector<1x128xf32> to vector<2x128xf32>
    %16 = arith.addf %13, %15 : vector<2x128xf32>
    %cst_13 = arith.constant 0.000000e+00 : f32
    %17 = vector.broadcast %cst_13 : f32 to vector<2x128xf32>
    %18 = arith.maximumf %16, %17 : vector<2x128xf32>
    %19 = arith.truncf %18 : vector<2x128xf32> to vector<2x128xbf16>
    %c0_14 = arith.constant 0 : index
    %c0_15 = arith.constant 0 : index
    %20 = vector.load %arg7[%c0_14, %c0_15] : memref<128x128xbf16, #tpu.memory_space<vmem>>, vector<128x128xbf16>
    %cst_16 = arith.constant dense<0.000000e+00> : vector<2x128xf32>
    %21 = tpu.matmul %19, %20, %cst_16 {dimension_numbers = #tpu.dot_dimension_numbers<[1], [0], [0], [1], [0, 0, 1, 1], [], []>} : vector<2x128xbf16>, vector<128x128xbf16>, vector<2x128xf32> -> vector<2x128xf32>
    %c0_17 = arith.constant 0 : index
    %c0_18 = arith.constant 0 : index
    %22 = vector.load %arg8[%c0_17, %c0_18] : memref<1x128xf32, #tpu.memory_space<vmem>>, vector<1x128xf32>
    %23 = vector.broadcast %22 : vector<1x128xf32> to vector<2x128xf32>
    %24 = arith.addf %21, %23 : vector<2x128xf32>
    %c0_19 = arith.constant 0 : index
    %c0_20 = arith.constant 0 : index
    %25 = vector.load %arg9[%c0_19, %c0_20] : memref<2x128xf32, #tpu.memory_space<vmem>>, vector<2x128xf32>
    tpu.vector_store %arg9[%c0_19, %c0_20], %24 {strides = array<i32>} : memref<2x128xf32, #tpu.memory_space<vmem>>, vector<2x128xf32>,
    return
  }
  func.func @transform_0(%arg0: i32) -> (i32, i32) {
    %c0_i32 = arith.constant 0 : i32
    %c0_i32_0 = arith.constant 0 : i32
    return %arg0, %c0_i32 : i32, i32
  }
  func.func @transform_1(%arg0: i32) -> (i32, i32) {
    %c0_i32 = arith.constant 0 : i32
    %c0_i32_0 = arith.constant 0 : i32
    %c0_i32_1 = arith.constant 0 : i32
    return %c0_i32, %c0_i32_0 : i32, i32
  }
  func.func @transform_2(%arg0: i32) -> (i32, i32) {
    %c0_i32 = arith.constant 0 : i32
    %c0_i32_0 = arith.constant 0 : i32
    %c0_i32_1 = arith.constant 0 : i32
    return %c0_i32, %c0_i32_0 : i32, i32
  }
  func.func @transform_3(%arg0: i32) -> (i32, i32) {
    %c0_i32 = arith.constant 0 : i32
    %c0_i32_0 = arith.constant 0 : i32
    %c0_i32_1 = arith.constant 0 : i32
    return %c0_i32, %c0_i32_0 : i32, i32
  }
  func.func @transform_4(%arg0: i32) -> (i32, i32) {
    %c0_i32 = arith.constant 0 : i32
    %c0_i32_0 = arith.constant 0 : i32
    %c0_i32_1 = arith.constant 0 : i32
    return %c0_i32, %c0_i32_0 : i32, i32
  }
  func.func @transform_5(%arg0: i32) -> (i32, i32) {
    %c0_i32 = arith.constant 0 : i32
    %c0_i32_0 = arith.constant 0 : i32
    %c0_i32_1 = arith.constant 0 : i32
    return %c0_i32, %c0_i32_0 : i32, i32
  }
  func.func @transform_6(%arg0: i32) -> (i32, i32) {
    %c0_i32 = arith.constant 0 : i32
    %c0_i32_0 = arith.constant 0 : i32
    %c0_i32_1 = arith.constant 0 : i32
    return %c0_i32, %c0_i32_0 : i32, i32
  }
  func.func @transform_7(%arg0: i32) -> (i32, i32) {
    %c0_i32 = arith.constant 0 : i32
    %c0_i32_0 = arith.constant 0 : i32
    %c0_i32_1 = arith.constant 0 : i32
    return %c0_i32, %c0_i32_0 : i32, i32
  }
  func.func @transform_8(%arg0: i32) -> (i32, i32) {
    %c0_i32 = arith.constant 0 : i32
    %c0_i32_0 = arith.constant 0 : i32
    return %arg0, %c0_i32 : i32, i32
  }
}

</mosaic_0001>

<bundles_post_ra>
// kernel: lenet_forward.3
= control target key start
LH: loop header
LB: loop body
LE: loop exit
PB: predicated region body
PF: predicated region fallthrough
CT: control target
= control target key end

     0   :  { %s1828_s12 = smov 0   ;;  %s1830_s13 = smov 0   ;;  %s2142_s0 = inlined_call_operand.vmem [shape: bf16[4,288,128], index: 0, kind: input, shape index: {}]   ;;  %s2143_s1 = inlined_call_operand.vmem [shape: bf16[128,128], index: 1, kind: input, shape index: {}]   ;;  %s2144_s2 = inlined_call_operand.vmem [shape: f32[1,128], index: 2, kind: input, shape index: {}]   ;;  %s2145_s3 = inlined_call_operand.vmem [shape: bf16[288,128], index: 3, kind: output, shape index: {}]  }
   0x1   :  { %s1832_s14 = smov 0  }
   0x2 LB: > { %s1422_s15 = sadd.s32 4294967295, %s1806_s14   ;;  %s1845_s16 = sadd.s32 1, %s1806_s14   ;;  %s1806_s14 = sphi %s1832_s14, %s2148_s14   ;;  %s1802_s13 = sphi %s1830_s13, %s2147_s13   ;;  %s1798_s12 = sphi %s1828_s12, %s2146_s12  }
   0x3   : > { %s17_s17 = ssub.s32 %s1806_s14, %s1845_s16  ;;  %s20_s18 = sadd.s32 1, %s1802_s13 }
   0x4   : > { %p18_p0 = scmp.eq.s32.totalorder %s17_s17, 0  ;;  %p27_p1 = scmp.ne.s32.totalorder %s1802_s13, %s1798_s12 }
   0x5   : > { %p28_p2 = scmp.eq.s32.totalorder %s1806_s14, 0  ;;  %p1425_p4 = scmp.ge.s32.totalorder %s1806_s14, 2 }
   0x6   : > { %s1854_s19 = scalar_select %p18_p0, %s1802_s13, %s20_s18  }
   0x7   : > { %p29_p3 = por %p28_p2, %p27_p1  ;;  %127 = sbr.rel (%p1425_p4) target bundleno = 37 (0x25), region = 24 }
   0xe   : > { %130 = sbr.rel (!%p29_p3) target bundleno = 37 (0x25), region = 28  ;;  %s132_s20 = sand.u32 (%p29_p3), 1, %s1802_s13  }
   0xf   : > { %s1494_s21 = smul.u32 (%p29_p3), 72, %s1806_s14 }
  0x10   : > { %s1714_s22 = smul.u32 (%p29_p3), 288, %s132_s20 }
  0x11   : > { %s1862_s25 = scalar_lea.vmem (%p29_p3), %s2142_s0, %s1494_s21 }
  0x12   : > { %v153_v0 = vld [vmem:[%s1862_s25] sm:$0xff] (%p29_p3)   ;;  %v157_v1 = vld [vmem:[%s1862_s25 + $0x8] sm:$0xff] (%p29_p3)   ;;  %v161_v2 = vld [vmem:[%s1862_s25 + $0x10] sm:$0xff] (%p29_p3)   ;;  %s1867_s26 = scalar_lea.vmem (%p29_p3), [#allocation2], %s1714_s22 }
  0x13   : > { %154 = vst [vmem:[%s1867_s26] sm:$0xff] (%p29_p3), %v153_v0   ;;  %158 = vst [vmem:[%s1867_s26 + $0x8] sm:$0xff] (%p29_p3), %v157_v1   ;;  %v165_v3 = vld [vmem:[%s1862_s25 + $0x18] sm:$0xff] (%p29_p3)   ;;  %v169_v4 = vld [vmem:[%s1862_s25 + $0x20] sm:$0xff] (%p29_p3)  }
  0x14   : > { %162 = vst [vmem:[%s1867_s26 + $0x10] sm:$0xff] (%p29_p3), %v161_v2   ;;  %v173_v5 = vld [vmem:[%s1862_s25 + $0x28] sm:$0xff] (%p29_p3)   ;;  %166 = vst [vmem:[%s1867_s26 + $0x18] sm:$0xff] (%p29_p3), %v165_v3   ;;  %v177_v6 = vld [vmem:[%s1862_s25 + $0x30] sm:$0xff] (%p29_p3)  }
  0x15   : > { %170 = vst [vmem:[%s1867_s26 + $0x20] sm:$0xff] %v169_v4   ;;  %174 = vst [vmem:[%s1867_s26 + $0x28] sm:$0xff] %v173_v5   ;;  %v181_v7 = vld [vmem:[%s1862_s25 + $0x38] sm:$0xff]   ;;  %v185_v8 = vld [vmem:[%s1862_s25 + $0x40] sm:$0xff]  }
  0x16   : > { %178 = vst [vmem:[%s1867_s26 + $0x30] sm:$0xff] %v177_v6   ;;  %182 = vst [vmem:[%s1867_s26 + $0x38] sm:$0xff] %v181_v7   ;;  %v189_v9 = vld [vmem:[%s1862_s25 + $0x90] sm:$0xff]   ;;  %v193_v10 = vld [vmem:[%s1862_s25 + $0x98] sm:$0xff]  }
  0x17   : > { %186 = vst [vmem:[%s1867_s26 + $0x40] sm:$0xff] %v185_v8   ;;  %v197_v11 = vld [vmem:[%s1862_s25 + $0xa0] sm:$0xff]   ;;  %190 = vst [vmem:[%s1867_s26 + $0x48] sm:$0xff] %v189_v9   ;;  %v201_v12 = vld [vmem:[%s1862_s25 + $0xa8] sm:$0xff]  }
  0x18   : > { %194 = vst [vmem:[%s1867_s26 + $0x50] sm:$0xff] %v193_v10   ;;  %198 = vst [vmem:[%s1867_s26 + $0x58] sm:$0xff] %v197_v11   ;;  %v205_v13 = vld [vmem:[%s1862_s25 + $0xb0] sm:$0xff]   ;;  %v209_v14 = vld [vmem:[%s1862_s25 + $0xb8] sm:$0xff]  }
  0x19   : > { %202 = vst [vmem:[%s1867_s26 + $0x60] sm:$0xff] %v201_v12   ;;  %206 = vst [vmem:[%s1867_s26 + $0x68] sm:$0xff] %v205_v13   ;;  %v213_v15 = vld [vmem:[%s1862_s25 + $0xc0] sm:$0xff]   ;;  %v217_v16 = vld [vmem:[%s1862_s25 + $0xc8] sm:$0xff]  }
  0x1a   : > { %210 = vst [vmem:[%s1867_s26 + $0x70] sm:$0xff] %v209_v14   ;;  %v221_v17 = vld [vmem:[%s1862_s25 + $0xd0] sm:$0xff]   ;;  %214 = vst [vmem:[%s1867_s26 + $0x78] sm:$0xff] %v213_v15   ;;  %v225_v18 = vld [vmem:[%s1862_s25 + $0x120] sm:$0xff]  }
  0x1b   : > { %218 = vst [vmem:[%s1867_s26 + $0x80] sm:$0xff] %v217_v16   ;;  %222 = vst [vmem:[%s1867_s26 + $0x88] sm:$0xff] %v221_v17   ;;  %v229_v19 = vld [vmem:[%s1862_s25 + $0x128] sm:$0xff]   ;;  %v233_v20 = vld [vmem:[%s1862_s25 + $0x130] sm:$0xff]  }
  0x1c   : > { %226 = vst [vmem:[%s1867_s26 + $0x90] sm:$0xff] %v225_v18   ;;  %230 = vst [vmem:[%s1867_s26 + $0x98] sm:$0xff] %v229_v19   ;;  %v237_v21 = vld [vmem:[%s1862_s25 + $0x138] sm:$0xff]   ;;  %v241_v22 = vld [vmem:[%s1862_s25 + $0x140] sm:$0xff]  }
  0x1d   : > { %234 = vst [vmem:[%s1867_s26 + $0xa0] sm:$0xff] %v233_v20   ;;  %v245_v23 = vld [vmem:[%s1862_s25 + $0x148] sm:$0xff]   ;;  %238 = vst [vmem:[%s1867_s26 + $0xa8] sm:$0xff] %v237_v21   ;;  %v249_v24 = vld [vmem:[%s1862_s25 + $0x150] sm:$0xff]  }
  0x1e   : > { %242 = vst [vmem:[%s1867_s26 + $0xb0] sm:$0xff] %v241_v22   ;;  %246 = vst [vmem:[%s1867_s26 + $0xb8] sm:$0xff] %v245_v23   ;;  %v253_v25 = vld [vmem:[%s1862_s25 + $0x158] sm:$0xff]   ;;  %v257_v26 = vld [vmem:[%s1862_s25 + $0x160] sm:$0xff]  }
  0x1f   : > { %250 = vst [vmem:[%s1867_s26 + $0xc0] sm:$0xff] %v249_v24   ;;  %254 = vst [vmem:[%s1867_s26 + $0xc8] sm:$0xff] %v253_v25   ;;  %v261_v27 = vld [vmem:[%s1862_s25 + $0x1b0] sm:$0xff]   ;;  %v265_v28 = vld [vmem:[%s1862_s25 + $0x1b8] sm:$0xff]  }
  0x20   : > { %258 = vst [vmem:[%s1867_s26 + $0xd0] sm:$0xff] %v257_v26   ;;  %v269_v29 = vld [vmem:[%s1862_s25 + $0x1c0] sm:$0xff]   ;;  %262 = vst [vmem:[%s1867_s26 + $0xd8] sm:$0xff] %v261_v27   ;;  %v273_v30 = vld [vmem:[%s1862_s25 + $0x1c8] sm:$0xff]  }
  0x21   : > { %266 = vst [vmem:[%s1867_s26 + $0xe0] sm:$0xff] %v265_v28   ;;  %270 = vst [vmem:[%s1867_s26 + $0xe8] sm:$0xff] %v269_v29   ;;  %v277_v31 = vld [vmem:[%s1862_s25 + $0x1d0] sm:$0xff]   ;;  %v281_v32 = vld [vmem:[%s1862_s25 + $0x1d8] sm:$0xff]  }
  0x22   : > { %274 = vst [vmem:[%s1867_s26 + $0xf0] sm:$0xff] %v273_v30   ;;  %278 = vst [vmem:[%s1867_s26 + $0xf8] sm:$0xff] %v277_v31   ;;  %v285_v33 = vld [vmem:[%s1862_s25 + $0x1e0] sm:$0xff]   ;;  %v289_v34 = vld [vmem:[%s1862_s25 + $0x1e8] sm:$0xff]  }
  0x23   : > { %282 = vst [vmem:[%s1867_s26 + $0x100] sm:$0xff] %v281_v32   ;;  %v293_v35 = vld [vmem:[%s1862_s25 + $0x1f0] sm:$0xff]   ;;  %286 = vst [vmem:[%s1867_s26 + $0x108] sm:$0xff] %v285_v33  }
  0x24   : > { %290 = vst [vmem:[%s1867_s26 + $0x110] sm:$0xff] %v289_v34   ;;  %294 = vst [vmem:[%s1867_s26 + $0x118] sm:$0xff] %v293_v35  }
  0x25 PF: > { %p1427_p5 = scmp.ge.s32.totalorder %s1806_s14, 1  ;;  %p462_p6 = scmp.lt.s32.totalorder %s1806_s14, 3 }
  0x27   : > { %p463_p7 = pnand %p1427_p5, %p462_p6 }
  0x28   : > { %v1740_v36 = vld [vmem:[%s2143_s1] sm:$0xff] (!%p463_p7)   ;;  %s469_s29 = sand.u32 (!%p463_p7), 1, %s1798_s12   ;;  %v1741_v37 = vld [vmem:[%s2143_s1 + $0x8] sm:$0xff] (!%p463_p7)   ;;  %v1742_v38 = vld [vmem:[%s2143_s1 + $0x10] sm:$0xff] (!%p463_p7)   ;;  %s493_s24 = smul.u32 (!%p463_p7), 18, %s1422_s15 }
  0x29   : > { %466 = sbr.rel (%p463_p7) target bundleno = 363 (0x16b), region = 69  ;;  %1610 = vmatprep.subr.bf16.mxu0 (!%p463_p7), %v1740_v36  ;;  %1698 = vmatprep.subr.bf16.mxu1 (!%p463_p7), %v1740_v36  ;;  %v1743_v39 = vld [vmem:[%s2143_s1 + $0x18] sm:$0xff] (!%p463_p7)   ;;  %v1744_v42 = vld [vmem:[%s2143_s1 + $0x20] sm:$0xff] (!%p463_p7)   ;;  %v1745_v43 = vld [vmem:[%s2143_s1 + $0x28] sm:$0xff] (!%p463_p7)  }
  0x2a   : > { %s1715_s5 = smul.u32 (!%p463_p7), 288, %s469_s29  ;;  %1611 = vmatpush3.bf16.msra.mxu0 (!%p463_p7), %v1740_v36  ;;  %1706 = vmatpush3.bf16.msra.mxu1 (!%p463_p7), %v1740_v36  ;;  %v1746_v44 = vld [vmem:[%s2143_s1 + $0x30] sm:$0xff] (!%p463_p7)   ;;  %v1747_v45 = vld [vmem:[%s2143_s1 + $0x38] sm:$0xff] (!%p463_p7)   ;;  %p494_p8 = scmp.lt.s32.totalorder (!%p463_p7), %s493_s24, 35 }
  0x2b   : > { %1612 = vmatprep.subr.bf16.mxu0 (!%p463_p7), %v1741_v37  ;;  %1699 = vmatprep.subr.bf16.mxu1 (!%p463_p7), %v1741_v37 }
  0x2c   : > { %s1953_s10 = scalar_lea.vmem (!%p463_p7), [#allocation2], %s1715_s5 }
  0x2d   : > { %v1748_v40 = vld [vmem:[%s1953_s10] sm:$0xff] (!%p463_p7)   ;;  %v1749_v41 = vld [vmem:[%s1953_s10 + $0x90] sm:$0xff] (!%p463_p7)   ;;  %v1750_v46 = vld [vmem:[%s1953_s10 + $0x8] sm:$0xff] (!%p463_p7)  }
  0x2e   : > { %1613 = vmatpush3.bf16.msra.mxu0 (!%p463_p7), %v1741_v37  ;;  %1707 = vmatpush3.bf16.msra.mxu1 (!%p463_p7), %v1741_v37  ;;  %v1751_v47 = vld [vmem:[%s1953_s10 + $0x98] sm:$0xff] (!%p463_p7)   ;;  %v1752_v48 = vld [vmem:[%s1953_s10 + $0x10] sm:$0xff] (!%p463_p7)   ;;  %v1753_v49 = vld [vmem:[%s1953_s10 + $0xa0] sm:$0xff] (!%p463_p7)  }
  0x2f   : > { %1614 = vmatprep.subr.bf16.mxu0 (!%p463_p7), %v1742_v38  ;;  %1700 = vmatprep.subr.bf16.mxu1 (!%p463_p7), %v1742_v38  ;;  %v1754_v50 = vld [vmem:[%s1953_s10 + $0x18] sm:$0xff] (!%p463_p7)   ;;  %v1755_v51 = vld [vmem:[%s1953_s10 + $0xa8] sm:$0xff] (!%p463_p7)   ;;  %v1756_v52 = vld [vmem:[%s1953_s10 + $0x20] sm:$0xff] (!%p463_p7)  }
  0x30   : > { %1626 = vmatprep.mubr.bf16.mxu0 %v1748_v40  ;;  %1662 = vmatprep.mubr.bf16.mxu1 %v1749_v41  ;;  %v1757_v53 = vld [vmem:[%s1953_s10 + $0xb0] sm:$0xff]   ;;  %v1758_v54 = vld [vmem:[%s1953_s10 + $0x28] sm:$0xff]   ;;  %v1759_v55 = vld [vmem:[%s1953_s10 + $0xb8] sm:$0xff]   ;;  %s2150_s24 = smov (!%p494_p8, %s493_s24), 35 }
  0x31   : > { %v1760_v56 = vld [vmem:[%s1953_s10 + $0x30] sm:$0xff]   ;;  %v1761_v57 = vld [vmem:[%s1953_s10 + $0xc0] sm:$0xff]   ;;  %v1762_v58 = vld [vmem:[%s1953_s10 + $0x38] sm:$0xff]   ;;  %s1428_s14 = sshll.u32 %s2150_s24, 2 }
  0x32   : > { %1615 = vmatpush3.bf16.msra.mxu0 %v1742_v38  ;;  %1708 = vmatpush3.bf16.msra.mxu1 %v1742_v38  ;;  %v1763_v59 = vld [vmem:[%s1953_s10 + $0xc8] sm:$0xff]   ;;  %v1764_v60 = vld [vmem:[%s1953_s10 + $0x40] sm:$0xff]   ;;  %v1765_v61 = vld [vmem:[%s1953_s10 + $0xd0] sm:$0xff]   ;;  %s2075_s28 = scalar_lea.vmem %s2145_s3, %s1428_s14 }
  0x33   : > { %1616 = vmatprep.subr.bf16.mxu0 %v1743_v39  ;;  %1701 = vmatprep.subr.bf16.mxu1 %v1743_v39  ;;  %v1766_v62 = vld [vmem:[%s1953_s10 + $0x48] sm:$0xff]   ;;  %v1767_v63 = vld [vmem:[%s1953_s10 + $0xd8] sm:$0xff]   ;;  %v1768_v0 = vld [vmem:[%s1953_s10 + $0x50] sm:$0xff]  }
  0x34   : > { %v1769_v1 = vld [vmem:[%s1953_s10 + $0xe0] sm:$0xff]   ;;  %v1770_v2 = vld [vmem:[%s1953_s10 + $0x58] sm:$0xff]   ;;  %v1771_v3 = vld [vmem:[%s1953_s10 + $0xe8] sm:$0xff]  }
  0x35   : > { %v1772_v4 = vld [vmem:[%s1953_s10 + $0x60] sm:$0xff]   ;;  %v1773_v5 = vld [vmem:[%s1953_s10 + $0xf0] sm:$0xff]   ;;  %v1774_v6 = vld [vmem:[%s1953_s10 + $0x68] sm:$0xff]  }
  0x36   : > { %1617 = vmatpush3.bf16.msra.mxu0 %v1743_v39  ;;  %1709 = vmatpush3.bf16.msra.mxu1 %v1743_v39  ;;  %v1775_v7 = vld [vmem:[%s1953_s10 + $0xf8] sm:$0xff]   ;;  %v1776_v8 = vld [vmem:[%s1953_s10 + $0x70] sm:$0xff]   ;;  %v1777_v9 = vld [vmem:[%s1953_s10 + $0x100] sm:$0xff]  }
  0x37   : > { %1618 = vmatprep.subr.bf16.mxu0 %v1744_v42  ;;  %1702 = vmatprep.subr.bf16.mxu1 %v1744_v42  ;;  %v1778_v10 = vld [vmem:[%s1953_s10 + $0x78] sm:$0xff]   ;;  %v1779_v11 = vld [vmem:[%s1953_s10 + $0x108] sm:$0xff]   ;;  %v1780_v12 = vld [vmem:[%s1953_s10 + $0x80] sm:$0xff]  }
  0x38   : > { %v1781_v13 = vld [vmem:[%s1953_s10 + $0x110] sm:$0xff]   ;;  %v1782_v14 = vld [vmem:[%s1953_s10 + $0x88] sm:$0xff]   ;;  %v1783_v15 = vld [vmem:[%s1953_s10 + $0x118] sm:$0xff]  }
  0x3a   : > { %1619 = vmatpush3.bf16.msra.mxu0 %v1744_v42  ;;  %1710 = vmatpush3.bf16.msra.mxu1 %v1744_v42 }
  0x3b   : > { %1620 = vmatprep.subr.bf16.mxu0 %v1745_v43  ;;  %1703 = vmatprep.subr.bf16.mxu1 %v1745_v43 }
  0x3e   : > { %1621 = vmatpush3.bf16.msra.mxu0 %v1745_v43  ;;  %1711 = vmatpush3.bf16.msra.mxu1 %v1745_v43 }
  0x3f   : > { %1622 = vmatprep.subr.bf16.mxu0 %v1746_v44  ;;  %1704 = vmatprep.subr.bf16.mxu1 %v1746_v44 }
  0x42   : > { %1623 = vmatpush3.bf16.msra.mxu0 %v1746_v44  ;;  %1712 = vmatpush3.bf16.msra.mxu1 %v1746_v44 }
  0x43   : > { %1624 = vmatprep.subr.bf16.mxu0 %v1747_v45  ;;  %1705 = vmatprep.subr.bf16.mxu1 %v1747_v45 }
  0x46   : > { %1625 = vmatpush3.bf16.msra.mxu0 %v1747_v45  ;;  %1713 = vmatpush3.bf16.msra.mxu1 %v1747_v45 }
  0x49   : > { %1627 = vmatmul.mubr.bf16.vlgmr.msra.gmra.mrb[0].mxu0 %v1750_v46  ;;  %1663 = vmatmul.mubr.bf16.vlgmr.msra.gmra.mrb[0].mxu1 %v1751_v47 }
  0x4a   : > { %1630 = vmatprep.mubr.bf16.mxu0 %v1752_v48  ;;  %1666 = vmatprep.mubr.bf16.mxu1 %v1753_v49 }
  0x51   : > { %1631 = vmatmul.mubr.bf16.gmra.mrb[4].mxu0 %v1754_v50  ;;  %1667 = vmatmul.mubr.bf16.gmra.mrb[4].mxu1 %v1755_v51 }
  0x52   : > { %1634 = vmatprep.mubr.bf16.mxu0 %v1756_v52  ;;  %1670 = vmatprep.mubr.bf16.mxu1 %v1757_v53 }
  0x59   : > { %1635 = vmatmul.mubr.bf16.gmra.mrb[8].mxu0 %v1758_v54  ;;  %1671 = vmatmul.mubr.bf16.gmra.mrb[8].mxu1 %v1759_v55  ;;  %v2064_v54 = vld [vmem:[%s2144_s2] ss:$0 sm:$0xff] }
  0x5a   : > { %1638 = vmatprep.mubr.bf16.mxu0 %v1760_v56  ;;  %1674 = vmatprep.mubr.bf16.mxu1 %v1761_v57 }
  0x61   : > { %1639 = vmatmul.mubr.bf16.gmra.mrb[12].mxu0 %v1762_v58  ;;  %1675 = vmatmul.mubr.bf16.gmra.mrb[12].mxu1 %v1763_v59 }
  0x62   : > { %1642 = vmatprep.mubr.bf16.mxu0 %v1764_v60  ;;  %1678 = vmatprep.mubr.bf16.mxu1 %v1765_v61 }
  0x69   : > { %1643 = vmatmul.mubr.bf16.gmra.mrb[16].mxu0 %v1766_v62  ;;  %1679 = vmatmul.mubr.bf16.gmra.mrb[16].mxu1 %v1767_v63 }
  0x6a   : > { %1646 = vmatprep.mubr.bf16.mxu0 %v1768_v0  ;;  %1682 = vmatprep.mubr.bf16.mxu1 %v1769_v1 }
  0x71   : > { %1647 = vmatmul.mubr.bf16.gmra.mrb[20].mxu0 %v1770_v2  ;;  %1683 = vmatmul.mubr.bf16.gmra.mrb[20].mxu1 %v1771_v3 }
  0x72   : > { %1650 = vmatprep.mubr.bf16.mxu0 %v1772_v4  ;;  %1686 = vmatprep.mubr.bf16.mxu1 %v1773_v5 }
  0x79   : > { %1651 = vmatmul.mubr.bf16.gmra.mrb[24].mxu0 %v1774_v6  ;;  %1687 = vmatmul.mubr.bf16.gmra.mrb[24].mxu1 %v1775_v7 }
  0x7a   : > { %1654 = vmatprep.mubr.bf16.mxu0 %v1776_v8  ;;  %1690 = vmatprep.mubr.bf16.mxu1 %v1777_v9 }
  0x81   : > { %1655 = vmatmul.mubr.bf16.gmra.mrb[28].mxu0 %v1778_v10  ;;  %1691 = vmatmul.mubr.bf16.gmra.mrb[28].mxu1 %v1779_v11 }
  0x82   : > { %1658 = vmatprep.mubr.bf16.mxu0 %v1780_v12  ;;  %1694 = vmatprep.mubr.bf16.mxu1 %v1781_v13 }
  0x89   : > { %1659 = vmatmul.mubr.bf16.gmra.mrb[32].mxu0 %v1782_v14  ;;  %1695 = vmatmul.mubr.bf16.gmra.mrb[32].mxu1 %v1783_v15 }
 0x11c   : > { %v2003_v16 = vpop.f32.mrb[0].mxu0  ;;  %v2005_v17 = vpop.f32.mrb[0].mxu1 }
 0x11d   : > { %v886_v18 = vpop.f32.mrb[1].mxu0  ;;  %v1030_v19 = vpop.f32.mrb[1].mxu1 }
 0x11e   : > { %v2007_v20 = vpop.f32.mrb[2].mxu0  ;;  %v2009_v21 = vpop.f32.mrb[2].mxu1 }
 0x11f   : > { %v889_v22 = vpop.f32.mrb[3].mxu0  ;;  %v1033_v23 = vpop.f32.mrb[3].mxu1 }
 0x124   : > { %v2011_v24 = vpop.f32.mrb[4].mxu0  ;;  %v2013_v25 = vpop.f32.mrb[4].mxu1 }
 0x125   : > { %v902_v26 = vpop.f32.mrb[5].mxu0  ;;  %v1046_v27 = vpop.f32.mrb[5].mxu1 }
 0x126   : > { %v2015_v28 = vpop.f32.mrb[6].mxu0  ;;  %v2017_v29 = vpop.f32.mrb[6].mxu1 }
 0x127   : > { %v2019_v30 = vpop.f32.mrb[7].mxu0  ;;  %v2021_v31 = vpop.f32.mrb[7].mxu1 }
 0x12c   : > { %v2023_v32 = vpop.f32.mrb[8].mxu0  ;;  %v2025_v33 = vpop.f32.mrb[8].mxu1 }
 0x12d   : > { %v2027_v34 = vpop.f32.mrb[9].mxu0  ;;  %v2029_v35 = vpop.f32.mrb[9].mxu1 }
 0x12e   : > { %v2031_v36 = vpop.f32.mrb[10].mxu0  ;;  %v2033_v37 = vpop.f32.mrb[10].mxu1 }
 0x12f   : > { %v2035_v38 = vpop.f32.mrb[11].mxu0  ;;  %v2037_v39 = vpop.f32.mrb[11].mxu1 }
 0x134   : > { %v2039_v40 = vpop.f32.mrb[12].mxu0  ;;  %v2041_v41 = vpop.f32.mrb[12].mxu1 }
 0x135   : > { %v2043_v42 = vpop.f32.mrb[13].mxu0  ;;  %v2045_v43 = vpop.f32.mrb[13].mxu1 }
 0x136   : > { %v2047_v44 = vpop.f32.mrb[14].mxu0  ;;  %v2049_v45 = vpop.f32.mrb[14].mxu1 }
 0x137   : > { %v2051_v46 = vpop.f32.mrb[15].mxu0  ;;  %v2053_v47 = vpop.f32.mrb[15].mxu1 }
 0x13c   : > { %v1644_v48 = vpop.f32.mrb[16].mxu0  ;;  %v1680_v49 = vpop.f32.mrb[16].mxu1 }
 0x13d   : > { %v1173_v50 = vmax.f32 %v886_v18, %v1644_v48  ;;  %v1191_v51 = vmax.f32 %v1030_v19, %v1680_v49  ;;  %v2057_v52 = vpop.f32.mrb[17].mxu0  ;;  %v2059_v53 = vpop.f32.mrb[17].mxu1 }
 0x13e   : > { %v1645_v55 = vpop.f32.mrb[18].mxu0  ;;  %v1681_v56 = vpop.f32.mrb[18].mxu1 }
 0x13f   : > { %v1209_v57 = vmax.f32 %v1173_v50, %v1191_v51  ;;  %v1174_v58 = vmax.f32 %v889_v22, %v1645_v55  ;;  %v1192_v59 = vmax.f32 %v1033_v23, %v1681_v56  ;;  %v2066_v60 = vpop.f32.mrb[19].mxu0  ;;  %v2068_v61 = vpop.f32.mrb[19].mxu1 }
 0x141   : > { %v1234_v62 = vadd.f32 %v2064_v54, %v1209_v57  ;;  %v1210_v63 = vmax.f32 %v1174_v58, %v1192_v59 }
 0x143   : > { %v1235_v0 = vadd.f32 %v2064_v54, %v1210_v63  ;;  %v1252_v3 = vmax.f32 %v1234_v62, 0.0 }
 0x144   : > { %v1648_v1 = vpop.f32.mrb[20].mxu0  ;;  %v1684_v2 = vpop.f32.mrb[20].mxu1 }
 0x145   : > { %v1253_v4 = vmax.f32 %v1235_v0, 0.0  ;;  %v1177_v5 = vmax.f32 %v902_v26, %v1648_v1  ;;  %v1195_v6 = vmax.f32 %v1046_v27, %v1684_v2  ;;  %v966_v7 = vpop.f32.mrb[21].mxu0  ;;  %v1110_v8 = vpop.f32.mrb[21].mxu1 }
 0x146   : > { %v1175_v9 = vmax.f32 %v2003_v16, %v966_v7  ;;  %v1193_v10 = vmax.f32 %v2005_v17, %v1110_v8  ;;  %v1649_v11 = vpop.f32.mrb[22].mxu0  ;;  %v1685_v12 = vpop.f32.mrb[22].mxu1 }
 0x147   : > { %v1516_v13 = vpack.c.bf16 %v1253_v4, %v1252_v3  ;;  %v1213_v14 = vmax.f32 %v1177_v5, %v1195_v6  ;;  %v1178_v15 = vmax.f32 %v2019_v30, %v1649_v11  ;;  %v1196_v18 = vmax.f32 %v2021_v31, %v1685_v12  ;;  %v969_v19 = vpop.f32.mrb[23].mxu0  ;;  %v1113_v22 = vpop.f32.mrb[23].mxu1 }
 0x148   : > { %v1211_v23 = vmax.f32 %v1175_v9, %v1193_v10  ;;  %v1176_v26 = vmax.f32 %v2007_v20, %v969_v19  ;;  %v1194_v27 = vmax.f32 %v2009_v21, %v1113_v22 }
 0x149   : > { %1517 = vst [vmem:[%s2075_s28] sm:$0xff] %v1516_v13   ;;  %v1238_v16 = vadd.f32 %v2064_v54, %v1213_v14  ;;  %v1214_v48 = vmax.f32 %v1178_v15, %v1196_v18 }
 0x14a   : > { %v1236_v17 = vadd.f32 %v2064_v54, %v1211_v23  ;;  %v1212_v49 = vmax.f32 %v1176_v26, %v1194_v27 }
 0x14b   : > { %v1239_v50 = vadd.f32 %v2064_v54, %v1214_v48  ;;  %v1256_v55 = vmax.f32 %v1238_v16, 0.0 }
 0x14c   : > { %v1237_v30 = vadd.f32 %v2064_v54, %v1212_v49  ;;  %v1652_v51 = vpop.f32.mrb[24].mxu0  ;;  %v1688_v31 = vpop.f32.mrb[24].mxu1  ;;  %v1254_v59 = vmax.f32 %v1236_v17, 0.0 }
 0x14d   : > { %v1257_v56 = vmax.f32 %v1239_v50, 0.0  ;;  %v1181_v57 = vmax.f32 %v2027_v34, %v1652_v51  ;;  %v1199_v20 = vmax.f32 %v2029_v35, %v1688_v31  ;;  %v982_v21 = vpop.f32.mrb[25].mxu0  ;;  %v1126_v58 = vpop.f32.mrb[25].mxu1 }
 0x14e   : > { %v1255_v62 = vmax.f32 %v1237_v30, 0.0  ;;  %v1179_v63 = vmax.f32 %v2011_v24, %v982_v21  ;;  %v1197_v0 = vmax.f32 %v2013_v25, %v1126_v58  ;;  %v1653_v1 = vpop.f32.mrb[26].mxu0  ;;  %v1689_v2 = vpop.f32.mrb[26].mxu1 }
 0x14f   : > { %v1526_v3 = vpack.c.bf16 %v1257_v56, %v1256_v55  ;;  %v1217_v4 = vmax.f32 %v1181_v57, %v1199_v20  ;;  %v1182_v5 = vmax.f32 %v2035_v38, %v1653_v1  ;;  %v1200_v34 = vmax.f32 %v2037_v39, %v1689_v2  ;;  %v985_v6 = vpop.f32.mrb[27].mxu0  ;;  %v1129_v35 = vpop.f32.mrb[27].mxu1 }
 0x150   : > { %v1521_v7 = vpack.c.bf16 %v1255_v62, %v1254_v59  ;;  %v1215_v8 = vmax.f32 %v1179_v63, %v1197_v0  ;;  %v1180_v9 = vmax.f32 %v2015_v28, %v985_v6  ;;  %v1198_v10 = vmax.f32 %v2017_v29, %v1129_v35 }
 0x151   : > { %1559 = vst [vmem:[%s2075_s28 + $0x10] sm:$0xff] %v1526_v3   ;;  %v1242_v24 = vadd.f32 %v2064_v54, %v1217_v4  ;;  %v1218_v25 = vmax.f32 %v1182_v5, %v1200_v34 }
 0x152   : > { %1558 = vst [vmem:[%s2075_s28 + $0x8] sm:$0xff] %v1521_v7   ;;  %v1240_v11 = vadd.f32 %v2064_v54, %v1215_v8  ;;  %v1216_v12 = vmax.f32 %v1180_v9, %v1198_v10 }
 0x153   : > { %v1243_v38 = vadd.f32 %v2064_v54, %v1218_v25  ;;  %v1260_v15 = vmax.f32 %v1242_v24, 0.0 }
 0x154   : > { %v1241_v39 = vadd.f32 %v2064_v54, %v1216_v12  ;;  %v1656_v13 = vpop.f32.mrb[28].mxu0  ;;  %v1692_v14 = vpop.f32.mrb[28].mxu1  ;;  %v1258_v23 = vmax.f32 %v1240_v11, 0.0 }
 0x155   : > { %v1261_v18 = vmax.f32 %v1243_v38, 0.0  ;;  %v1185_v28 = vmax.f32 %v2043_v42, %v1656_v13  ;;  %v1203_v29 = vmax.f32 %v2045_v43, %v1692_v14  ;;  %v998_v19 = vpop.f32.mrb[29].mxu0  ;;  %v1142_v22 = vpop.f32.mrb[29].mxu1 }
 0x156   : > { %v1259_v26 = vmax.f32 %v1241_v39, 0.0  ;;  %v1183_v27 = vmax.f32 %v2023_v32, %v998_v19  ;;  %v1201_v16 = vmax.f32 %v2025_v33, %v1142_v22  ;;  %v1657_v48 = vpop.f32.mrb[30].mxu0  ;;  %v1693_v17 = vpop.f32.mrb[30].mxu1 }
 0x157   : > { %v1536_v49 = vpack.c.bf16 %v1261_v18, %v1260_v15  ;;  %v1221_v50 = vmax.f32 %v1185_v28, %v1203_v29  ;;  %v1186_v30 = vmax.f32 %v2051_v46, %v1657_v48  ;;  %v1204_v42 = vmax.f32 %v2053_v47, %v1693_v17  ;;  %v1001_v51 = vpop.f32.mrb[31].mxu0  ;;  %v1145_v43 = vpop.f32.mrb[31].mxu1 }
 0x158   : > { %v1531_v31 = vpack.c.bf16 %v1259_v26, %v1258_v23  ;;  %v1219_v55 = vmax.f32 %v1183_v27, %v1201_v16  ;;  %v1184_v56 = vmax.f32 %v2031_v36, %v1001_v51  ;;  %v1202_v57 = vmax.f32 %v2033_v37, %v1145_v43 }
 0x159   : > { %1561 = vst [vmem:[%s2075_s28 + $0x20] sm:$0xff] %v1536_v49   ;;  %v1246_v32 = vadd.f32 %v2064_v54, %v1221_v50  ;;  %v1222_v33 = vmax.f32 %v1186_v30, %v1204_v42 }
 0x15a   : > { %1560 = vst [vmem:[%s2075_s28 + $0x18] sm:$0xff] %v1531_v31   ;;  %v1244_v20 = vadd.f32 %v2064_v54, %v1219_v55  ;;  %v1220_v21 = vmax.f32 %v1184_v56, %v1202_v57 }
 0x15b   : > { %v1247_v46 = vadd.f32 %v2064_v54, %v1222_v33  ;;  %v1264_v62 = vmax.f32 %v1246_v32, 0.0 }
 0x15c   : > { %v1245_v47 = vadd.f32 %v2064_v54, %v1220_v21  ;;  %v1660_v58 = vpop.f32.mrb[32].mxu0  ;;  %v1696_v59 = vpop.f32.mrb[32].mxu1  ;;  %v1262_v2 = vmax.f32 %v1244_v20, 0.0 }
 0x15d   : > { %v1265_v63 = vmax.f32 %v1247_v46, 0.0  ;;  %v1189_v36 = vmax.f32 %v2057_v52, %v1660_v58  ;;  %v1207_v37 = vmax.f32 %v2059_v53, %v1696_v59  ;;  %v1014_v0 = vpop.f32.mrb[33].mxu0  ;;  %v1158_v1 = vpop.f32.mrb[33].mxu1 }
 0x15e   : > { %v1263_v3 = vmax.f32 %v1245_v47, 0.0  ;;  %v1187_v4 = vmax.f32 %v2039_v40, %v1014_v0  ;;  %v1205_v5 = vmax.f32 %v2041_v41, %v1158_v1  ;;  %v1661_v34 = vpop.f32.mrb[34].mxu0  ;;  %v1697_v6 = vpop.f32.mrb[34].mxu1 }
 0x15f   : > { %v1546_v35 = vpack.c.bf16 %v1265_v63, %v1264_v62  ;;  %v1225_v7 = vmax.f32 %v1189_v36, %v1207_v37  ;;  %v1190_v8 = vmax.f32 %v2066_v60, %v1661_v34  ;;  %v1208_v52 = vmax.f32 %v2068_v61, %v1697_v6  ;;  %v1017_v9 = vpop.f32.mrb[35].mxu0  ;;  %v1161_v53 = vpop.f32.mrb[35].mxu1 }
 0x160   : > { %v1541_v10 = vpack.c.bf16 %v1263_v3, %v1262_v2  ;;  %v1223_v24 = vmax.f32 %v1187_v4, %v1205_v5  ;;  %v1188_v25 = vmax.f32 %v2047_v44, %v1017_v9  ;;  %v1206_v40 = vmax.f32 %v2049_v45, %v1161_v53 }
 0x161   : > { %1563 = vst [vmem:[%s2075_s28 + $0x30] sm:$0xff] %v1546_v35   ;;  %v1250_v41 = vadd.f32 %v2064_v54, %v1225_v7  ;;  %v1226_v11 = vmax.f32 %v1190_v8, %v1208_v52 }
 0x162   : > { %1562 = vst [vmem:[%s2075_s28 + $0x28] sm:$0xff] %v1541_v10   ;;  %v1248_v12 = vadd.f32 %v2064_v54, %v1223_v24  ;;  %v1224_v60 = vmax.f32 %v1188_v25, %v1206_v40 }
 0x163   : > { %v1251_v61 = vadd.f32 %v2064_v54, %v1226_v11  ;;  %v1268_v39 = vmax.f32 %v1250_v41, 0.0 }
 0x164   : > { %v1249_v38 = vadd.f32 %v2064_v54, %v1224_v60  ;;  %v1266_v14 = vmax.f32 %v1248_v12, 0.0 }
 0x165   : > { %v1269_v13 = vmax.f32 %v1251_v61, 0.0 }
 0x166   : > { %v1267_v44 = vmax.f32 %v1249_v38, 0.0 }
 0x167   : > { %v1556_v15 = vpack.c.bf16 %v1269_v13, %v1268_v39 }
 0x168   : > { %v1551_v18 = vpack.c.bf16 %v1267_v44, %v1266_v14 }
 0x169   : > { %1565 = vst [vmem:[%s2075_s28 + $0x40] sm:$0xff] %v1556_v15  }
 0x16a   : > { %1564 = vst [vmem:[%s2075_s28 + $0x38] sm:$0xff] %v1551_v18  }
 0x16b PF: > { %p10_p9 = scmp.ge.s32.totalorder %s1845_s16, 4   ;;  %s2146_s12 = smov %s1802_s13 }
 0x16c   : > { %s2147_s13 = smov %s1854_s19  ;;  %s2148_s14 = smov %s1845_s16 }
 0x16d   :  { %12 = sbr.rel (!%p10_p9) target bundleno = 2 (0x2), region = 108 }

// kernel: lenet_forward.5
= control target key start
LH: loop header
LB: loop body
LE: loop exit
PB: predicated region body
PF: predicated region fallthrough
CT: control target
= control target key end

     0   :  { %v297_v28 = vlaneseq  ;;  %v2301_v36 = vmov 1966171168   ;;  %s2854_s0 = inlined_call_operand.vmem [shape: bf16[2,2048], index: 0, kind: input, shape index: {}]   ;;  %s2855_s1 = inlined_call_operand.<no memory space> [shape: f32[1,1], index: 1, kind: input, shape index: {}]   ;;  %s2856_s2 = inlined_call_operand.vmem [shape: bf16[2048,128], index: 2, kind: input, shape index: {}]   ;;  %s2857_s3 = inlined_call_operand.vmem [shape: f32[1,128], index: 3, kind: input, shape index: {}]   ;;  %s2858_s4 = inlined_call_operand.vmem [shape: bf16[128,128], index: 4, kind: input, shape index: {}]   ;;  %s2859_s5 = inlined_call_operand.vmem [shape: f32[1,128], index: 5, kind: input, shape index: {}]   ;;  %s2860_s6 = inlined_call_operand.vmem [shape: bf16[128,128], index: 6, kind: input, shape index: {}]   ;;  %s2861_s7 = inlined_call_operand.vmem [shape: f32[1,128], index: 7, kind: input, shape index: {}]   ;;  %s2862_s8 = inlined_call_operand.hbm [shape: f32[2,128], index: 8, kind: output, shape index: {}]  }
   0x1   :  { %v2131_v0 = vld [vmem:[%s2856_s2 + $0x40] sm:$0xff]   ;;  %v2135_v4 = vld [vmem:[%s2856_s2 + $0x48] sm:$0xff]   ;;  %v2139_v8 = vld [vmem:[%s2856_s2 + $0x50] sm:$0xff]   ;;  %v295_v37 = vunpack.c.l.s4 %v2301_v36 }
   0x2   :  { %v2132_v1 = vld [vmem:[%s2856_s2 + $0xc0] sm:$0xff]   ;;  %1893 = vmatprep.subr.bf16.mxu0 %v2131_v0  ;;  %v2136_v5 = vld [vmem:[%s2856_s2 + $0xc8] sm:$0xff]   ;;  %v2140_v9 = vld [vmem:[%s2856_s2 + $0xd0] sm:$0xff]   ;;  %v298_v33 = vshrl.u32 %v297_v28, 7 }
   0x3   :  { %v2133_v2 = vld [vmem:[%s2856_s2] sm:$0xff]   ;;  %1915 = vmatprep.subr.bf16.mxu1 %v2132_v1  ;;  %v2137_v6 = vld [vmem:[%s2856_s2 + $0x8] sm:$0xff]   ;;  %v2141_v10 = vld [vmem:[%s2856_s2 + $0x10] sm:$0xff]   ;;  %v296_v40 = vunpack.c.0.s8 %v295_v37 }
   0x4   :  { %v2134_v3 = vld [vmem:[%s2856_s2 + $0x80] sm:$0xff]   ;;  %1894 = vmatpush3.bf16.msra.mxu0 %v2133_v2  ;;  %v2138_v7 = vld [vmem:[%s2856_s2 + $0x88] sm:$0xff]   ;;  %v2142_v11 = vld [vmem:[%s2856_s2 + $0x90] sm:$0xff]  }
   0x5   :  { %1916 = vmatpush3.bf16.msra.mxu1 %v2134_v3  ;;  %1895 = vmatprep.subr.bf16.mxu0 %v2135_v4  ;;  %v2143_v12 = vld [vmem:[%s2856_s2 + $0x58] sm:$0xff]   ;;  %v2147_v16 = vld [vmem:[%s2856_s2 + $0x60] sm:$0xff]   ;;  %v2151_v20 = vld [vmem:[%s2856_s2 + $0x68] sm:$0xff]   ;;  %v2455_v41 = vsub.s32 %v296_v40, %v298_v33 }
   0x6   :  { %1917 = vmatprep.subr.bf16.mxu1 %v2136_v5  ;;  %v2144_v13 = vld [vmem:[%s2856_s2 + $0xd8] sm:$0xff]   ;;  %v2148_v17 = vld [vmem:[%s2856_s2 + $0xe0] sm:$0xff]   ;;  %v2152_v21 = vld [vmem:[%s2856_s2 + $0xe8] sm:$0xff]  }
   0x7   :  { %v2145_v14 = vld [vmem:[%s2856_s2 + $0x18] sm:$0xff]   ;;  %v2149_v18 = vld [vmem:[%s2856_s2 + $0x20] sm:$0xff]   ;;  %v2153_v22 = vld [vmem:[%s2856_s2 + $0x28] sm:$0xff]  }
   0x8   :  { %1896 = vmatpush3.bf16.msra.mxu0 %v2137_v6  ;;  %v2146_v15 = vld [vmem:[%s2856_s2 + $0x98] sm:$0xff]   ;;  %v2150_v19 = vld [vmem:[%s2856_s2 + $0xa0] sm:$0xff]   ;;  %v2154_v23 = vld [vmem:[%s2856_s2 + $0xa8] sm:$0xff]  }
   0x9   :  { %1918 = vmatpush3.bf16.msra.mxu1 %v2138_v7  ;;  %1897 = vmatprep.subr.bf16.mxu0 %v2139_v8  ;;  %v2155_v24 = vld [vmem:[%s2856_s2 + $0x70] sm:$0xff]   ;;  %v2159_v29 = vld [vmem:[%s2856_s2 + $0x78] sm:$0xff]   ;;  %v33_v34 = vld [vmem:[%s2854_s0] sm:$0xff] }
   0xa   :  { %1919 = vmatprep.subr.bf16.mxu1 %v2140_v9  ;;  %v2156_v25 = vld [vmem:[%s2856_s2 + $0xf0] sm:$0xff]   ;;  %v2160_v30 = vld [vmem:[%s2856_s2 + $0xf8] sm:$0xff]   ;;  %v2164_v35 = vld [vmem:[%s2856_s2 + $0x140] sm:$0xff]   ;;  %v293_v39 = vcombine.high %v33_v34, %v33_v34  ;;  %v300_v42 = vrot.slane %v33_v34, %v2455_v41 }
   0xb   :  { %v2157_v26 = vld [vmem:[%s2856_s2 + $0x30] sm:$0xff]   ;;  %v2161_v31 = vld [vmem:[%s2856_s2 + $0x38] sm:$0xff]   ;;  %v2165_v38 = vld [vmem:[%s2856_s2 + $0x1c0] sm:$0xff]  }
   0xc   :  { %1898 = vmatpush3.bf16.msra.mxu0 %v2141_v10  ;;  %v2158_v27 = vld [vmem:[%s2856_s2 + $0xb0] sm:$0xff]   ;;  %v2162_v32 = vld [vmem:[%s2856_s2 + $0xb8] sm:$0xff]   ;;  %v2459_v43 = vrot.slane %v293_v39, %v2455_v41  ;;  %v308_v44 = vcombine.high %v300_v42, %v300_v42  ;;  %v316_v45 = vrot.slane %v300_v42, %v2455_v41  ;;  %v2166_v47 = vld [vmem:[%s2856_s2 + $0x100] sm:$0xff]  }
   0xd   :  { %1920 = vmatpush3.bf16.msra.mxu1 %v2142_v11  ;;  %1899 = vmatprep.subr.bf16.mxu0 %v2143_v12  ;;  %v2167_v49 = vld [vmem:[%s2856_s2 + $0x180] sm:$0xff]   ;;  %v2168_v52 = vld [vmem:[%s2856_s2 + $0x148] sm:$0xff]   ;;  %v2172_v58 = vld [vmem:[%s2856_s2 + $0x150] sm:$0xff]  }
   0xe   :  { %1921 = vmatprep.subr.bf16.mxu1 %v2144_v13  ;;  %v309_v46 = vcombine.high %v2459_v43, %v2459_v43  ;;  %v330_v48 = vrot.slane %v308_v44, %v2455_v41  ;;  %v338_v51 = vcombine.high %v316_v45, %v316_v45  ;;  %v2169_v54 = vld [vmem:[%s2856_s2 + $0x1c8] sm:$0xff]   ;;  %v2173_v59 = vld [vmem:[%s2856_s2 + $0x1d0] sm:$0xff]   ;;  %v2176_v62 = vld [vmem:[%s2856_s2 + $0x158] sm:$0xff]  }
   0xf   :  { %v2170_v55 = vld [vmem:[%s2856_s2 + $0x108] sm:$0xff]   ;;  %v2174_v60 = vld [vmem:[%s2856_s2 + $0x110] sm:$0xff]   ;;  %v2177_v63 = vld [vmem:[%s2856_s2 + $0x1d8] sm:$0xff]  }
  0x10   :  { %1900 = vmatpush3.bf16.msra.mxu0 %v2145_v14  ;;  %v337_v50 = vrot.slane %v309_v46, %v2455_v41  ;;  %1207 = vmatprep.mubr.bf16.mxu0 %v330_v48  ;;  %v340_v53 = vcombine.high %v330_v48, %v330_v48  ;;  %v2171_v57 = vld [vmem:[%s2856_s2 + $0x188] sm:$0xff]   ;;  %v2175_v61 = vld [vmem:[%s2856_s2 + $0x190] sm:$0xff]   ;;  %v2178_v0 = vld [vmem:[%s2856_s2 + $0x118] sm:$0xff]  }
  0x11   :  { %1922 = vmatpush3.bf16.msra.mxu1 %v2146_v15  ;;  %1901 = vmatprep.subr.bf16.mxu0 %v2147_v16  ;;  %v2179_v1 = vld [vmem:[%s2856_s2 + $0x198] sm:$0xff]   ;;  %v2180_v2 = vld [vmem:[%s2856_s2 + $0x160] sm:$0xff]   ;;  %v2184_v6 = vld [vmem:[%s2856_s2 + $0x168] sm:$0xff]  }
  0x12   :  { %1923 = vmatprep.subr.bf16.mxu1 %v2148_v17  ;;  %v341_v56 = vcombine.high %v337_v50, %v337_v50  ;;  %1247 = vmatprep.mubr.bf16.mxu1 %v340_v53  ;;  %v2181_v3 = vld [vmem:[%s2856_s2 + $0x1e0] sm:$0xff]   ;;  %v2185_v7 = vld [vmem:[%s2856_s2 + $0x1e8] sm:$0xff]   ;;  %v2188_v10 = vld [vmem:[%s2856_s2 + $0x170] sm:$0xff]  }
  0x13   :  { %v2182_v4 = vld [vmem:[%s2856_s2 + $0x120] sm:$0xff]   ;;  %v2186_v8 = vld [vmem:[%s2856_s2 + $0x128] sm:$0xff]   ;;  %v2189_v11 = vld [vmem:[%s2856_s2 + $0x1f0] sm:$0xff]  }
  0x14   :  { %1902 = vmatpush3.bf16.msra.mxu0 %v2149_v18  ;;  %v2183_v5 = vld [vmem:[%s2856_s2 + $0x1a0] sm:$0xff]   ;;  %v2187_v9 = vld [vmem:[%s2856_s2 + $0x1a8] sm:$0xff]   ;;  %v2190_v12 = vld [vmem:[%s2856_s2 + $0x130] sm:$0xff]   ;;  %v323_v18 = vrot.slane %v2459_v43, %v2455_v41 }
  0x15   :  { %1924 = vmatpush3.bf16.msra.mxu1 %v2150_v19  ;;  %1903 = vmatprep.subr.bf16.mxu0 %v2151_v20  ;;  %v2191_v13 = vld [vmem:[%s2856_s2 + $0x1b0] sm:$0xff]   ;;  %v2192_v14 = vld [vmem:[%s2856_s2 + $0x178] sm:$0xff]   ;;  %v2196_v19 = vld [vmem:[%s2856_s2 + $0x240] sm:$0xff]  }
  0x16   :  { %1925 = vmatprep.subr.bf16.mxu1 %v2152_v21  ;;  %v2193_v15 = vld [vmem:[%s2856_s2 + $0x1f8] sm:$0xff]   ;;  %v2197_v20 = vld [vmem:[%s2856_s2 + $0x2c0] sm:$0xff]   ;;  %v2204_v28 = vld [vmem:[%s2856_s2 + $0x250] sm:$0xff]  }
  0x17   :  { %v2194_v16 = vld [vmem:[%s2856_s2 + $0x138] sm:$0xff]   ;;  %v2198_v21 = vld [vmem:[%s2856_s2 + $0x200] sm:$0xff]   ;;  %v2216_v40 = vld [vmem:[%s2856_s2 + $0x268] sm:$0xff]  }
  0x18   :  { %1904 = vmatpush3.bf16.msra.mxu0 %v2153_v22  ;;  %v2195_v17 = vld [vmem:[%s2856_s2 + $0x1b8] sm:$0xff]   ;;  %v2199_v22 = vld [vmem:[%s2856_s2 + $0x280] sm:$0xff]   ;;  %v2217_v42 = vld [vmem:[%s2856_s2 + $0x2e8] sm:$0xff]  }
  0x19   :  { %1926 = vmatpush3.bf16.msra.mxu1 %v2154_v23  ;;  %1905 = vmatprep.subr.bf16.mxu0 %v2155_v24  ;;  %v339_v23 = vcombine.high %v323_v18, %v323_v18  ;;  %v2200_v24 = vld [vmem:[%s2856_s2 + $0x248] sm:$0xff]   ;;  %v2209_v33 = vld [vmem:[%s2856_s2 + $0x2d8] sm:$0xff]   ;;  %v2212_v36 = vld [vmem:[%s2856_s2 + $0x260] sm:$0xff]  }
  0x1a   :  { %1927 = vmatprep.subr.bf16.mxu1 %v2156_v25  ;;  %v2201_v25 = vld [vmem:[%s2856_s2 + $0x2c8] sm:$0xff]   ;;  %v2210_v34 = vld [vmem:[%s2856_s2 + $0x218] sm:$0xff]   ;;  %v2213_v37 = vld [vmem:[%s2856_s2 + $0x2e0] sm:$0xff]  }
  0x1b   :  { %v2215_v39 = vld [vmem:[%s2856_s2 + $0x2a0] sm:$0xff]   ;;  %v2218_v43 = vld [vmem:[%s2856_s2 + $0x228] sm:$0xff]  }
  0x1c   :  { %1906 = vmatpush3.bf16.msra.mxu0 %v2157_v26  ;;  %v2202_v26 = vld [vmem:[%s2856_s2 + $0x208] sm:$0xff]  }
  0x1d   :  { %1928 = vmatpush3.bf16.msra.mxu1 %v2158_v27  ;;  %1907 = vmatprep.subr.bf16.mxu0 %v2159_v29  ;;  %v2203_v27 = vld [vmem:[%s2856_s2 + $0x288] sm:$0xff]   ;;  %v2205_v29 = vld [vmem:[%s2856_s2 + $0x2d0] sm:$0xff]  }
  0x1e   :  { %1929 = vmatprep.subr.bf16.mxu1 %v2160_v30  ;;  %v2206_v30 = vld [vmem:[%s2856_s2 + $0x210] sm:$0xff]   ;;  %v2219_v44 = vld [vmem:[%s2856_s2 + $0x2a8] sm:$0xff]  }
  0x1f   :  { %v34_v46 = vld [vmem:[%s2854_s0 + $0x8] sm:$0xff] }
  0x20   :  { %1908 = vmatpush3.bf16.msra.mxu0 %v2161_v31  ;;  %v2207_v31 = vld [vmem:[%s2856_s2 + $0x290] sm:$0xff]   ;;  %v349_v48 = vrot.slane %v34_v46, %v2455_v41 }
  0x21   :  { %1930 = vmatpush3.bf16.msra.mxu1 %v2162_v32  ;;  %1937 = vmatprep.subr.bf16.mxu0 %v2164_v35  ;;  %v2208_v32 = vld [vmem:[%s2856_s2 + $0x258] sm:$0xff]  }
  0x22   :  { %1959 = vmatprep.subr.bf16.mxu1 %v2165_v38  ;;  %v2211_v35 = vld [vmem:[%s2856_s2 + $0x298] sm:$0xff]   ;;  %v2214_v38 = vld [vmem:[%s2856_s2 + $0x220] sm:$0xff]  }
  0x23   :  { %1208 = vmatmul.mubr.bf16.vlgmr.msra.gmra.mrb[0].mxu0 %v316_v45  ;;  %v2220_v45 = vld [vmem:[%s2856_s2 + $0x270] sm:$0xff]  }
  0x24   :  { %1938 = vmatpush3.bf16.msra.mxu0 %v2166_v47  ;;  %1248 = vmatmul.mubr.bf16.vlgmr.msra.gmra.mrb[0].mxu1 %v338_v51  ;;  %v2221_v47 = vld [vmem:[%s2856_s2 + $0x2f0] sm:$0xff]  }
  0x25   :  { %1939 = vmatprep.subr.bf16.mxu0 %v2168_v52  ;;  %1960 = vmatpush3.bf16.msra.mxu1 %v2167_v49  ;;  %v342_v49 = vcombine.high %v34_v46, %v34_v46  ;;  %v2223_v51 = vld [vmem:[%s2856_s2 + $0x2b0] sm:$0xff]   ;;  %v357_v52 = vcombine.high %v349_v48, %v349_v48 }
  0x26   :  { %1287 = vmatprep.mubr.bf16.mxu0 %v337_v50  ;;  %1961 = vmatprep.subr.bf16.mxu1 %v2169_v54  ;;  %v2222_v50 = vld [vmem:[%s2856_s2 + $0x230] sm:$0xff]   ;;  %v2224_v54 = vld [vmem:[%s2856_s2 + $0x278] sm:$0xff]  }
  0x27   :  { %1327 = vmatprep.mubr.bf16.mxu1 %v341_v56  ;;  %v2647_v53 = vrot.slane %v342_v49, %v2455_v41  ;;  %v379_v56 = vrot.slane %v357_v52, %v2455_v41 }
  0x28   :  { %1940 = vmatpush3.bf16.msra.mxu0 %v2170_v55  ;;  %v2225_v55 = vld [vmem:[%s2856_s2 + $0x2f8] sm:$0xff]  }
  0x29   :  { %1941 = vmatprep.subr.bf16.mxu0 %v2172_v58  ;;  %1962 = vmatpush3.bf16.msra.mxu1 %v2171_v57  ;;  %v358_v57 = vcombine.high %v2647_v53, %v2647_v53  ;;  %v2226_v58 = vld [vmem:[%s2856_s2 + $0x238] sm:$0xff]  }
  0x2a   :  { %1963 = vmatprep.subr.bf16.mxu1 %v2173_v59  ;;  %v2227_v59 = vld [vmem:[%s2856_s2 + $0x2b8] sm:$0xff]  }
  0x2c   :  { %1942 = vmatpush3.bf16.msra.mxu0 %v2174_v60  ;;  %v389_v60 = vcombine.high %v379_v56, %v379_v56 }
  0x2d   :  { %1943 = vmatprep.subr.bf16.mxu0 %v2176_v62  ;;  %1964 = vmatpush3.bf16.msra.mxu1 %v2175_v61  ;;  %v365_v61 = vrot.slane %v349_v48, %v2455_v41  ;;  %v2228_v62 = vld [vmem:[%s2856_s2 + $0x340] sm:$0xff]  }
  0x2e   :  { %1965 = vmatprep.subr.bf16.mxu1 %v2177_v63  ;;  %v2229_v63 = vld [vmem:[%s2856_s2 + $0x3c0] sm:$0xff]  }
  0x30   :  { %1944 = vmatpush3.bf16.msra.mxu0 %v2178_v0  ;;  %v386_v0 = vrot.slane %v358_v57, %v2455_v41 }
  0x31   :  { %1945 = vmatprep.subr.bf16.mxu0 %v2180_v2  ;;  %1966 = vmatpush3.bf16.msra.mxu1 %v2179_v1  ;;  %v2230_v1 = vld [vmem:[%s2856_s2 + $0x300] sm:$0xff]  }
  0x32   :  { %1967 = vmatprep.subr.bf16.mxu1 %v2181_v3  ;;  %v2231_v2 = vld [vmem:[%s2856_s2 + $0x380] sm:$0xff]   ;;  %v387_v3 = vcombine.high %v365_v61, %v365_v61 }
  0x34   :  { %1946 = vmatpush3.bf16.msra.mxu0 %v2182_v4  ;;  %v2232_v4 = vld [vmem:[%s2856_s2 + $0x348] sm:$0xff]  }
  0x35   :  { %1947 = vmatprep.subr.bf16.mxu0 %v2184_v6  ;;  %1968 = vmatpush3.bf16.msra.mxu1 %v2183_v5  ;;  %v2233_v5 = vld [vmem:[%s2856_s2 + $0x3c8] sm:$0xff]   ;;  %v390_v6 = vcombine.high %v386_v0, %v386_v0 }
  0x36   :  { %1969 = vmatprep.subr.bf16.mxu1 %v2185_v7  ;;  %v2234_v7 = vld [vmem:[%s2856_s2 + $0x308] sm:$0xff]  }
  0x38   :  { %1948 = vmatpush3.bf16.msra.mxu0 %v2186_v8  ;;  %v2235_v8 = vld [vmem:[%s2856_s2 + $0x388] sm:$0xff]  }
  0x39   :  { %1949 = vmatprep.subr.bf16.mxu0 %v2188_v10  ;;  %1970 = vmatpush3.bf16.msra.mxu1 %v2187_v9  ;;  %v2236_v9 = vld [vmem:[%s2856_s2 + $0x350] sm:$0xff]  }
  0x3a   :  { %1971 = vmatprep.subr.bf16.mxu1 %v2189_v11  ;;  %v2237_v10 = vld [vmem:[%s2856_s2 + $0x3d0] sm:$0xff]  }
  0x3b   :  { %v2238_v11 = vld [vmem:[%s2856_s2 + $0x310] sm:$0xff]  }
  0x3c   :  { %1950 = vmatpush3.bf16.msra.mxu0 %v2190_v12  ;;  %v2239_v12 = vld [vmem:[%s2856_s2 + $0x390] sm:$0xff]  }
  0x3d   :  { %1951 = vmatprep.subr.bf16.mxu0 %v2192_v14  ;;  %1972 = vmatpush3.bf16.msra.mxu1 %v2191_v13  ;;  %v2240_v13 = vld [vmem:[%s2856_s2 + $0x358] sm:$0xff]  }
  0x3e   :  { %1973 = vmatprep.subr.bf16.mxu1 %v2193_v15  ;;  %v2241_v14 = vld [vmem:[%s2856_s2 + $0x3d8] sm:$0xff]  }
  0x3f   :  { %v2242_v15 = vld [vmem:[%s2856_s2 + $0x318] sm:$0xff]  }
  0x40   :  { %1952 = vmatpush3.bf16.msra.mxu0 %v2194_v16  ;;  %v2243_v16 = vld [vmem:[%s2856_s2 + $0x398] sm:$0xff]  }
  0x41   :  { %1981 = vmatprep.subr.bf16.mxu0 %v2196_v19  ;;  %1974 = vmatpush3.bf16.msra.mxu1 %v2195_v17  ;;  %v2244_v17 = vld [vmem:[%s2856_s2 + $0x360] sm:$0xff]  }
  0x42   :  { %2003 = vmatprep.subr.bf16.mxu1 %v2197_v20  ;;  %v2246_v19 = vld [vmem:[%s2856_s2 + $0x320] sm:$0xff]  }
  0x43   :  { %1288 = vmatmul.mubr.bf16.vlgmr.msra.gmra.mrb[4].mxu0 %v323_v18  ;;  %v2245_v18 = vld [vmem:[%s2856_s2 + $0x3e0] sm:$0xff]  }
  0x44   :  { %1982 = vmatpush3.bf16.msra.mxu0 %v2198_v21  ;;  %1328 = vmatmul.mubr.bf16.vlgmr.msra.gmra.mrb[4].mxu1 %v339_v23  ;;  %v2247_v20 = vld [vmem:[%s2856_s2 + $0x3a0] sm:$0xff]   ;;  %v2248_v21 = vld [vmem:[%s2856_s2 + $0x368] sm:$0xff]  }
  0x45   :  { %1983 = vmatprep.subr.bf16.mxu0 %v2200_v24  ;;  %2004 = vmatpush3.bf16.msra.mxu1 %v2199_v22  ;;  %v2249_v22 = vld [vmem:[%s2856_s2 + $0x3e8] sm:$0xff]  }
  0x46   :  { %2005 = vmatprep.subr.bf16.mxu1 %v2201_v25  ;;  %1367 = vmatprep.mubr.bf16.mxu0 %v379_v56  ;;  %v2250_v23 = vld [vmem:[%s2856_s2 + $0x328] sm:$0xff]   ;;  %v2252_v25 = vld [vmem:[%s2856_s2 + $0x370] sm:$0xff]  }
  0x47   :  { %1407 = vmatprep.mubr.bf16.mxu1 %v389_v60  ;;  %v2251_v24 = vld [vmem:[%s2856_s2 + $0x3a8] sm:$0xff]  }
  0x48   :  { %1984 = vmatpush3.bf16.msra.mxu0 %v2202_v26  ;;  %v2253_v26 = vld [vmem:[%s2856_s2 + $0x3f0] sm:$0xff]  }
  0x49   :  { %1985 = vmatprep.subr.bf16.mxu0 %v2204_v28  ;;  %2006 = vmatpush3.bf16.msra.mxu1 %v2203_v27  ;;  %v2254_v27 = vld [vmem:[%s2856_s2 + $0x330] sm:$0xff]   ;;  %v2256_v28 = vld [vmem:[%s2856_s2 + $0x378] sm:$0xff]  }
  0x4a   :  { %2007 = vmatprep.subr.bf16.mxu1 %v2205_v29  ;;  %v2255_v29 = vld [vmem:[%s2856_s2 + $0x3b0] sm:$0xff]  }
  0x4c   :  { %1986 = vmatpush3.bf16.msra.mxu0 %v2206_v30  ;;  %v2257_v30 = vld [vmem:[%s2856_s2 + $0x3f8] sm:$0xff]  }
  0x4d   :  { %1987 = vmatprep.subr.bf16.mxu0 %v2208_v32  ;;  %2008 = vmatpush3.bf16.msra.mxu1 %v2207_v31  ;;  %v2258_v31 = vld [vmem:[%s2856_s2 + $0x338] sm:$0xff]  }
  0x4e   :  { %2009 = vmatprep.subr.bf16.mxu1 %v2209_v33  ;;  %v2259_v32 = vld [vmem:[%s2856_s2 + $0x3b8] sm:$0xff]   ;;  %v372_v33 = vrot.slane %v2647_v53, %v2455_v41 }
  0x50   :  { %1988 = vmatpush3.bf16.msra.mxu0 %v2210_v34 }
  0x51   :  { %1989 = vmatprep.subr.bf16.mxu0 %v2212_v36  ;;  %2010 = vmatpush3.bf16.msra.mxu1 %v2211_v35 }
  0x52   :  { %2011 = vmatprep.subr.bf16.mxu1 %v2213_v37 }
  0x54   :  { %1990 = vmatpush3.bf16.msra.mxu0 %v2214_v38 }
  0x55   :  { %1991 = vmatprep.subr.bf16.mxu0 %v2216_v40  ;;  %2012 = vmatpush3.bf16.msra.mxu1 %v2215_v39 }
  0x56   :  { %2013 = vmatprep.subr.bf16.mxu1 %v2217_v42 }
  0x58   :  { %1992 = vmatpush3.bf16.msra.mxu0 %v2218_v43 }
  0x59   :  { %1993 = vmatprep.subr.bf16.mxu0 %v2220_v45  ;;  %2014 = vmatpush3.bf16.msra.mxu1 %v2219_v44 }
  0x5a   :  { %2015 = vmatprep.subr.bf16.mxu1 %v2221_v47 }
  0x5c   :  { %1994 = vmatpush3.bf16.msra.mxu0 %v2222_v50 }
  0x5d   :  { %1995 = vmatprep.subr.bf16.mxu0 %v2224_v54  ;;  %2016 = vmatpush3.bf16.msra.mxu1 %v2223_v51 }
  0x5e   :  { %2017 = vmatprep.subr.bf16.mxu1 %v2225_v55 }
  0x60   :  { %1996 = vmatpush3.bf16.msra.mxu0 %v2226_v58 }
  0x61   :  { %2025 = vmatprep.subr.bf16.mxu0 %v2228_v62  ;;  %2018 = vmatpush3.bf16.msra.mxu1 %v2227_v59 }
  0x62   :  { %2047 = vmatprep.subr.bf16.mxu1 %v2229_v63 }
  0x63   :  { %1368 = vmatmul.mubr.bf16.vlgmr.msra.gmra.mrb[8].mxu0 %v365_v61 }
  0x64   :  { %2026 = vmatpush3.bf16.msra.mxu0 %v2230_v1  ;;  %1447 = vmatprep.mubr.bf16.mxu0 %v386_v0 }
  0x65   :  { %1408 = vmatmul.mubr.bf16.vlgmr.msra.gmra.mrb[8].mxu1 %v387_v3  ;;  %2027 = vmatprep.subr.bf16.mxu0 %v2232_v4 }
  0x66   :  { %2048 = vmatpush3.bf16.msra.mxu1 %v2231_v2  ;;  %1487 = vmatprep.mubr.bf16.mxu1 %v390_v6 }
  0x67   :  { %2049 = vmatprep.subr.bf16.mxu1 %v2233_v5 }
  0x68   :  { %2028 = vmatpush3.bf16.msra.mxu0 %v2234_v7 }
  0x69   :  { %2029 = vmatprep.subr.bf16.mxu0 %v2236_v9 }
  0x6a   :  { %2050 = vmatpush3.bf16.msra.mxu1 %v2235_v8 }
  0x6b   :  { %2051 = vmatprep.subr.bf16.mxu1 %v2237_v10 }
  0x6c   :  { %2030 = vmatpush3.bf16.msra.mxu0 %v2238_v11 }
  0x6d   :  { %2031 = vmatprep.subr.bf16.mxu0 %v2240_v13 }
  0x6e   :  { %2052 = vmatpush3.bf16.msra.mxu1 %v2239_v12 }
  0x6f   :  { %2053 = vmatprep.subr.bf16.mxu1 %v2241_v14 }
  0x70   :  { %2032 = vmatpush3.bf16.msra.mxu0 %v2242_v15 }
  0x71   :  { %2033 = vmatprep.subr.bf16.mxu0 %v2244_v17 }
  0x72   :  { %2054 = vmatpush3.bf16.msra.mxu1 %v2243_v16 }
  0x73   :  { %2055 = vmatprep.subr.bf16.mxu1 %v2245_v18 }
  0x74   :  { %2034 = vmatpush3.bf16.msra.mxu0 %v2246_v19 }
  0x75   :  { %2035 = vmatprep.subr.bf16.mxu0 %v2248_v21 }
  0x76   :  { %2056 = vmatpush3.bf16.msra.mxu1 %v2247_v20 }
  0x77   :  { %2057 = vmatprep.subr.bf16.mxu1 %v2249_v22 }
  0x78   :  { %2036 = vmatpush3.bf16.msra.mxu0 %v2250_v23 }
  0x79   :  { %2037 = vmatprep.subr.bf16.mxu0 %v2252_v25 }
  0x7a   :  { %2058 = vmatpush3.bf16.msra.mxu1 %v2251_v24 }
  0x7b   :  { %2059 = vmatprep.subr.bf16.mxu1 %v2253_v26 }
  0x7c   :  { %2038 = vmatpush3.bf16.msra.mxu0 %v2254_v27 }
  0x7d   :  { %2039 = vmatprep.subr.bf16.mxu0 %v2256_v28 }
  0x7e   :  { %2060 = vmatpush3.bf16.msra.mxu1 %v2255_v29 }
  0x7f   :  { %2061 = vmatprep.subr.bf16.mxu1 %v2257_v30 }
  0x80   :  { %2040 = vmatpush3.bf16.msra.mxu0 %v2258_v31 }
  0x81   :  { %14 = vsyncpa [#allocation4], 0  ;;  %v388_v34 = vcombine.high %v372_v33, %v372_v33  ;;  %v2261_v35 = vld [vmem:[%s2858_s4] sm:$0xff]   ;;  %v2302_v36 = vmov 0.0   ;;  %v2262_v41 = vld [vmem:[%s2858_s4 + $0x8] sm:$0xff]   ;;  %vm2303_vm0 = vmmov 0   ;;  %v1495_v31 = vstv %s2855_s1 }
  0x82   :  { %2062 = vmatpush3.bf16.msra.mxu1 %v2259_v32  ;;  %2087 = vmatprep.subr.bf16.mxu0 %v2302_v36  ;;  %v2263_v37 = vld [vmem:[%s2858_s4 + $0x10] sm:$0xff]   ;;  %v2264_v38 = vld [vmem:[%s2858_s4 + $0x18] sm:$0xff]   ;;  %v2265_v39 = vld [vmem:[%s2858_s4 + $0x20] sm:$0xff]   ;;  %s2304_s9 = smov [#allocation3]  }
  0x83   :  { %1448 = vmatmul.mubr.bf16.vlgmr.msra.gmra.mrb[12].mxu0 %v372_v33  ;;  %2107 = vmatprep.subr.bf16.mxu1 %v2302_v36  ;;  %v2266_v40 = vld [vmem:[%s2858_s4 + $0x28] sm:$0xff]   ;;  %v2267_v42 = vld [vmem:[%s2858_s4 + $0x30] sm:$0xff]   ;;  %v2268_v43 = vld [vmem:[%s2858_s4 + $0x38] sm:$0xff]   ;;  %s1738_s10 = sshll.u32 %s2304_s9, 4  ;;  %s1739_s10 = int_to_ptr.vmem [resolvable:$true] %s1738_s10 }
  0x84   :  { %2088 = vmatpush3.bf16.msra.mxu0 %v2261_v35  ;;  %2103 = vmatprep.mubr.msk.bf16.mxu0 %vm2303_vm0, %v2302_v36  ;;  %v2269_v44 = vld [vmem:[%s2860_s6] sm:$0xff]   ;;  %v2270_v45 = vld [vmem:[%s2860_s6 + $0x8] sm:$0xff]   ;;  %v2271_v46 = vld [vmem:[%s2860_s6 + $0x10] sm:$0xff]   ;;  %p2282_p1 = scmp.lt.s32.totalorder %s1739_s10, %s1739_s10 }
  0x85   :  { %1488 = vmatmul.mubr.bf16.vlgmr.msra.gmra.mrb[12].mxu1 %v388_v34  ;;  %2089 = vmatprep.subr.bf16.mxu0 %v2302_v36  ;;  %v2272_v47 = vld [vmem:[%s2860_s6 + $0x18] sm:$0xff]   ;;  %v2273_v48 = vld [vmem:[%s2860_s6 + $0x20] sm:$0xff]   ;;  %v2274_v54 = vld [vmem:[%s2860_s6 + $0x28] sm:$0xff]  }
  0x86   :  { %2123 = vmatprep.mubr.msk.bf16.mxu1 %vm2303_vm0, %v2302_v36  ;;  %2108 = vmatpush3.bf16.msra.mxu1 %v2269_v44  ;;  %v1874_v34 = vld [vmem:[%s2857_s3] ss:$0 sm:$0xff] }
  0x87   :  { %2109 = vmatprep.subr.bf16.mxu1 %v2302_v36 }
  0x88   :  { %2090 = vmatpush3.bf16.msra.mxu0 %v2262_v41 }
  0x89   :  { %2091 = vmatprep.subr.bf16.mxu0 %v2302_v36 }
  0x8a   :  { %2110 = vmatpush3.bf16.msra.mxu1 %v2270_v45 }
  0x8b   :  { %2111 = vmatprep.subr.bf16.mxu1 %v2302_v36 }
  0x8c   :  { %2092 = vmatpush3.bf16.msra.mxu0 %v2263_v37 }
  0x8d   :  { %2093 = vmatprep.subr.bf16.mxu0 %v2302_v36 }
  0x8e   :  { %2112 = vmatpush3.bf16.msra.mxu1 %v2271_v46 }
  0x8f   :  { %2113 = vmatprep.subr.bf16.mxu1 %v2302_v36 }
  0x90   :  { %2094 = vmatpush3.bf16.msra.mxu0 %v2264_v38 }
  0x91   :  { %2095 = vmatprep.subr.bf16.mxu0 %v2302_v36 }
  0x92   :  { %2114 = vmatpush3.bf16.msra.mxu1 %v2272_v47 }
  0x93   :  { %2115 = vmatprep.subr.bf16.mxu1 %v2302_v36 }
  0x94   :  { %2096 = vmatpush3.bf16.msra.mxu0 %v2265_v39  ;;  %v2275_v39 = vld [vmem:[%s2860_s6 + $0x30] sm:$0xff]  }
  0x95   :  { %2097 = vmatprep.subr.bf16.mxu0 %v2302_v36 }
  0x96   :  { %2116 = vmatpush3.bf16.msra.mxu1 %v2273_v48 }
  0x97   :  { %2117 = vmatprep.subr.bf16.mxu1 %v2302_v36 }
  0x98   :  { %2098 = vmatpush3.bf16.msra.mxu0 %v2266_v40  ;;  %v2276_v40 = vld [vmem:[%s2860_s6 + $0x38] sm:$0xff]  }
  0x99   :  { %2099 = vmatprep.subr.bf16.mxu0 %v2302_v36 }
  0x9a   :  { %2118 = vmatpush3.bf16.msra.mxu1 %v2274_v54 }
  0x9b   :  { %2119 = vmatprep.subr.bf16.mxu1 %v2302_v36 }
  0x9c   :  { %2100 = vmatpush3.bf16.msra.mxu0 %v2267_v42  ;;  %v1875_v42 = vld [vmem:[%s2859_s5] ss:$0 sm:$0xff]  ;;  %s2277_s5 = scalar_lea.vmem %s1739_s10, 32 }
  0x9d   :  { %2101 = vmatprep.subr.bf16.mxu0 %v2302_v36  ;;  %p2278_p0 = scmp.ne.s32.totalorder %s1739_s10, %s2277_s5  ;;  %p2283_p2 = scmp.lt.s32.totalorder %s2277_s5, %s2277_s5 }
  0x9e   :  { %2120 = vmatpush3.bf16.msra.mxu1 %v2275_v39 }
  0x9f   :  { %2121 = vmatprep.subr.bf16.mxu1 %v2302_v36  ;;  %v1884_v36 = vld [vmem:[%s2861_s7] ss:$0 sm:$0xff]  ;;  %p2284_p3 = por %p2283_p2, %p2282_p1 }
  0xa0   :  { %2102 = vmatpush3.bf16.msra.mxu0 %v2268_v43 }
  0xa1   :  { %p2285_p4 = pnand %p2284_p3, %p2278_p0 }
  0xa2   :  { %2122 = vmatpush3.bf16.msra.mxu1 %v2276_v40 }
  0xf6   :  { %v1909_v49 = vpop.f32.mrb[0].mxu0 }
  0xf7   :  { %v1910_v50 = vpop.f32.mrb[1].mxu0  ;;  %v1931_v51 = vpop.f32.mrb[0].mxu1 }
  0xf8   :  { %v1911_v52 = vadd.f32 %v1910_v50, %v1909_v49  ;;  %v1912_v53 = vpop.f32.mrb[2].mxu0  ;;  %v1932_v55 = vpop.f32.mrb[1].mxu1 }
  0xf9   :  { %v1913_v56 = vpop.f32.mrb[3].mxu0  ;;  %v1933_v57 = vadd.f32 %v1932_v55, %v1931_v51  ;;  %v1934_v58 = vpop.f32.mrb[2].mxu1 }
  0xfa   :  { %v1935_v59 = vpop.f32.mrb[3].mxu1 }
  0xfb   :  { %v1250_v60 = vadd.f32 %v1933_v57, %v1911_v52 }
 0x116   :  { %v1953_v61 = vpop.f32.mrb[4].mxu0 }
 0x117   :  { %v1954_v62 = vpop.f32.mrb[5].mxu0  ;;  %v1975_v63 = vpop.f32.mrb[4].mxu1 }
 0x118   :  { %v1955_v0 = vadd.f32 %v1954_v62, %v1953_v61  ;;  %v1956_v1 = vpop.f32.mrb[6].mxu0  ;;  %v1976_v2 = vpop.f32.mrb[5].mxu1 }
 0x119   :  { %v1957_v3 = vpop.f32.mrb[7].mxu0  ;;  %v1977_v5 = vadd.f32 %v1976_v2, %v1975_v63  ;;  %v1978_v6 = vpop.f32.mrb[6].mxu1 }
 0x11a   :  { %v1290_v4 = vadd.f32 %v1955_v0, %v1250_v60  ;;  %v1979_v7 = vpop.f32.mrb[7].mxu1 }
 0x11c   :  { %v1330_v8 = vadd.f32 %v1977_v5, %v1290_v4 }
 0x136   :  { %v1997_v9 = vpop.f32.mrb[8].mxu0 }
 0x137   :  { %v1998_v10 = vpop.f32.mrb[9].mxu0 }
 0x138   :  { %v2019_v11 = vpop.f32.mrb[8].mxu1  ;;  %v1999_v12 = vadd.f32 %v1998_v10, %v1997_v9  ;;  %v2000_v13 = vpop.f32.mrb[10].mxu0 }
 0x139   :  { %v2020_v14 = vpop.f32.mrb[9].mxu1  ;;  %v2001_v15 = vpop.f32.mrb[11].mxu0 }
 0x13a   :  { %v1370_v16 = vadd.f32 %v1999_v12, %v1330_v8  ;;  %v2021_v17 = vadd.f32 %v2020_v14, %v2019_v11  ;;  %v2022_v18 = vpop.f32.mrb[10].mxu1 }
 0x13b   :  { %v2023_v19 = vpop.f32.mrb[11].mxu1 }
 0x13c   :  { %v1410_v20 = vadd.f32 %v2021_v17, %v1370_v16 }
 0x156   :  { %v2041_v21 = vpop.f32.mrb[12].mxu0 }
 0x157   :  { %v2042_v22 = vpop.f32.mrb[13].mxu0 }
 0x158   :  { %v2063_v23 = vpop.f32.mrb[12].mxu1  ;;  %v2043_v24 = vadd.f32 %v2042_v22, %v2041_v21  ;;  %v2044_v25 = vpop.f32.mrb[14].mxu0 }
 0x159   :  { %v2064_v26 = vpop.f32.mrb[13].mxu1  ;;  %v2045_v27 = vpop.f32.mrb[15].mxu0 }
 0x15a   :  { %v1450_v28 = vadd.f32 %v2043_v24, %v1410_v20  ;;  %v2065_v29 = vadd.f32 %v2064_v26, %v2063_v23  ;;  %v2066_v30 = vpop.f32.mrb[14].mxu1 }
 0x15b   :  { %v2067_v32 = vpop.f32.mrb[15].mxu1 }
 0x15c   :  { %v1490_v33 = vadd.f32 %v2065_v29, %v1450_v28 }
 0x15e   :  { %v1496_v35 = vmul.f32 %v1495_v31, %v1490_v33 }
 0x160   :  { %v1504_v41 = vadd.f32 %v1874_v34, %v1496_v35 }
 0x162   :  { %v1505_v37 = vmax.f32 %v1504_v41, 0.0 }
 0x164   :  { %v1506_v38 = vpack.c.bf16 %v1505_v37, %v1505_v37 }
 0x166   :  { %2104 = vmatmul.mubr.bf16.vlgmr.msra.gmra.mrb[16].mxu0 %v1506_v38 }
 0x239   :  { %v1612_v43 = vpop.f32.mrb[16].mxu0 }
 0x23a   :  { %v1613_v44 = vadd.f32 %v1875_v42, %v1612_v43  ;;  %v2105_v45 = vpop.f32.mrb[17].mxu0 }
 0x23b   :  { %v1615_v46 = vpop.f32.mrb[18].mxu0 }
 0x23c   :  { %v1618_v47 = vmax.f32 %v1613_v44, 0.0  ;;  %v2106_v48 = vpop.f32.mrb[19].mxu0 }
 0x23e   :  { %v1619_v49 = vpack.c.bf16 %v1618_v47, %v1618_v47 }
 0x240   :  { %2124 = vmatmul.mubr.bf16.vlgmr.msra.gmra.mrb[16].mxu1 %v1619_v49 }
 0x313   :  { %v1725_v50 = vpop.f32.mrb[16].mxu1 }
 0x314   :  { %v1726_v51 = vadd.f32 %v1884_v36, %v1725_v50  ;;  %v2125_v52 = vpop.f32.mrb[17].mxu1 }
 0x315   :  { %v1728_v53 = vpop.f32.mrb[18].mxu1 }
 0x316   :  { %1731 = vst [vmem:[#allocation3] sm:$0x3] %v1726_v51  ;;  %v2126_v54 = vpop.f32.mrb[19].mxu1 }
 0x317   :  { %2288 = shalt.err (!%p2285_p4)
}
 0x318   :  { %s2289_s7 = scalar_lea.hbm %s2862_s8, 32 }
 0x319   :  { %p2290_p5 = scmp.ne.s32.totalorder %s2862_s8, %s2289_s7  ;;  %p2293_p6 = scmp.lt.u32.totalorder %s2289_s7, %s2862_s8 }
 0x31b   :  { %p2295_p7 = pnand %p2293_p6, %p2290_p5 }
 0x31d   :  { %2298 = shalt.err (!%p2295_p7)
}
 0x31e   :  { %1741 = dma.vmem_to_hbm [thread:$0]  %s1739_s10, 32, %s2862_s8, [#allocation4]  }
 0x31f   :  { %2299 = dma.done.wait [#allocation4], 32  }
 0x320   :  { %2300 = vsyncadd [#allocation4], 4294967264 }
 0x321   :  { %1745 = vsyncpa [#allocation4], 1 }

// kernel: lenet_forward.4
= control target key start
LH: loop header
LB: loop body
LE: loop exit
PB: predicated region body
PF: predicated region fallthrough
CT: control target
= control target key end

     0   :  { %s7393_s1 = inlined_call_operand.vmem [shape: bf16[3200,128], index: 1, kind: input, shape index: {}]   ;;  %s7394_s0 = inlined_call_operand.vmem [shape: bf16[4,32,3200], index: 0, kind: input, shape index: {}]   ;;  %s7395_s2 = inlined_call_operand.vmem [shape: f32[1,128], index: 2, kind: input, shape index: {}]   ;;  %s7396_s3 = inlined_call_operand.vmem [shape: bf16[32,128], index: 3, kind: output, shape index: {}]  }
   0x1   :  { %v5395_v0 = vld [vmem:[%s7393_s1 + $0x40] sm:$0xff]   ;;  %v5399_v4 = vld [vmem:[%s7393_s1 + $0x48] sm:$0xff]   ;;  %v5403_v8 = vld [vmem:[%s7393_s1 + $0x50] sm:$0xff]  }
   0x2   :  { %v5396_v1 = vld [vmem:[%s7393_s1 + $0xc0] sm:$0xff]   ;;  %4563 = vmatprep.subr.bf16.mxu0 %v5395_v0  ;;  %v5400_v5 = vld [vmem:[%s7393_s1 + $0xc8] sm:$0xff]   ;;  %v5404_v9 = vld [vmem:[%s7393_s1 + $0xd0] sm:$0xff]  }
   0x3   :  { %v5397_v2 = vld [vmem:[%s7393_s1] sm:$0xff]   ;;  %4627 = vmatprep.subr.bf16.mxu1 %v5396_v1  ;;  %v5401_v6 = vld [vmem:[%s7393_s1 + $0x8] sm:$0xff]   ;;  %v5405_v10 = vld [vmem:[%s7393_s1 + $0x10] sm:$0xff]  }
   0x4   :  { %v5398_v3 = vld [vmem:[%s7393_s1 + $0x80] sm:$0xff]   ;;  %4564 = vmatpush3.bf16.msra.mxu0 %v5397_v2  ;;  %v5402_v7 = vld [vmem:[%s7393_s1 + $0x88] sm:$0xff]   ;;  %v5406_v11 = vld [vmem:[%s7393_s1 + $0x90] sm:$0xff]  }
   0x5   :  { %4628 = vmatpush3.bf16.msra.mxu1 %v5398_v3  ;;  %4565 = vmatprep.subr.bf16.mxu0 %v5399_v4  ;;  %v5407_v12 = vld [vmem:[%s7393_s1 + $0x58] sm:$0xff]   ;;  %v5411_v16 = vld [vmem:[%s7393_s1 + $0x60] sm:$0xff]   ;;  %v5415_v20 = vld [vmem:[%s7393_s1 + $0x68] sm:$0xff]  }
   0x6   :  { %4629 = vmatprep.subr.bf16.mxu1 %v5400_v5  ;;  %v5408_v13 = vld [vmem:[%s7393_s1 + $0xd8] sm:$0xff]   ;;  %v5412_v17 = vld [vmem:[%s7393_s1 + $0xe0] sm:$0xff]   ;;  %v5416_v21 = vld [vmem:[%s7393_s1 + $0xe8] sm:$0xff]  }
   0x7   :  { %v5409_v14 = vld [vmem:[%s7393_s1 + $0x18] sm:$0xff]   ;;  %v5413_v18 = vld [vmem:[%s7393_s1 + $0x20] sm:$0xff]   ;;  %v5417_v22 = vld [vmem:[%s7393_s1 + $0x28] sm:$0xff]  }
   0x8   :  { %4566 = vmatpush3.bf16.msra.mxu0 %v5401_v6  ;;  %v5410_v15 = vld [vmem:[%s7393_s1 + $0x98] sm:$0xff]   ;;  %v5414_v19 = vld [vmem:[%s7393_s1 + $0xa0] sm:$0xff]   ;;  %v5418_v23 = vld [vmem:[%s7393_s1 + $0xa8] sm:$0xff]  }
   0x9   :  { %4630 = vmatpush3.bf16.msra.mxu1 %v5402_v7  ;;  %4567 = vmatprep.subr.bf16.mxu0 %v5403_v8  ;;  %v5419_v24 = vld [vmem:[%s7393_s1 + $0x70] sm:$0xff]   ;;  %v5423_v28 = vld [vmem:[%s7393_s1 + $0x78] sm:$0xff]   ;;  %v5427_v32 = vld [vmem:[%s7394_s0] ss:$100 sps:$4 sm:$0xff]  }
   0xa   :  { %4631 = vmatprep.subr.bf16.mxu1 %v5404_v9  ;;  %v5420_v25 = vld [vmem:[%s7393_s1 + $0xf0] sm:$0xff]   ;;  %v5424_v29 = vld [vmem:[%s7393_s1 + $0xf8] sm:$0xff]   ;;  %v5429_v33 = vld [vmem:[%s7394_s0 + $0x4] ss:$100 sps:$4 sm:$0xff]  }
   0xb   :  { %v5421_v26 = vld [vmem:[%s7393_s1 + $0x30] sm:$0xff]   ;;  %v5425_v30 = vld [vmem:[%s7393_s1 + $0x38] sm:$0xff]   ;;  %v5430_v34 = vld [vmem:[%s7394_s0 + $0x8] ss:$100 sps:$4 sm:$0xff]   ;;  %2863 = vmatprep.mubr.bf16.mxu0 %v5429_v33 }
   0xc   :  { %4568 = vmatpush3.bf16.msra.mxu0 %v5405_v10  ;;  %v5422_v27 = vld [vmem:[%s7393_s1 + $0xb0] sm:$0xff]   ;;  %v5426_v31 = vld [vmem:[%s7393_s1 + $0xb8] sm:$0xff]   ;;  %v5433_v36 = vld [vmem:[%s7393_s1 + $0x140] sm:$0xff]  }
   0xd   :  { %4632 = vmatpush3.bf16.msra.mxu1 %v5406_v11  ;;  %4569 = vmatprep.subr.bf16.mxu0 %v5407_v12  ;;  %v5432_v35 = vld [vmem:[%s7394_s0 + $0xc] ss:$100 sps:$4 sm:$0xff]   ;;  %v5434_v37 = vld [vmem:[%s7393_s1 + $0x1c0] sm:$0xff]   ;;  %v5439_v41 = vld [vmem:[%s7394_s0 + $0xd4] ss:$100 sps:$4 sm:$0xff]  }
   0xe   :  { %4633 = vmatprep.subr.bf16.mxu1 %v5408_v13  ;;  %2960 = vmatprep.mubr.bf16.mxu1 %v5432_v35  ;;  %v5435_v38 = vld [vmem:[%s7393_s1 + $0x100] sm:$0xff]   ;;  %v5437_v40 = vld [vmem:[%s7394_s0 + $0xcc] ss:$100 sps:$4 sm:$0xff]   ;;  %v5447_v48 = vld [vmem:[%s7394_s0 + $0x194] ss:$100 sps:$4 sm:$0xff]  }
   0xf   :  { %v5436_v39 = vld [vmem:[%s7393_s1 + $0x180] sm:$0xff]   ;;  %v5441_v42 = vld [vmem:[%s7394_s0 + $0xc8] ss:$100 sps:$4 sm:$0xff]   ;;  %v5442_v43 = vld [vmem:[%s7394_s0 + $0xd0] ss:$100 sps:$4 sm:$0xff]  }
  0x10   :  { %4570 = vmatpush3.bf16.msra.mxu0 %v5409_v14  ;;  %v5443_v44 = vld [vmem:[%s7393_s1 + $0x148] sm:$0xff]   ;;  %v5449_v49 = vld [vmem:[%s7394_s0 + $0x19c] ss:$100 sps:$4 sm:$0xff]   ;;  %v5451_v50 = vld [vmem:[%s7394_s0 + $0x190] ss:$100 sps:$4 sm:$0xff]  }
  0x11   :  { %4634 = vmatpush3.bf16.msra.mxu1 %v5410_v15  ;;  %4571 = vmatprep.subr.bf16.mxu0 %v5411_v16  ;;  %v5444_v45 = vld [vmem:[%s7393_s1 + $0x1c8] sm:$0xff]   ;;  %v5452_v51 = vld [vmem:[%s7394_s0 + $0x198] ss:$100 sps:$4 sm:$0xff]   ;;  %v5453_v52 = vld [vmem:[%s7393_s1 + $0x150] sm:$0xff]  }
  0x12   :  { %4635 = vmatprep.subr.bf16.mxu1 %v5412_v17  ;;  %v5445_v46 = vld [vmem:[%s7393_s1 + $0x108] sm:$0xff]   ;;  %v5454_v53 = vld [vmem:[%s7393_s1 + $0x1d0] sm:$0xff]   ;;  %v5457_v56 = vld [vmem:[%s7394_s0 + $0x25c] ss:$100 sps:$4 sm:$0xff]  }
  0x13   :  { %v5446_v47 = vld [vmem:[%s7393_s1 + $0x188] sm:$0xff]   ;;  %v5455_v54 = vld [vmem:[%s7393_s1 + $0x110] sm:$0xff]   ;;  %v5461_v58 = vld [vmem:[%s7394_s0 + $0x258] ss:$100 sps:$4 sm:$0xff]  }
  0x14   :  { %4572 = vmatpush3.bf16.msra.mxu0 %v5413_v18  ;;  %v5456_v55 = vld [vmem:[%s7393_s1 + $0x190] sm:$0xff]   ;;  %v5459_v57 = vld [vmem:[%s7394_s0 + $0x264] ss:$100 sps:$4 sm:$0xff]   ;;  %v5463_v60 = vld [vmem:[%s7393_s1 + $0x158] sm:$0xff]  }
  0x15   :  { %4636 = vmatpush3.bf16.msra.mxu1 %v5414_v19  ;;  %4573 = vmatprep.subr.bf16.mxu0 %v5415_v20  ;;  %v5462_v59 = vld [vmem:[%s7394_s0 + $0x260] ss:$100 sps:$4 sm:$0xff]   ;;  %v5464_v61 = vld [vmem:[%s7393_s1 + $0x1d8] sm:$0xff]   ;;  %v5469_v1 = vld [vmem:[%s7394_s0 + $0x32c] ss:$100 sps:$4 sm:$0xff]  }
  0x16   :  { %4637 = vmatprep.subr.bf16.mxu1 %v5416_v21  ;;  %v5465_v62 = vld [vmem:[%s7393_s1 + $0x118] sm:$0xff]   ;;  %v5467_v0 = vld [vmem:[%s7394_s0 + $0x324] ss:$100 sps:$4 sm:$0xff]   ;;  %v5477_v8 = vld [vmem:[%s7394_s0 + $0x3ec] ss:$100 sps:$4 sm:$0xff]  }
  0x17   :  { %v5466_v63 = vld [vmem:[%s7393_s1 + $0x198] sm:$0xff]   ;;  %v5471_v2 = vld [vmem:[%s7394_s0 + $0x320] ss:$100 sps:$4 sm:$0xff]   ;;  %v5472_v4 = vld [vmem:[%s7394_s0 + $0x328] ss:$100 sps:$4 sm:$0xff]  }
  0x18   :  { %4574 = vmatpush3.bf16.msra.mxu0 %v5417_v22  ;;  %v5473_v3 = vld [vmem:[%s7393_s1 + $0x160] sm:$0xff]   ;;  %v5479_v9 = vld [vmem:[%s7394_s0 + $0x3f4] ss:$100 sps:$4 sm:$0xff]   ;;  %v5483_v10 = vld [vmem:[%s7393_s1 + $0x168] sm:$0xff]  }
  0x19   :  { %4638 = vmatpush3.bf16.msra.mxu1 %v5418_v23  ;;  %4575 = vmatprep.subr.bf16.mxu0 %v5419_v24  ;;  %v5474_v5 = vld [vmem:[%s7393_s1 + $0x1e0] sm:$0xff]   ;;  %v5484_v11 = vld [vmem:[%s7393_s1 + $0x1e8] sm:$0xff]   ;;  %v5482_v15 = vld [vmem:[%s7394_s0 + $0x3f0] ss:$100 sps:$4 sm:$0xff]  }
  0x1a   :  { %4639 = vmatprep.subr.bf16.mxu1 %v5420_v25  ;;  %v5475_v6 = vld [vmem:[%s7393_s1 + $0x120] sm:$0xff]   ;;  %v5481_v12 = vld [vmem:[%s7394_s0 + $0x3e8] ss:$100 sps:$4 sm:$0xff]   ;;  %v5487_v16 = vld [vmem:[%s7394_s0 + $0x4b4] ss:$100 sps:$4 sm:$0xff]  }
  0x1b   :  { %v5476_v7 = vld [vmem:[%s7393_s1 + $0x1a0] sm:$0xff]   ;;  %v5485_v13 = vld [vmem:[%s7393_s1 + $0x128] sm:$0xff]   ;;  %v5493_v18 = vld [vmem:[%s7393_s1 + $0x170] sm:$0xff]  }
  0x1c   :  { %4576 = vmatpush3.bf16.msra.mxu0 %v5421_v26  ;;  %v5486_v14 = vld [vmem:[%s7393_s1 + $0x1a8] sm:$0xff]   ;;  %v5489_v17 = vld [vmem:[%s7394_s0 + $0x4bc] ss:$100 sps:$4 sm:$0xff]   ;;  %v5494_v19 = vld [vmem:[%s7393_s1 + $0x1f0] sm:$0xff]  }
  0x1d   :  { %4640 = vmatpush3.bf16.msra.mxu1 %v5422_v27  ;;  %4577 = vmatprep.subr.bf16.mxu0 %v5423_v28  ;;  %v5495_v20 = vld [vmem:[%s7393_s1 + $0x130] sm:$0xff]   ;;  %v5492_v23 = vld [vmem:[%s7394_s0 + $0x4b8] ss:$100 sps:$4 sm:$0xff]   ;;  %v5499_v25 = vld [vmem:[%s7394_s0 + $0x584] ss:$100 sps:$4 sm:$0xff]  }
  0x1e   :  { %4641 = vmatprep.subr.bf16.mxu1 %v5424_v29  ;;  %v5496_v21 = vld [vmem:[%s7393_s1 + $0x1b0] sm:$0xff]   ;;  %v5497_v24 = vld [vmem:[%s7394_s0 + $0x57c] ss:$100 sps:$4 sm:$0xff]  }
  0x1f   :  { %v5491_v22 = vld [vmem:[%s7394_s0 + $0x4b0] ss:$100 sps:$4 sm:$0xff]   ;;  %v5503_v26 = vld [vmem:[%s7393_s1 + $0x178] sm:$0xff]   ;;  %v5513_v33 = vld [vmem:[%s7393_s1 + $0x240] sm:$0xff]  }
  0x20   :  { %4578 = vmatpush3.bf16.msra.mxu0 %v5425_v30  ;;  %v5504_v27 = vld [vmem:[%s7393_s1 + $0x1f8] sm:$0xff]  }
  0x21   :  { %4642 = vmatpush3.bf16.msra.mxu1 %v5426_v31  ;;  %4691 = vmatprep.subr.bf16.mxu0 %v5433_v36  ;;  %v5505_v28 = vld [vmem:[%s7393_s1 + $0x138] sm:$0xff]   ;;  %v5502_v31 = vld [vmem:[%s7394_s0 + $0x580] ss:$100 sps:$4 sm:$0xff]   ;;  %v5507_v36 = vld [vmem:[%s7394_s0 + $0x10] ss:$100 sps:$4 sm:$0xff]  }
  0x22   :  { %4755 = vmatprep.subr.bf16.mxu1 %v5434_v37  ;;  %v5506_v29 = vld [vmem:[%s7393_s1 + $0x1b8] sm:$0xff]  }
  0x23   :  { %2864 = vmatmul.mubr.bf16.vlgmr.msra.gmra.mrb[0].mxu0 %v5427_v32  ;;  %v5501_v30 = vld [vmem:[%s7394_s0 + $0x578] ss:$100 sps:$4 sm:$0xff]  }
  0x24   :  { %2961 = vmatmul.mubr.bf16.vlgmr.msra.gmra.mrb[0].mxu1 %v5430_v34  ;;  %4692 = vmatpush3.bf16.msra.mxu0 %v5435_v38  ;;  %v5509_v32 = vld [vmem:[%s7394_s0 + $0x14] ss:$100 sps:$4 sm:$0xff]   ;;  %v5514_v34 = vld [vmem:[%s7393_s1 + $0x2c0] sm:$0xff]  }
  0x25   :  { %4756 = vmatpush3.bf16.msra.mxu1 %v5436_v39  ;;  %2871 = vmatprep.mubr.bf16.mxu0 %v5437_v40  ;;  %v5512_v35 = vld [vmem:[%s7394_s0 + $0x1c] ss:$100 sps:$4 sm:$0xff]  }
  0x26   :  { %2968 = vmatprep.mubr.bf16.mxu1 %v5439_v41  ;;  %4693 = vmatprep.subr.bf16.mxu0 %v5443_v44  ;;  %v5510_v37 = vld [vmem:[%s7394_s0 + $0x18] ss:$100 sps:$4 sm:$0xff]   ;;  %v5515_v38 = vld [vmem:[%s7393_s1 + $0x200] sm:$0xff]   ;;  %v5525_v44 = vld [vmem:[%s7393_s1 + $0x208] sm:$0xff]  }
  0x27   :  { %4757 = vmatprep.subr.bf16.mxu1 %v5444_v45  ;;  %v5516_v39 = vld [vmem:[%s7393_s1 + $0x280] sm:$0xff]   ;;  %v5526_v45 = vld [vmem:[%s7393_s1 + $0x288] sm:$0xff]  }
  0x28   :  { %4694 = vmatpush3.bf16.msra.mxu0 %v5445_v46  ;;  %v5517_v40 = vld [vmem:[%s7394_s0 + $0xdc] ss:$100 sps:$4 sm:$0xff]   ;;  %v5519_v41 = vld [vmem:[%s7394_s0 + $0xe4] ss:$100 sps:$4 sm:$0xff]  }
  0x29   :  { %4758 = vmatpush3.bf16.msra.mxu1 %v5446_v47  ;;  %4695 = vmatprep.subr.bf16.mxu0 %v5453_v52  ;;  %v5521_v46 = vld [vmem:[%s7394_s0 + $0xd8] ss:$100 sps:$4 sm:$0xff]   ;;  %v5533_v47 = vld [vmem:[%s7393_s1 + $0x250] sm:$0xff]  }
  0x2a   :  { %4759 = vmatprep.subr.bf16.mxu1 %v5454_v53  ;;  %v5535_v52 = vld [vmem:[%s7393_s1 + $0x210] sm:$0xff]  }
  0x2b   :  { %2872 = vmatmul.mubr.bf16.gmra.mrb[4].mxu0 %v5441_v42  ;;  %v5523_v42 = vld [vmem:[%s7393_s1 + $0x248] sm:$0xff]   ;;  %v5536_v53 = vld [vmem:[%s7393_s1 + $0x290] sm:$0xff]  }
  0x2c   :  { %2969 = vmatmul.mubr.bf16.gmra.mrb[4].mxu1 %v5442_v43  ;;  %2879 = vmatprep.mubr.bf16.mxu0 %v5447_v48  ;;  %v5524_v43 = vld [vmem:[%s7393_s1 + $0x2c8] sm:$0xff]   ;;  %v5522_v48 = vld [vmem:[%s7394_s0 + $0xe0] ss:$100 sps:$4 sm:$0xff]  }
  0x2d   :  { %2976 = vmatprep.mubr.bf16.mxu1 %v5449_v49  ;;  %4696 = vmatpush3.bf16.msra.mxu0 %v5455_v54  ;;  %v5534_v49 = vld [vmem:[%s7393_s1 + $0x2d0] sm:$0xff]   ;;  %v5543_v54 = vld [vmem:[%s7393_s1 + $0x258] sm:$0xff]  }
  0x2e   :  { %4760 = vmatpush3.bf16.msra.mxu1 %v5456_v55  ;;  %4697 = vmatprep.subr.bf16.mxu0 %v5463_v60  ;;  %v5544_v55 = vld [vmem:[%s7393_s1 + $0x2d8] sm:$0xff]   ;;  %v5537_v60 = vld [vmem:[%s7394_s0 + $0x26c] ss:$100 sps:$4 sm:$0xff]  }
  0x2f   :  { %4761 = vmatprep.subr.bf16.mxu1 %v5464_v61  ;;  %v5539_v61 = vld [vmem:[%s7394_s0 + $0x274] ss:$100 sps:$4 sm:$0xff]  }
  0x31   :  { %4698 = vmatpush3.bf16.msra.mxu0 %v5465_v62  ;;  %v5553_v62 = vld [vmem:[%s7393_s1 + $0x260] sm:$0xff]  }
  0x32   :  { %4762 = vmatpush3.bf16.msra.mxu1 %v5466_v63  ;;  %4699 = vmatprep.subr.bf16.mxu0 %v5473_v3  ;;  %v5554_v63 = vld [vmem:[%s7393_s1 + $0x2e0] sm:$0xff]   ;;  %v5542_v3 = vld [vmem:[%s7394_s0 + $0x270] ss:$100 sps:$4 sm:$0xff]  }
  0x33   :  { %2880 = vmatmul.mubr.bf16.gmra.mrb[8].mxu0 %v5451_v50  ;;  %4763 = vmatprep.subr.bf16.mxu1 %v5474_v5  ;;  %v5527_v50 = vld [vmem:[%s7394_s0 + $0x1a4] ss:$100 sps:$4 sm:$0xff]   ;;  %v5549_v5 = vld [vmem:[%s7394_s0 + $0x33c] ss:$100 sps:$4 sm:$0xff]  }
  0x34   :  { %2977 = vmatmul.mubr.bf16.gmra.mrb[8].mxu1 %v5452_v51  ;;  %2887 = vmatprep.mubr.bf16.mxu0 %v5457_v56  ;;  %v5529_v51 = vld [vmem:[%s7394_s0 + $0x1ac] ss:$100 sps:$4 sm:$0xff]   ;;  %v5531_v56 = vld [vmem:[%s7394_s0 + $0x1a0] ss:$100 sps:$4 sm:$0xff]  }
  0x35   :  { %2984 = vmatprep.mubr.bf16.mxu1 %v5459_v57  ;;  %4700 = vmatpush3.bf16.msra.mxu0 %v5475_v6  ;;  %v5545_v57 = vld [vmem:[%s7393_s1 + $0x218] sm:$0xff]   ;;  %v5563_v6 = vld [vmem:[%s7393_s1 + $0x268] sm:$0xff]  }
  0x36   :  { %4764 = vmatpush3.bf16.msra.mxu1 %v5476_v7  ;;  %4701 = vmatprep.subr.bf16.mxu0 %v5483_v10  ;;  %v5564_v7 = vld [vmem:[%s7393_s1 + $0x2e8] sm:$0xff]   ;;  %v5551_v10 = vld [vmem:[%s7394_s0 + $0x330] ss:$100 sps:$4 sm:$0xff]  }
  0x37   :  { %4765 = vmatprep.subr.bf16.mxu1 %v5484_v11  ;;  %v5552_v11 = vld [vmem:[%s7394_s0 + $0x338] ss:$100 sps:$4 sm:$0xff]  }
  0x39   :  { %4702 = vmatpush3.bf16.msra.mxu0 %v5485_v13  ;;  %v5559_v13 = vld [vmem:[%s7394_s0 + $0x404] ss:$100 sps:$4 sm:$0xff]  }
  0x3a   :  { %4766 = vmatpush3.bf16.msra.mxu1 %v5486_v14  ;;  %4703 = vmatprep.subr.bf16.mxu0 %v5493_v18  ;;  %v5573_v14 = vld [vmem:[%s7393_s1 + $0x270] sm:$0xff]   ;;  %v5561_v18 = vld [vmem:[%s7394_s0 + $0x3f8] ss:$100 sps:$4 sm:$0xff]  }
  0x3b   :  { %2888 = vmatmul.mubr.bf16.gmra.mrb[12].mxu0 %v5461_v58  ;;  %4767 = vmatprep.subr.bf16.mxu1 %v5494_v19  ;;  %v5546_v58 = vld [vmem:[%s7393_s1 + $0x298] sm:$0xff]   ;;  %v5562_v19 = vld [vmem:[%s7394_s0 + $0x400] ss:$100 sps:$4 sm:$0xff]  }
  0x3c   :  { %2985 = vmatmul.mubr.bf16.gmra.mrb[12].mxu1 %v5462_v59  ;;  %2895 = vmatprep.mubr.bf16.mxu0 %v5467_v0  ;;  %v5532_v59 = vld [vmem:[%s7394_s0 + $0x1a8] ss:$100 sps:$4 sm:$0xff]   ;;  %v5555_v0 = vld [vmem:[%s7393_s1 + $0x220] sm:$0xff]  }
  0x3d   :  { %2992 = vmatprep.mubr.bf16.mxu1 %v5469_v1  ;;  %4704 = vmatpush3.bf16.msra.mxu0 %v5495_v20  ;;  %v5556_v1 = vld [vmem:[%s7393_s1 + $0x2a0] sm:$0xff]  }
  0x3e   :  { %4768 = vmatpush3.bf16.msra.mxu1 %v5496_v21  ;;  %4705 = vmatprep.subr.bf16.mxu0 %v5503_v26  ;;  %v5567_v20 = vld [vmem:[%s7394_s0 + $0x4c4] ss:$100 sps:$4 sm:$0xff]   ;;  %v5583_v21 = vld [vmem:[%s7393_s1 + $0x278] sm:$0xff]  }
  0x3f   :  { %4769 = vmatprep.subr.bf16.mxu1 %v5504_v27  ;;  %v5571_v26 = vld [vmem:[%s7394_s0 + $0x4c0] ss:$100 sps:$4 sm:$0xff]  }
  0x40   :  { %v5593_v27 = vld [vmem:[%s7393_s1 + $0x340] sm:$0xff]  }
  0x41   :  { %4706 = vmatpush3.bf16.msra.mxu0 %v5505_v28  ;;  %v5594_v28 = vld [vmem:[%s7393_s1 + $0x3c0] sm:$0xff]  }
  0x42   :  { %4770 = vmatpush3.bf16.msra.mxu1 %v5506_v29  ;;  %4819 = vmatprep.subr.bf16.mxu0 %v5513_v33  ;;  %v5572_v29 = vld [vmem:[%s7394_s0 + $0x4c8] ss:$100 sps:$4 sm:$0xff]   ;;  %v5582_v33 = vld [vmem:[%s7394_s0 + $0x590] ss:$100 sps:$4 sm:$0xff]  }
  0x43   :  { %2896 = vmatmul.mubr.bf16.gmra.mrb[16].mxu0 %v5471_v2  ;;  %4883 = vmatprep.subr.bf16.mxu1 %v5514_v34  ;;  %v5541_v2 = vld [vmem:[%s7394_s0 + $0x268] ss:$100 sps:$4 sm:$0xff]  }
  0x44   :  { %2993 = vmatmul.mubr.bf16.gmra.mrb[16].mxu1 %v5472_v4  ;;  %2903 = vmatprep.mubr.bf16.mxu0 %v5477_v8  ;;  %v5547_v4 = vld [vmem:[%s7394_s0 + $0x334] ss:$100 sps:$4 sm:$0xff]   ;;  %v5565_v8 = vld [vmem:[%s7393_s1 + $0x228] sm:$0xff]  }
  0x45   :  { %3000 = vmatprep.mubr.bf16.mxu1 %v5479_v9  ;;  %v5566_v9 = vld [vmem:[%s7393_s1 + $0x2a8] sm:$0xff]  }
  0x46   :  { %v5589_v34 = vld [vmem:[%s7394_s0 + $0x24] ss:$100 sps:$4 sm:$0xff]  }
  0x4b   :  { %2904 = vmatmul.mubr.bf16.gmra.mrb[20].mxu0 %v5481_v12  ;;  %v5557_v12 = vld [vmem:[%s7394_s0 + $0x3fc] ss:$100 sps:$4 sm:$0xff]  }
  0x4c   :  { %3001 = vmatmul.mubr.bf16.gmra.mrb[20].mxu1 %v5482_v15  ;;  %2911 = vmatprep.mubr.bf16.mxu0 %v5487_v16  ;;  %v5574_v15 = vld [vmem:[%s7393_s1 + $0x2f0] sm:$0xff]  }
  0x4d   :  { %3008 = vmatprep.mubr.bf16.mxu1 %v5489_v17  ;;  %v5575_v16 = vld [vmem:[%s7393_s1 + $0x230] sm:$0xff]  }
  0x4e   :  { %v5576_v17 = vld [vmem:[%s7393_s1 + $0x2b0] sm:$0xff]  }
  0x53   :  { %2912 = vmatmul.mubr.bf16.gmra.mrb[24].mxu0 %v5491_v22  ;;  %v5569_v22 = vld [vmem:[%s7394_s0 + $0x4cc] ss:$100 sps:$4 sm:$0xff]  }
  0x54   :  { %3009 = vmatmul.mubr.bf16.gmra.mrb[24].mxu1 %v5492_v23  ;;  %2919 = vmatprep.mubr.bf16.mxu0 %v5497_v24  ;;  %v5584_v23 = vld [vmem:[%s7393_s1 + $0x2f8] sm:$0xff]  }
  0x55   :  { %3016 = vmatprep.mubr.bf16.mxu1 %v5499_v25  ;;  %v5585_v24 = vld [vmem:[%s7393_s1 + $0x238] sm:$0xff]  }
  0x56   :  { %v5586_v25 = vld [vmem:[%s7393_s1 + $0x2b8] sm:$0xff]  }
  0x5b   :  { %2920 = vmatmul.mubr.bf16.gmra.mrb[28].mxu0 %v5501_v30  ;;  %v5577_v30 = vld [vmem:[%s7394_s0 + $0x58c] ss:$100 sps:$4 sm:$0xff]  }
  0x5c   :  { %3017 = vmatmul.mubr.bf16.gmra.mrb[28].mxu1 %v5502_v31  ;;  %3057 = vmatprep.mubr.bf16.mxu0 %v5509_v32  ;;  %v5579_v31 = vld [vmem:[%s7394_s0 + $0x594] ss:$100 sps:$4 sm:$0xff]   ;;  %v5581_v32 = vld [vmem:[%s7394_s0 + $0x588] ss:$100 sps:$4 sm:$0xff]  }
  0x5d   :  { %3154 = vmatprep.mubr.bf16.mxu1 %v5512_v35  ;;  %v5592_v35 = vld [vmem:[%s7394_s0 + $0x2c] ss:$100 sps:$4 sm:$0xff]  }
  0x63   :  { %3058 = vmatmul.mubr.bf16.vlgmr.msra.gmra.mrb[32].mxu0 %v5507_v36  ;;  %v5587_v36 = vld [vmem:[%s7394_s0 + $0x20] ss:$100 sps:$4 sm:$0xff]  }
  0x64   :  { %3155 = vmatmul.mubr.bf16.vlgmr.msra.gmra.mrb[32].mxu1 %v5510_v37  ;;  %4820 = vmatpush3.bf16.msra.mxu0 %v5515_v38  ;;  %v5590_v37 = vld [vmem:[%s7394_s0 + $0x28] ss:$100 sps:$4 sm:$0xff]   ;;  %v5595_v38 = vld [vmem:[%s7393_s1 + $0x300] sm:$0xff]  }
  0x65   :  { %4884 = vmatpush3.bf16.msra.mxu1 %v5516_v39  ;;  %3065 = vmatprep.mubr.bf16.mxu0 %v5517_v40  ;;  %v5596_v39 = vld [vmem:[%s7393_s1 + $0x380] sm:$0xff]   ;;  %v5597_v40 = vld [vmem:[%s7394_s0 + $0xec] ss:$100 sps:$4 sm:$0xff]  }
  0x66   :  { %3162 = vmatprep.mubr.bf16.mxu1 %v5519_v41  ;;  %4821 = vmatprep.subr.bf16.mxu0 %v5523_v42  ;;  %v5599_v41 = vld [vmem:[%s7394_s0 + $0xf4] ss:$100 sps:$4 sm:$0xff]   ;;  %v5603_v42 = vld [vmem:[%s7393_s1 + $0x348] sm:$0xff]  }
  0x67   :  { %4885 = vmatprep.subr.bf16.mxu1 %v5524_v43  ;;  %v5604_v43 = vld [vmem:[%s7393_s1 + $0x3c8] sm:$0xff]  }
  0x68   :  { %4822 = vmatpush3.bf16.msra.mxu0 %v5525_v44  ;;  %v5605_v44 = vld [vmem:[%s7393_s1 + $0x308] sm:$0xff]  }
  0x69   :  { %4886 = vmatpush3.bf16.msra.mxu1 %v5526_v45  ;;  %4823 = vmatprep.subr.bf16.mxu0 %v5533_v47  ;;  %v5606_v45 = vld [vmem:[%s7393_s1 + $0x388] sm:$0xff]   ;;  %v5613_v47 = vld [vmem:[%s7393_s1 + $0x350] sm:$0xff]  }
  0x6a   :  { %4887 = vmatprep.subr.bf16.mxu1 %v5534_v49  ;;  %v5607_v49 = vld [vmem:[%s7394_s0 + $0x1b4] ss:$100 sps:$4 sm:$0xff]  }
  0x6b   :  { %3066 = vmatmul.mubr.bf16.gmra.mrb[36].mxu0 %v5521_v46  ;;  %v5601_v46 = vld [vmem:[%s7394_s0 + $0xe8] ss:$100 sps:$4 sm:$0xff]  }
  0x6c   :  { %3163 = vmatmul.mubr.bf16.gmra.mrb[36].mxu1 %v5522_v48  ;;  %3073 = vmatprep.mubr.bf16.mxu0 %v5527_v50  ;;  %v5602_v48 = vld [vmem:[%s7394_s0 + $0xf0] ss:$100 sps:$4 sm:$0xff]  }
  0x6d   :  { %3170 = vmatprep.mubr.bf16.mxu1 %v5529_v51  ;;  %4824 = vmatpush3.bf16.msra.mxu0 %v5535_v52  ;;  %v5614_v50 = vld [vmem:[%s7393_s1 + $0x3d0] sm:$0xff]   ;;  %v5609_v51 = vld [vmem:[%s7394_s0 + $0x1bc] ss:$100 sps:$4 sm:$0xff]  }
  0x6e   :  { %4888 = vmatpush3.bf16.msra.mxu1 %v5536_v53  ;;  %4825 = vmatprep.subr.bf16.mxu0 %v5543_v54  ;;  %v5615_v52 = vld [vmem:[%s7393_s1 + $0x310] sm:$0xff]   ;;  %v5623_v54 = vld [vmem:[%s7393_s1 + $0x358] sm:$0xff]  }
  0x6f   :  { %4889 = vmatprep.subr.bf16.mxu1 %v5544_v55  ;;  %v5616_v53 = vld [vmem:[%s7393_s1 + $0x390] sm:$0xff]   ;;  %v5624_v55 = vld [vmem:[%s7393_s1 + $0x3d8] sm:$0xff]  }
  0x71   :  { %4826 = vmatpush3.bf16.msra.mxu0 %v5545_v57  ;;  %v5625_v57 = vld [vmem:[%s7393_s1 + $0x318] sm:$0xff]  }
  0x72   :  { %4890 = vmatpush3.bf16.msra.mxu1 %v5546_v58  ;;  %4827 = vmatprep.subr.bf16.mxu0 %v5553_v62  ;;  %v5626_v58 = vld [vmem:[%s7393_s1 + $0x398] sm:$0xff]   ;;  %v5619_v62 = vld [vmem:[%s7394_s0 + $0x284] ss:$100 sps:$4 sm:$0xff]  }
  0x73   :  { %3074 = vmatmul.mubr.bf16.gmra.mrb[40].mxu0 %v5531_v56  ;;  %4891 = vmatprep.subr.bf16.mxu1 %v5554_v63  ;;  %v5611_v56 = vld [vmem:[%s7394_s0 + $0x1b0] ss:$100 sps:$4 sm:$0xff]   ;;  %v5634_v63 = vld [vmem:[%s7393_s1 + $0x3e0] sm:$0xff]  }
  0x74   :  { %3171 = vmatmul.mubr.bf16.gmra.mrb[40].mxu1 %v5532_v59  ;;  %3081 = vmatprep.mubr.bf16.mxu0 %v5537_v60  ;;  %v5612_v59 = vld [vmem:[%s7394_s0 + $0x1b8] ss:$100 sps:$4 sm:$0xff]  }
  0x75   :  { %3178 = vmatprep.mubr.bf16.mxu1 %v5539_v61  ;;  %4828 = vmatpush3.bf16.msra.mxu0 %v5555_v0  ;;  %v5617_v60 = vld [vmem:[%s7394_s0 + $0x27c] ss:$100 sps:$4 sm:$0xff]  }
  0x76   :  { %4892 = vmatpush3.bf16.msra.mxu1 %v5556_v1  ;;  %4829 = vmatprep.subr.bf16.mxu0 %v5563_v6  ;;  %v5633_v61 = vld [vmem:[%s7393_s1 + $0x360] sm:$0xff]   ;;  %v5646_v6 = vld [vmem:[%s7393_s1 + $0x3a8] sm:$0xff]  }
  0x77   :  { %4893 = vmatprep.subr.bf16.mxu1 %v5564_v7  ;;  %v5635_v0 = vld [vmem:[%s7393_s1 + $0x320] sm:$0xff]  }
  0x78   :  { %v5636_v1 = vld [vmem:[%s7393_s1 + $0x3a0] sm:$0xff]  }
  0x79   :  { %4830 = vmatpush3.bf16.msra.mxu0 %v5565_v8  ;;  %v5622_v7 = vld [vmem:[%s7394_s0 + $0x280] ss:$100 sps:$4 sm:$0xff]  }
  0x7a   :  { %4894 = vmatpush3.bf16.msra.mxu1 %v5566_v9  ;;  %4831 = vmatprep.subr.bf16.mxu0 %v5573_v14  ;;  %v5627_v8 = vld [vmem:[%s7394_s0 + $0x344] ss:$100 sps:$4 sm:$0xff]   ;;  %v5653_v9 = vld [vmem:[%s7393_s1 + $0x370] sm:$0xff]   ;;  %v5663_v14 = vld [vmem:[%s7393_s1 + $0x378] sm:$0xff]  }
  0x7b   :  { %3082 = vmatmul.mubr.bf16.gmra.mrb[44].mxu0 %v5541_v2  ;;  %4895 = vmatprep.subr.bf16.mxu1 %v5574_v15  ;;  %v5643_v2 = vld [vmem:[%s7393_s1 + $0x368] sm:$0xff]   ;;  %v5664_v15 = vld [vmem:[%s7393_s1 + $0x3f8] sm:$0xff]  }
  0x7c   :  { %3179 = vmatmul.mubr.bf16.gmra.mrb[44].mxu1 %v5542_v3  ;;  %3089 = vmatprep.mubr.bf16.mxu0 %v5547_v4  ;;  %v5644_v3 = vld [vmem:[%s7393_s1 + $0x3e8] sm:$0xff]  }
  0x7d   :  { %3186 = vmatprep.mubr.bf16.mxu1 %v5549_v5  ;;  %4832 = vmatpush3.bf16.msra.mxu0 %v5575_v16  ;;  %v5645_v4 = vld [vmem:[%s7393_s1 + $0x328] sm:$0xff]   ;;  %v5621_v5 = vld [vmem:[%s7394_s0 + $0x278] ss:$100 sps:$4 sm:$0xff]   ;;  %v5631_v16 = vld [vmem:[%s7394_s0 + $0x340] ss:$100 sps:$4 sm:$0xff]  }
  0x7e   :  { %4896 = vmatpush3.bf16.msra.mxu1 %v5576_v17  ;;  %4833 = vmatprep.subr.bf16.mxu0 %v5583_v21  ;;  %v5665_v17 = vld [vmem:[%s7393_s1 + $0x338] sm:$0xff]  }
  0x7f   :  { %4897 = vmatprep.subr.bf16.mxu1 %v5584_v23  ;;  %v5639_v21 = vld [vmem:[%s7394_s0 + $0x414] ss:$100 sps:$4 sm:$0xff]   ;;  %v5674_v23 = vld [vmem:[%s7393_s1 + $0x4c0] sm:$0xff]  }
  0x81   :  { %4834 = vmatpush3.bf16.msra.mxu0 %v5585_v24  ;;  %v5641_v24 = vld [vmem:[%s7394_s0 + $0x408] ss:$100 sps:$4 sm:$0xff]  }
  0x82   :  { %4898 = vmatpush3.bf16.msra.mxu1 %v5586_v25  ;;  %4947 = vmatprep.subr.bf16.mxu0 %v5593_v27  ;;  %v5642_v25 = vld [vmem:[%s7394_s0 + $0x410] ss:$100 sps:$4 sm:$0xff]   ;;  %v5649_v27 = vld [vmem:[%s7394_s0 + $0x4dc] ss:$100 sps:$4 sm:$0xff]  }
  0x83   :  { %3090 = vmatmul.mubr.bf16.gmra.mrb[48].mxu0 %v5551_v10  ;;  %5011 = vmatprep.subr.bf16.mxu1 %v5594_v28  ;;  %v5654_v10 = vld [vmem:[%s7393_s1 + $0x3f0] sm:$0xff]  }
  0x84   :  { %3187 = vmatmul.mubr.bf16.gmra.mrb[48].mxu1 %v5552_v11  ;;  %3097 = vmatprep.mubr.bf16.mxu0 %v5557_v12  ;;  %v5629_v11 = vld [vmem:[%s7394_s0 + $0x34c] ss:$100 sps:$4 sm:$0xff]  }
  0x85   :  { %3194 = vmatprep.mubr.bf16.mxu1 %v5559_v13  ;;  %v5655_v12 = vld [vmem:[%s7393_s1 + $0x330] sm:$0xff]  }
  0x86   :  { %v5656_v13 = vld [vmem:[%s7393_s1 + $0x3b0] sm:$0xff]  }
  0x87   :  { %v5651_v28 = vld [vmem:[%s7394_s0 + $0x4d0] ss:$100 sps:$4 sm:$0xff]  }
  0x8b   :  { %3098 = vmatmul.mubr.bf16.gmra.mrb[52].mxu0 %v5561_v18  ;;  %v5666_v18 = vld [vmem:[%s7393_s1 + $0x3b8] sm:$0xff]  }
  0x8c   :  { %3195 = vmatmul.mubr.bf16.gmra.mrb[52].mxu1 %v5562_v19  ;;  %3105 = vmatprep.mubr.bf16.mxu0 %v5567_v20  ;;  %v5632_v19 = vld [vmem:[%s7394_s0 + $0x348] ss:$100 sps:$4 sm:$0xff]  }
  0x8d   :  { %3202 = vmatprep.mubr.bf16.mxu1 %v5569_v22  ;;  %v5637_v20 = vld [vmem:[%s7394_s0 + $0x40c] ss:$100 sps:$4 sm:$0xff]   ;;  %v5673_v22 = vld [vmem:[%s7393_s1 + $0x440] sm:$0xff]  }
  0x93   :  { %3106 = vmatmul.mubr.bf16.gmra.mrb[56].mxu0 %v5571_v26  ;;  %v5647_v26 = vld [vmem:[%s7394_s0 + $0x4d4] ss:$100 sps:$4 sm:$0xff]  }
  0x94   :  { %3203 = vmatmul.mubr.bf16.gmra.mrb[56].mxu1 %v5572_v29  ;;  %3113 = vmatprep.mubr.bf16.mxu0 %v5577_v30  ;;  %v5652_v29 = vld [vmem:[%s7394_s0 + $0x4d8] ss:$100 sps:$4 sm:$0xff]  }
  0x95   :  { %3210 = vmatprep.mubr.bf16.mxu1 %v5579_v31  ;;  %v5657_v30 = vld [vmem:[%s7394_s0 + $0x59c] ss:$100 sps:$4 sm:$0xff]   ;;  %v5659_v31 = vld [vmem:[%s7394_s0 + $0x5a4] ss:$100 sps:$4 sm:$0xff]  }
  0x9b   :  { %3114 = vmatmul.mubr.bf16.gmra.mrb[60].mxu0 %v5581_v32  ;;  %v5661_v32 = vld [vmem:[%s7394_s0 + $0x598] ss:$100 sps:$4 sm:$0xff]  }
  0x9c   :  { %3211 = vmatmul.mubr.bf16.gmra.mrb[60].mxu1 %v5582_v33  ;;  %3251 = vmatprep.mubr.bf16.mxu0 %v5589_v34  ;;  %v5662_v33 = vld [vmem:[%s7394_s0 + $0x5a0] ss:$100 sps:$4 sm:$0xff]   ;;  %v5669_v34 = vld [vmem:[%s7394_s0 + $0x34] ss:$100 sps:$4 sm:$0xff]  }
  0x9d   :  { %3348 = vmatprep.mubr.bf16.mxu1 %v5592_v35  ;;  %v5672_v35 = vld [vmem:[%s7394_s0 + $0x3c] ss:$100 sps:$4 sm:$0xff]  }
  0xa3   :  { %3252 = vmatmul.mubr.bf16.vlgmr.msra.gmra.mrb[64].mxu0 %v5587_v36  ;;  %v5667_v36 = vld [vmem:[%s7394_s0 + $0x30] ss:$100 sps:$4 sm:$0xff]  }
  0xa4   :  { %3349 = vmatmul.mubr.bf16.vlgmr.msra.gmra.mrb[64].mxu1 %v5590_v37  ;;  %4948 = vmatpush3.bf16.msra.mxu0 %v5595_v38  ;;  %v5670_v37 = vld [vmem:[%s7394_s0 + $0x38] ss:$100 sps:$4 sm:$0xff]   ;;  %v5675_v38 = vld [vmem:[%s7393_s1 + $0x400] sm:$0xff]  }
  0xa5   :  { %5012 = vmatpush3.bf16.msra.mxu1 %v5596_v39  ;;  %3259 = vmatprep.mubr.bf16.mxu0 %v5597_v40  ;;  %v5676_v39 = vld [vmem:[%s7393_s1 + $0x480] sm:$0xff]  }
  0xa6   :  { %3356 = vmatprep.mubr.bf16.mxu1 %v5599_v41  ;;  %4949 = vmatprep.subr.bf16.mxu0 %v5603_v42  ;;  %v5677_v40 = vld [vmem:[%s7394_s0 + $0xfc] ss:$100 sps:$4 sm:$0xff]   ;;  %v5679_v41 = vld [vmem:[%s7394_s0 + $0x104] ss:$100 sps:$4 sm:$0xff]  }
  0xa7   :  { %5013 = vmatprep.subr.bf16.mxu1 %v5604_v43  ;;  %v5683_v42 = vld [vmem:[%s7393_s1 + $0x448] sm:$0xff]  }
  0xa8   :  { %4950 = vmatpush3.bf16.msra.mxu0 %v5605_v44  ;;  %v5684_v43 = vld [vmem:[%s7393_s1 + $0x4c8] sm:$0xff]  }
  0xa9   :  { %5014 = vmatpush3.bf16.msra.mxu1 %v5606_v45  ;;  %4951 = vmatprep.subr.bf16.mxu0 %v5613_v47  ;;  %v5685_v44 = vld [vmem:[%s7393_s1 + $0x408] sm:$0xff]   ;;  %v5693_v47 = vld [vmem:[%s7393_s1 + $0x450] sm:$0xff]  }
  0xaa   :  { %5015 = vmatprep.subr.bf16.mxu1 %v5614_v50  ;;  %v5686_v45 = vld [vmem:[%s7393_s1 + $0x488] sm:$0xff]  }
  0xab   :  { %3260 = vmatmul.mubr.bf16.gmra.mrb[68].mxu0 %v5601_v46  ;;  %v5681_v46 = vld [vmem:[%s7394_s0 + $0xf8] ss:$100 sps:$4 sm:$0xff]   ;;  %v5687_v50 = vld [vmem:[%s7394_s0 + $0x1c4] ss:$100 sps:$4 sm:$0xff]  }
  0xac   :  { %3357 = vmatmul.mubr.bf16.gmra.mrb[68].mxu1 %v5602_v48  ;;  %3267 = vmatprep.mubr.bf16.mxu0 %v5607_v49  ;;  %v5682_v48 = vld [vmem:[%s7394_s0 + $0x100] ss:$100 sps:$4 sm:$0xff]   ;;  %v5694_v49 = vld [vmem:[%s7393_s1 + $0x4d0] sm:$0xff]  }
  0xad   :  { %3364 = vmatprep.mubr.bf16.mxu1 %v5609_v51  ;;  %4952 = vmatpush3.bf16.msra.mxu0 %v5615_v52  ;;  %v5689_v51 = vld [vmem:[%s7394_s0 + $0x1cc] ss:$100 sps:$4 sm:$0xff]  }
  0xae   :  { %5016 = vmatpush3.bf16.msra.mxu1 %v5616_v53  ;;  %4953 = vmatprep.subr.bf16.mxu0 %v5623_v54  ;;  %v5695_v52 = vld [vmem:[%s7393_s1 + $0x410] sm:$0xff]   ;;  %v5703_v54 = vld [vmem:[%s7393_s1 + $0x458] sm:$0xff]  }
  0xaf   :  { %5017 = vmatprep.subr.bf16.mxu1 %v5624_v55  ;;  %v5696_v53 = vld [vmem:[%s7393_s1 + $0x490] sm:$0xff]   ;;  %v5704_v55 = vld [vmem:[%s7393_s1 + $0x4d8] sm:$0xff]  }
  0xb1   :  { %4954 = vmatpush3.bf16.msra.mxu0 %v5625_v57  ;;  %v5691_v57 = vld [vmem:[%s7394_s0 + $0x1c0] ss:$100 sps:$4 sm:$0xff]  }
  0xb2   :  { %5018 = vmatpush3.bf16.msra.mxu1 %v5626_v58  ;;  %4955 = vmatprep.subr.bf16.mxu0 %v5633_v61  ;;  %v5706_v58 = vld [vmem:[%s7393_s1 + $0x498] sm:$0xff]   ;;  %v5713_v61 = vld [vmem:[%s7393_s1 + $0x460] sm:$0xff]  }
  0xb3   :  { %3268 = vmatmul.mubr.bf16.gmra.mrb[72].mxu0 %v5611_v56  ;;  %5019 = vmatprep.subr.bf16.mxu1 %v5634_v63  ;;  %v5705_v56 = vld [vmem:[%s7393_s1 + $0x418] sm:$0xff]   ;;  %v5714_v63 = vld [vmem:[%s7393_s1 + $0x4e0] sm:$0xff]  }
  0xb4   :  { %3365 = vmatmul.mubr.bf16.gmra.mrb[72].mxu1 %v5612_v59  ;;  %3275 = vmatprep.mubr.bf16.mxu0 %v5617_v60  ;;  %v5692_v59 = vld [vmem:[%s7394_s0 + $0x1c8] ss:$100 sps:$4 sm:$0xff]  }
  0xb5   :  { %3372 = vmatprep.mubr.bf16.mxu1 %v5619_v62  ;;  %4956 = vmatpush3.bf16.msra.mxu0 %v5635_v0  ;;  %v5697_v60 = vld [vmem:[%s7394_s0 + $0x28c] ss:$100 sps:$4 sm:$0xff]   ;;  %v5699_v62 = vld [vmem:[%s7394_s0 + $0x294] ss:$100 sps:$4 sm:$0xff]   ;;  %v5715_v0 = vld [vmem:[%s7393_s1 + $0x420] sm:$0xff]  }
  0xb6   :  { %5020 = vmatpush3.bf16.msra.mxu1 %v5636_v1  ;;  %4957 = vmatprep.subr.bf16.mxu0 %v5643_v2  ;;  %v5716_v1 = vld [vmem:[%s7393_s1 + $0x4a0] sm:$0xff]   ;;  %v5723_v2 = vld [vmem:[%s7393_s1 + $0x468] sm:$0xff]  }
  0xb7   :  { %5021 = vmatprep.subr.bf16.mxu1 %v5644_v3  ;;  %v5724_v3 = vld [vmem:[%s7393_s1 + $0x4e8] sm:$0xff]  }
  0xb9   :  { %4958 = vmatpush3.bf16.msra.mxu0 %v5645_v4  ;;  %v5701_v4 = vld [vmem:[%s7394_s0 + $0x288] ss:$100 sps:$4 sm:$0xff]  }
  0xba   :  { %5022 = vmatpush3.bf16.msra.mxu1 %v5646_v6  ;;  %4959 = vmatprep.subr.bf16.mxu0 %v5653_v9  ;;  %v5726_v6 = vld [vmem:[%s7393_s1 + $0x4a8] sm:$0xff]   ;;  %v5707_v9 = vld [vmem:[%s7394_s0 + $0x354] ss:$100 sps:$4 sm:$0xff]  }
  0xbb   :  { %3276 = vmatmul.mubr.bf16.gmra.mrb[76].mxu0 %v5621_v5  ;;  %5023 = vmatprep.subr.bf16.mxu1 %v5654_v10  ;;  %v5725_v5 = vld [vmem:[%s7393_s1 + $0x428] sm:$0xff]   ;;  %v5733_v10 = vld [vmem:[%s7393_s1 + $0x470] sm:$0xff]  }
  0xbc   :  { %3373 = vmatmul.mubr.bf16.gmra.mrb[76].mxu1 %v5622_v7  ;;  %3283 = vmatprep.mubr.bf16.mxu0 %v5627_v8  ;;  %v5702_v8 = vld [vmem:[%s7394_s0 + $0x290] ss:$100 sps:$4 sm:$0xff]  }
  0xbd   :  { %3380 = vmatprep.mubr.bf16.mxu1 %v5629_v11  ;;  %4960 = vmatpush3.bf16.msra.mxu0 %v5655_v12  ;;  %v5734_v11 = vld [vmem:[%s7393_s1 + $0x4f0] sm:$0xff]  }
  0xbe   :  { %5024 = vmatpush3.bf16.msra.mxu1 %v5656_v13  ;;  %4961 = vmatprep.subr.bf16.mxu0 %v5663_v14  ;;  %v5709_v14 = vld [vmem:[%s7394_s0 + $0x35c] ss:$100 sps:$4 sm:$0xff]  }
  0xbf   :  { %5025 = vmatprep.subr.bf16.mxu1 %v5664_v15 }
  0xc1   :  { %4962 = vmatpush3.bf16.msra.mxu0 %v5665_v17 }
  0xc2   :  { %5026 = vmatpush3.bf16.msra.mxu1 %v5666_v18  ;;  %5075 = vmatprep.subr.bf16.mxu0 %v5673_v22  ;;  %v5735_v18 = vld [vmem:[%s7393_s1 + $0x430] sm:$0xff]  }
  0xc3   :  { %3284 = vmatmul.mubr.bf16.gmra.mrb[80].mxu0 %v5631_v16  ;;  %5139 = vmatprep.subr.bf16.mxu1 %v5674_v23 }
  0xc4   :  { %3381 = vmatmul.mubr.bf16.gmra.mrb[80].mxu1 %v5632_v19  ;;  %3291 = vmatprep.mubr.bf16.mxu0 %v5637_v20  ;;  %v5736_v19 = vld [vmem:[%s7393_s1 + $0x4b0] sm:$0xff]  }
  0xc5   :  { %3388 = vmatprep.mubr.bf16.mxu1 %v5639_v21 }
  0xcb   :  { %3292 = vmatmul.mubr.bf16.gmra.mrb[84].mxu0 %v5641_v24 }
  0xcc   :  { %3389 = vmatmul.mubr.bf16.gmra.mrb[84].mxu1 %v5642_v25  ;;  %3299 = vmatprep.mubr.bf16.mxu0 %v5647_v26  ;;  %v5743_v25 = vld [vmem:[%s7393_s1 + $0x478] sm:$0xff]  }
  0xcd   :  { %3396 = vmatprep.mubr.bf16.mxu1 %v5649_v27 }
  0xd3   :  { %3300 = vmatmul.mubr.bf16.gmra.mrb[88].mxu0 %v5651_v28  ;;  %v5744_v28 = vld [vmem:[%s7393_s1 + $0x4f8] sm:$0xff]  }
  0xd4   :  { %3397 = vmatmul.mubr.bf16.gmra.mrb[88].mxu1 %v5652_v29  ;;  %3307 = vmatprep.mubr.bf16.mxu0 %v5657_v30  ;;  %v5711_v30 = vld [vmem:[%s7394_s0 + $0x350] ss:$100 sps:$4 sm:$0xff]  }
  0xd5   :  { %3404 = vmatprep.mubr.bf16.mxu1 %v5659_v31  ;;  %v5745_v31 = vld [vmem:[%s7393_s1 + $0x438] sm:$0xff]  }
  0xdb   :  { %3308 = vmatmul.mubr.bf16.gmra.mrb[92].mxu0 %v5661_v32  ;;  %v5746_v32 = vld [vmem:[%s7393_s1 + $0x4b8] sm:$0xff]  }
  0xdc   :  { %3405 = vmatmul.mubr.bf16.gmra.mrb[92].mxu1 %v5662_v33  ;;  %3445 = vmatprep.mubr.bf16.mxu0 %v5669_v34  ;;  %v5712_v34 = vld [vmem:[%s7394_s0 + $0x358] ss:$100 sps:$4 sm:$0xff]  }
  0xdd   :  { %3542 = vmatprep.mubr.bf16.mxu1 %v5672_v35  ;;  %v5717_v35 = vld [vmem:[%s7394_s0 + $0x41c] ss:$100 sps:$4 sm:$0xff]  }
  0xe3   :  { %3446 = vmatmul.mubr.bf16.vlgmr.msra.gmra.mrb[96].mxu0 %v5667_v36  ;;  %v5753_v36 = vld [vmem:[%s7393_s1 + $0x540] sm:$0xff]  }
  0xe4   :  { %3543 = vmatmul.mubr.bf16.vlgmr.msra.gmra.mrb[96].mxu1 %v5670_v37  ;;  %5076 = vmatpush3.bf16.msra.mxu0 %v5675_v38  ;;  %v5754_v37 = vld [vmem:[%s7393_s1 + $0x5c0] sm:$0xff]  }
  0xe5   :  { %5140 = vmatpush3.bf16.msra.mxu1 %v5676_v39  ;;  %3453 = vmatprep.mubr.bf16.mxu0 %v5677_v40 }
  0xe6   :  { %3550 = vmatprep.mubr.bf16.mxu1 %v5679_v41  ;;  %5077 = vmatprep.subr.bf16.mxu0 %v5683_v42 }
  0xe7   :  { %5141 = vmatprep.subr.bf16.mxu1 %v5684_v43  ;;  %v5719_v43 = vld [vmem:[%s7394_s0 + $0x424] ss:$100 sps:$4 sm:$0xff]  }
  0xe8   :  { %5078 = vmatpush3.bf16.msra.mxu0 %v5685_v44 }
  0xe9   :  { %5142 = vmatpush3.bf16.msra.mxu1 %v5686_v45  ;;  %5079 = vmatprep.subr.bf16.mxu0 %v5693_v47 }
  0xea   :  { %5143 = vmatprep.subr.bf16.mxu1 %v5694_v49 }
  0xeb   :  { %3454 = vmatmul.mubr.bf16.gmra.mrb[100].mxu0 %v5681_v46 }
  0xec   :  { %3551 = vmatmul.mubr.bf16.gmra.mrb[100].mxu1 %v5682_v48  ;;  %3461 = vmatprep.mubr.bf16.mxu0 %v5687_v50 }
  0xed   :  { %3558 = vmatprep.mubr.bf16.mxu1 %v5689_v51  ;;  %5080 = vmatpush3.bf16.msra.mxu0 %v5695_v52  ;;  %v5721_v52 = vld [vmem:[%s7394_s0 + $0x418] ss:$100 sps:$4 sm:$0xff]  }
  0xee   :  { %5144 = vmatpush3.bf16.msra.mxu1 %v5696_v53  ;;  %5081 = vmatprep.subr.bf16.mxu0 %v5703_v54  ;;  %v5722_v54 = vld [vmem:[%s7394_s0 + $0x420] ss:$100 sps:$4 sm:$0xff]  }
  0xef   :  { %5145 = vmatprep.subr.bf16.mxu1 %v5704_v55  ;;  %v5727_v55 = vld [vmem:[%s7394_s0 + $0x4e4] ss:$100 sps:$4 sm:$0xff]  }
  0xf1   :  { %5082 = vmatpush3.bf16.msra.mxu0 %v5705_v56 }
  0xf2   :  { %5146 = vmatpush3.bf16.msra.mxu1 %v5706_v58  ;;  %5083 = vmatprep.subr.bf16.mxu0 %v5713_v61  ;;  %v5729_v58 = vld [vmem:[%s7394_s0 + $0x4ec] ss:$100 sps:$4 sm:$0xff]  }
  0xf3   :  { %3462 = vmatmul.mubr.bf16.gmra.mrb[104].mxu0 %v5691_v57  ;;  %5147 = vmatprep.subr.bf16.mxu1 %v5714_v63 }
  0xf4   :  { %3559 = vmatmul.mubr.bf16.gmra.mrb[104].mxu1 %v5692_v59  ;;  %3469 = vmatprep.mubr.bf16.mxu0 %v5697_v60 }
  0xf5   :  { %3566 = vmatprep.mubr.bf16.mxu1 %v5699_v62  ;;  %5084 = vmatpush3.bf16.msra.mxu0 %v5715_v0 }
  0xf6   :  { %v4579_v7 = vpop.f32.mrb[0].mxu0  ;;  %5148 = vmatpush3.bf16.msra.mxu1 %v5716_v1  ;;  %5085 = vmatprep.subr.bf16.mxu0 %v5723_v2 }
  0xf7   :  { %v4643_v12 = vpop.f32.mrb[0].mxu1  ;;  %v4580_v13 = vpop.f32.mrb[1].mxu0  ;;  %5149 = vmatprep.subr.bf16.mxu1 %v5724_v3 }
  0xf8   :  { %v4581_v15 = vadd.f32 %v4580_v13, %v4579_v7  ;;  %v4644_v16 = vpop.f32.mrb[1].mxu1  ;;  %v4582_v17 = vpop.f32.mrb[2].mxu0 }
  0xf9   :  { %v4645_v20 = vadd.f32 %v4644_v16, %v4643_v12  ;;  %v4646_v21 = vpop.f32.mrb[2].mxu1  ;;  %v4583_v22 = vpop.f32.mrb[3].mxu0  ;;  %5086 = vmatpush3.bf16.msra.mxu0 %v5725_v5 }
  0xfa   :  { %v4584_v23 = vadd.f32 %v4583_v22, %v4582_v17  ;;  %v4647_v24 = vpop.f32.mrb[3].mxu1  ;;  %5150 = vmatpush3.bf16.msra.mxu1 %v5726_v6  ;;  %5087 = vmatprep.subr.bf16.mxu0 %v5733_v10  ;;  %v5731_v6 = vld [vmem:[%s7394_s0 + $0x4e0] ss:$100 sps:$4 sm:$0xff]  }
  0xfb   :  { %v6724_v26 = vadd.f32 %v4645_v20, %v4581_v15  ;;  %v4648_v27 = vadd.f32 %v4647_v24, %v4646_v21  ;;  %3470 = vmatmul.mubr.bf16.gmra.mrb[108].mxu0 %v5701_v4  ;;  %5151 = vmatprep.subr.bf16.mxu1 %v5734_v11  ;;  %v5739_v15 = vld [vmem:[%s7394_s0 + $0x5b4] ss:$100 sps:$4 sm:$0xff]   ;;  %v5741_v24 = vld [vmem:[%s7394_s0 + $0x5a8] ss:$100 sps:$4 sm:$0xff]  }
  0xfc   :  { %3567 = vmatmul.mubr.bf16.gmra.mrb[108].mxu1 %v5702_v8  ;;  %3477 = vmatprep.mubr.bf16.mxu0 %v5707_v9  ;;  %v5732_v8 = vld [vmem:[%s7394_s0 + $0x4e8] ss:$100 sps:$4 sm:$0xff]  }
  0xfd   :  { %v6729_v29 = vadd.f32 %v4648_v27, %v4584_v23  ;;  %3574 = vmatprep.mubr.bf16.mxu1 %v5709_v14  ;;  %5088 = vmatpush3.bf16.msra.mxu0 %v5735_v18  ;;  %v5737_v9 = vld [vmem:[%s7394_s0 + $0x5ac] ss:$100 sps:$4 sm:$0xff]  }
  0xfe   :  { %v4585_v33 = vpop.f32.mrb[4].mxu0  ;;  %5152 = vmatpush3.bf16.msra.mxu1 %v5736_v19  ;;  %5089 = vmatprep.subr.bf16.mxu0 %v5743_v25  ;;  %v5742_v27 = vld [vmem:[%s7394_s0 + $0x5b0] ss:$100 sps:$4 sm:$0xff]  }
  0xff   :  { %v4649_v38 = vpop.f32.mrb[4].mxu1  ;;  %v4586_v39 = vpop.f32.mrb[5].mxu0  ;;  %5153 = vmatprep.subr.bf16.mxu1 %v5744_v28 }
 0x100   :  { %v4587_v40 = vadd.f32 %v4586_v39, %v4585_v33  ;;  %v4650_v41 = vpop.f32.mrb[5].mxu1  ;;  %v4588_v42 = vpop.f32.mrb[6].mxu0 }
 0x101   :  { %v4651_v44 = vadd.f32 %v4650_v41, %v4649_v38  ;;  %v4652_v45 = vpop.f32.mrb[6].mxu1  ;;  %v4589_v46 = vpop.f32.mrb[7].mxu0  ;;  %5090 = vmatpush3.bf16.msra.mxu0 %v5745_v31  ;;  %v5752_v38 = vld [vmem:[%s7394_s0 + $0x4c] ss:$100 sps:$4 sm:$0xff]  }
 0x102   :  { %v4590_v47 = vadd.f32 %v4589_v46, %v4588_v42  ;;  %v4653_v48 = vpop.f32.mrb[7].mxu1  ;;  %5154 = vmatpush3.bf16.msra.mxu1 %v5746_v32  ;;  %5203 = vmatprep.subr.bf16.mxu0 %v5753_v36  ;;  %v5750_v46 = vld [vmem:[%s7394_s0 + $0x48] ss:$100 sps:$4 sm:$0xff]  }
 0x103   :  { %v6755_v49 = vadd.f32 %v4651_v44, %v4587_v40  ;;  %v4654_v50 = vadd.f32 %v4653_v48, %v4652_v45  ;;  %3478 = vmatmul.mubr.bf16.gmra.mrb[112].mxu0 %v5711_v30  ;;  %5267 = vmatprep.subr.bf16.mxu1 %v5754_v37  ;;  %v5747_v44 = vld [vmem:[%s7394_s0 + $0x40] ss:$100 sps:$4 sm:$0xff]  }
 0x104   :  { %3575 = vmatmul.mubr.bf16.gmra.mrb[112].mxu1 %v5712_v34  ;;  %3485 = vmatprep.mubr.bf16.mxu0 %v5717_v35  ;;  %v5749_v34 = vld [vmem:[%s7394_s0 + $0x44] ss:$100 sps:$4 sm:$0xff]  }
 0x105   :  { %v6757_v51 = vadd.f32 %v4654_v50, %v4590_v47  ;;  %3582 = vmatprep.mubr.bf16.mxu1 %v5719_v43  ;;  %v5755_v50 = vld [vmem:[%s7393_s1 + $0x500] sm:$0xff]  }
 0x106   :  { %v4591_v53 = vpop.f32.mrb[8].mxu0 }
 0x107   :  { %v4655_v56 = vpop.f32.mrb[8].mxu1  ;;  %v4592_v57 = vpop.f32.mrb[9].mxu0 }
 0x108   :  { %v4593_v59 = vadd.f32 %v4592_v57, %v4591_v53  ;;  %v4656_v60 = vpop.f32.mrb[9].mxu1  ;;  %v4594_v61 = vpop.f32.mrb[10].mxu0 }
 0x109   :  { %v4657_v62 = vadd.f32 %v4656_v60, %v4655_v56  ;;  %v4658_v63 = vpop.f32.mrb[10].mxu1  ;;  %v4595_v0 = vpop.f32.mrb[11].mxu0  ;;  %v5759_v60 = vld [vmem:[%s7394_s0 + $0x114] ss:$100 sps:$4 sm:$0xff]  }
 0x10a   :  { %v4596_v1 = vadd.f32 %v4595_v0, %v4594_v61  ;;  %v4659_v2 = vpop.f32.mrb[11].mxu1  ;;  %v5763_v61 = vld [vmem:[%s7393_s1 + $0x548] sm:$0xff]  }
 0x10b   :  { %v6771_v3 = vadd.f32 %v4657_v62, %v4593_v59  ;;  %v4660_v4 = vadd.f32 %v4659_v2, %v4658_v63  ;;  %3486 = vmatmul.mubr.bf16.gmra.mrb[116].mxu0 %v5721_v52  ;;  %v5756_v59 = vld [vmem:[%s7393_s1 + $0x580] sm:$0xff]   ;;  %v5764_v0 = vld [vmem:[%s7393_s1 + $0x5c8] sm:$0xff]  }
 0x10c   :  { %3583 = vmatmul.mubr.bf16.gmra.mrb[116].mxu1 %v5722_v54  ;;  %3493 = vmatprep.mubr.bf16.mxu0 %v5727_v55  ;;  %v5757_v55 = vld [vmem:[%s7394_s0 + $0x10c] ss:$100 sps:$4 sm:$0xff]  }
 0x10d   :  { %v6773_v5 = vadd.f32 %v4660_v4, %v4596_v1  ;;  %3590 = vmatprep.mubr.bf16.mxu1 %v5729_v58  ;;  %v5765_v4 = vld [vmem:[%s7393_s1 + $0x508] sm:$0xff]  }
 0x10e   :  { %v4597_v7 = vpop.f32.mrb[12].mxu0 }
 0x10f   :  { %v4661_v10 = vpop.f32.mrb[12].mxu1  ;;  %v4598_v11 = vpop.f32.mrb[13].mxu0 }
 0x110   :  { %v4599_v12 = vadd.f32 %v4598_v11, %v4597_v7  ;;  %v4662_v13 = vpop.f32.mrb[13].mxu1  ;;  %v4600_v14 = vpop.f32.mrb[14].mxu0  ;;  %v5762_v11 = vld [vmem:[%s7394_s0 + $0x110] ss:$100 sps:$4 sm:$0xff]  }
 0x111   :  { %v4663_v16 = vadd.f32 %v4662_v13, %v4661_v10  ;;  %v4664_v17 = vpop.f32.mrb[14].mxu1  ;;  %v4601_v18 = vpop.f32.mrb[15].mxu0 }
 0x112   :  { %v4602_v19 = vadd.f32 %v4601_v18, %v4600_v14  ;;  %v4665_v20 = vpop.f32.mrb[15].mxu1 }
 0x113   :  { %v6787_v21 = vadd.f32 %v4663_v16, %v4599_v12  ;;  %v4666_v22 = vadd.f32 %v4665_v20, %v4664_v17  ;;  %3494 = vmatmul.mubr.bf16.gmra.mrb[120].mxu0 %v5731_v6  ;;  %v5766_v6 = vld [vmem:[%s7393_s1 + $0x588] sm:$0xff]   ;;  %v5774_v12 = vld [vmem:[%s7393_s1 + $0x5d0] sm:$0xff]  }
 0x114   :  { %3591 = vmatmul.mubr.bf16.gmra.mrb[120].mxu1 %v5732_v8  ;;  %3501 = vmatprep.mubr.bf16.mxu0 %v5737_v9  ;;  %v5761_v8 = vld [vmem:[%s7394_s0 + $0x108] ss:$100 sps:$4 sm:$0xff]   ;;  %v5773_v9 = vld [vmem:[%s7393_s1 + $0x550] sm:$0xff]  }
 0x115   :  { %v6789_v23 = vadd.f32 %v4666_v22, %v4602_v19  ;;  %3598 = vmatprep.mubr.bf16.mxu1 %v5739_v15  ;;  %v5767_v15 = vld [vmem:[%s7394_s0 + $0x1d4] ss:$100 sps:$4 sm:$0xff]   ;;  %v5769_v19 = vld [vmem:[%s7394_s0 + $0x1dc] ss:$100 sps:$4 sm:$0xff]  }
 0x116   :  { %v4603_v25 = vpop.f32.mrb[16].mxu0  ;;  %v5775_v20 = vld [vmem:[%s7393_s1 + $0x510] sm:$0xff]  }
 0x117   :  { %v4667_v28 = vpop.f32.mrb[16].mxu1  ;;  %v4604_v30 = vpop.f32.mrb[17].mxu0  ;;  %v5776_v22 = vld [vmem:[%s7393_s1 + $0x590] sm:$0xff]  }
 0x118   :  { %v4605_v31 = vadd.f32 %v4604_v30, %v4603_v25  ;;  %v4668_v32 = vpop.f32.mrb[17].mxu1  ;;  %v4606_v33 = vpop.f32.mrb[18].mxu0 }
 0x119   :  { %v4669_v35 = vadd.f32 %v4668_v32, %v4667_v28  ;;  %v4670_v36 = vpop.f32.mrb[18].mxu1  ;;  %v4607_v37 = vpop.f32.mrb[19].mxu0 }
 0x11a   :  { %v4608_v39 = vadd.f32 %v4607_v37, %v4606_v33  ;;  %v4671_v40 = vpop.f32.mrb[19].mxu1  ;;  %v5785_v37 = vld [vmem:[%s7393_s1 + $0x518] sm:$0xff]  }
 0x11b   :  { %v6803_v41 = vadd.f32 %v4669_v35, %v4605_v31  ;;  %v4672_v42 = vadd.f32 %v4671_v40, %v4670_v36  ;;  %3502 = vmatmul.mubr.bf16.gmra.mrb[124].mxu0 %v5741_v24  ;;  %v5783_v31 = vld [vmem:[%s7393_s1 + $0x558] sm:$0xff]   ;;  %v5771_v36 = vld [vmem:[%s7394_s0 + $0x1d0] ss:$100 sps:$4 sm:$0xff]  }
 0x11c   :  { %3599 = vmatmul.mubr.bf16.gmra.mrb[124].mxu1 %v5742_v27  ;;  %3639 = vmatprep.mubr.bf16.mxu0 %v5749_v34  ;;  %v5784_v34 = vld [vmem:[%s7393_s1 + $0x5d8] sm:$0xff]  }
 0x11d   :  { %v6805_v43 = vadd.f32 %v4672_v42, %v4608_v39  ;;  %3736 = vmatprep.mubr.bf16.mxu1 %v5752_v38  ;;  %v5772_v39 = vld [vmem:[%s7394_s0 + $0x1d8] ss:$100 sps:$4 sm:$0xff]  }
 0x11e   :  { %v4609_v45 = vpop.f32.mrb[20].mxu0  ;;  %v5777_v40 = vld [vmem:[%s7394_s0 + $0x29c] ss:$100 sps:$4 sm:$0xff]  }
 0x11f   :  { %v4673_v47 = vpop.f32.mrb[20].mxu1  ;;  %v4610_v48 = vpop.f32.mrb[21].mxu0  ;;  %v5786_v42 = vld [vmem:[%s7393_s1 + $0x598] sm:$0xff]  }
 0x120   :  { %v4611_v52 = vadd.f32 %v4610_v48, %v4609_v45  ;;  %v4674_v53 = vpop.f32.mrb[21].mxu1  ;;  %v4612_v54 = vpop.f32.mrb[22].mxu0  ;;  %v5794_v48 = vld [vmem:[%s7393_s1 + $0x5e0] sm:$0xff]  }
 0x121   :  { %v4675_v56 = vadd.f32 %v4674_v53, %v4673_v47  ;;  %v4676_v57 = vpop.f32.mrb[22].mxu1  ;;  %v4613_v58 = vpop.f32.mrb[23].mxu0  ;;  %v5779_v47 = vld [vmem:[%s7394_s0 + $0x2a4] ss:$100 sps:$4 sm:$0xff]  }
 0x122   :  { %v4614_v62 = vadd.f32 %v4613_v58, %v4612_v54  ;;  %v4677_v63 = vpop.f32.mrb[23].mxu1  ;;  %v5795_v54 = vld [vmem:[%s7393_s1 + $0x520] sm:$0xff]  }
 0x123   :  { %v6831_v1 = vadd.f32 %v4675_v56, %v4611_v52  ;;  %v4678_v2 = vadd.f32 %v4677_v63, %v4676_v57  ;;  %3640 = vmatmul.mubr.bf16.vlgmr.msra.gmra.mrb[128].mxu0 %v5747_v44  ;;  %v5793_v44 = vld [vmem:[%s7393_s1 + $0x560] sm:$0xff]  }
 0x124   :  { %3737 = vmatmul.mubr.bf16.vlgmr.msra.gmra.mrb[128].mxu1 %v5750_v46  ;;  %5204 = vmatpush3.bf16.msra.mxu0 %v5755_v50 }
 0x125   :  { %v6839_v7 = vadd.f32 %v4678_v2, %v4614_v62  ;;  %5268 = vmatpush3.bf16.msra.mxu1 %v5756_v59  ;;  %3647 = vmatprep.mubr.bf16.mxu0 %v5757_v55  ;;  %v5796_v55 = vld [vmem:[%s7393_s1 + $0x5a0] sm:$0xff]   ;;  %v5805_v2 = vld [vmem:[%s7393_s1 + $0x528] sm:$0xff]  }
 0x126   :  { %v4615_v10 = vpop.f32.mrb[24].mxu0  ;;  %3744 = vmatprep.mubr.bf16.mxu1 %v5759_v60  ;;  %5205 = vmatprep.subr.bf16.mxu0 %v5763_v61  ;;  %v5803_v61 = vld [vmem:[%s7393_s1 + $0x568] sm:$0xff]  }
 0x127   :  { %v4679_v13 = vpop.f32.mrb[24].mxu1  ;;  %v4616_v14 = vpop.f32.mrb[25].mxu0  ;;  %5269 = vmatprep.subr.bf16.mxu1 %v5764_v0  ;;  %v5804_v0 = vld [vmem:[%s7393_s1 + $0x5e8] sm:$0xff]  }
 0x128   :  { %v4617_v16 = vadd.f32 %v4616_v14, %v4615_v10  ;;  %v4680_v17 = vpop.f32.mrb[25].mxu1  ;;  %v4618_v18 = vpop.f32.mrb[26].mxu0  ;;  %5206 = vmatpush3.bf16.msra.mxu0 %v5765_v4  ;;  %v5782_v10 = vld [vmem:[%s7394_s0 + $0x2a0] ss:$100 sps:$4 sm:$0xff]  }
 0x129   :  { %v4681_v24 = vadd.f32 %v4680_v17, %v4679_v13  ;;  %v4682_v25 = vpop.f32.mrb[26].mxu1  ;;  %v4619_v27 = vpop.f32.mrb[27].mxu0  ;;  %5270 = vmatpush3.bf16.msra.mxu1 %v5766_v6  ;;  %5207 = vmatprep.subr.bf16.mxu0 %v5773_v9  ;;  %v5781_v6 = vld [vmem:[%s7394_s0 + $0x298] ss:$100 sps:$4 sm:$0xff]   ;;  %v5815_v17 = vld [vmem:[%s7393_s1 + $0x530] sm:$0xff]  }
 0x12a   :  { %v4620_v28 = vadd.f32 %v4619_v27, %v4618_v18  ;;  %v4683_v30 = vpop.f32.mrb[27].mxu1  ;;  %5271 = vmatprep.subr.bf16.mxu1 %v5774_v12  ;;  %v5813_v12 = vld [vmem:[%s7393_s1 + $0x570] sm:$0xff]  }
 0x12b   :  { %v6868_v32 = vadd.f32 %v4681_v24, %v4617_v16  ;;  %v4684_v33 = vadd.f32 %v4683_v30, %v4682_v25  ;;  %3648 = vmatmul.mubr.bf16.gmra.mrb[132].mxu0 %v5761_v8  ;;  %v5806_v8 = vld [vmem:[%s7393_s1 + $0x5a8] sm:$0xff]   ;;  %v5814_v16 = vld [vmem:[%s7393_s1 + $0x5f0] sm:$0xff]  }
 0x12c   :  { %3745 = vmatmul.mubr.bf16.gmra.mrb[132].mxu1 %v5762_v11  ;;  %3655 = vmatprep.mubr.bf16.mxu0 %v5767_v15  ;;  %v5787_v11 = vld [vmem:[%s7394_s0 + $0x364] ss:$100 sps:$4 sm:$0xff]   ;;  %v5789_v15 = vld [vmem:[%s7394_s0 + $0x36c] ss:$100 sps:$4 sm:$0xff]  }
 0x12d   :  { %v6873_v35 = vadd.f32 %v4684_v33, %v4620_v28  ;;  %3752 = vmatprep.mubr.bf16.mxu1 %v5769_v19  ;;  %5208 = vmatpush3.bf16.msra.mxu0 %v5775_v20  ;;  %v5816_v27 = vld [vmem:[%s7393_s1 + $0x5b0] sm:$0xff]   ;;  %v5823_v33 = vld [vmem:[%s7393_s1 + $0x578] sm:$0xff]  }
 0x12e   :  { %v4621_v38 = vpop.f32.mrb[28].mxu0  ;;  %5272 = vmatpush3.bf16.msra.mxu1 %v5776_v22  ;;  %5209 = vmatprep.subr.bf16.mxu0 %v5783_v31 }
 0x12f   :  { %v4685_v45 = vpop.f32.mrb[28].mxu1  ;;  %v4622_v46 = vpop.f32.mrb[29].mxu0  ;;  %5273 = vmatprep.subr.bf16.mxu1 %v5784_v34 }
 0x130   :  { %v4623_v50 = vadd.f32 %v4622_v46, %v4621_v38  ;;  %v4686_v52 = vpop.f32.mrb[29].mxu1  ;;  %v4624_v53 = vpop.f32.mrb[30].mxu0 }
 0x131   :  { %v4687_v56 = vadd.f32 %v4686_v52, %v4685_v45  ;;  %v4688_v57 = vpop.f32.mrb[30].mxu1  ;;  %v4625_v58 = vpop.f32.mrb[31].mxu0  ;;  %5210 = vmatpush3.bf16.msra.mxu0 %v5785_v37 }
 0x132   :  { %v4626_v59 = vadd.f32 %v4625_v58, %v4624_v53  ;;  %v4689_v60 = vpop.f32.mrb[31].mxu1  ;;  %5274 = vmatpush3.bf16.msra.mxu1 %v5786_v42  ;;  %5211 = vmatprep.subr.bf16.mxu0 %v5793_v44 }
 0x133   :  { %v6908_v62 = vadd.f32 %v4687_v56, %v4623_v50  ;;  %v4690_v63 = vadd.f32 %v4689_v60, %v4688_v57  ;;  %3656 = vmatmul.mubr.bf16.gmra.mrb[136].mxu0 %v5771_v36  ;;  %5275 = vmatprep.subr.bf16.mxu1 %v5794_v48  ;;  %v5824_v36 = vld [vmem:[%s7393_s1 + $0x5f8] sm:$0xff]   ;;  %v5797_v48 = vld [vmem:[%s7394_s0 + $0x42c] ss:$100 sps:$4 sm:$0xff]  }
 0x134   :  { %3753 = vmatmul.mubr.bf16.gmra.mrb[136].mxu1 %v5772_v39  ;;  %3663 = vmatprep.mubr.bf16.mxu0 %v5777_v40  ;;  %v5791_v39 = vld [vmem:[%s7394_s0 + $0x360] ss:$100 sps:$4 sm:$0xff]   ;;  %v5826_v40 = vld [vmem:[%s7393_s1 + $0x5b8] sm:$0xff]  }
 0x135   :  { %v6916_v4 = vadd.f32 %v4690_v63, %v4626_v59  ;;  %3760 = vmatprep.mubr.bf16.mxu1 %v5779_v47  ;;  %5212 = vmatpush3.bf16.msra.mxu0 %v5795_v54  ;;  %v5792_v47 = vld [vmem:[%s7394_s0 + $0x368] ss:$100 sps:$4 sm:$0xff]   ;;  %v5799_v57 = vld [vmem:[%s7394_s0 + $0x434] ss:$100 sps:$4 sm:$0xff]  }
 0x136   :  { %v4707_v9 = vpop.f32.mrb[32].mxu0  ;;  %5276 = vmatpush3.bf16.msra.mxu1 %v5796_v55  ;;  %5213 = vmatprep.subr.bf16.mxu0 %v5803_v61 }
 0x137   :  { %v4771_v13 = vpop.f32.mrb[32].mxu1  ;;  %v4708_v14 = vpop.f32.mrb[33].mxu0  ;;  %5277 = vmatprep.subr.bf16.mxu1 %v5804_v0 }
 0x138   :  { %v4709_v18 = vadd.f32 %v4708_v14, %v4707_v9  ;;  %v4772_v19 = vpop.f32.mrb[33].mxu1  ;;  %v4710_v20 = vpop.f32.mrb[34].mxu0 }
 0x139   :  { %v4773_v22 = vadd.f32 %v4772_v19, %v4771_v13  ;;  %v4774_v24 = vpop.f32.mrb[34].mxu1  ;;  %v4711_v25 = vpop.f32.mrb[35].mxu0  ;;  %5214 = vmatpush3.bf16.msra.mxu0 %v5805_v2 }
 0x13a   :  { %v3060_v28 = vadd.f32 %v4709_v18, %v6724_v26  ;;  %v4712_v30 = vadd.f32 %v4711_v25, %v4710_v20  ;;  %v4775_v31 = vpop.f32.mrb[35].mxu1  ;;  %5278 = vmatpush3.bf16.msra.mxu1 %v5806_v8  ;;  %5215 = vmatprep.subr.bf16.mxu0 %v5813_v12  ;;  %v5825_v26 = vld [vmem:[%s7393_s1 + $0x538] sm:$0xff]  }
 0x13b   :  { %v4776_v34 = vadd.f32 %v4775_v31, %v4774_v24  ;;  %3664 = vmatmul.mubr.bf16.gmra.mrb[140].mxu0 %v5781_v6  ;;  %5279 = vmatprep.subr.bf16.mxu1 %v5814_v16 }
 0x13c   :  { %v6952_v37 = vadd.f32 %v4773_v22, %v3060_v28  ;;  %v3063_v38 = vadd.f32 %v4712_v30, %v6729_v29  ;;  %3761 = vmatmul.mubr.bf16.gmra.mrb[140].mxu1 %v5782_v10  ;;  %3671 = vmatprep.mubr.bf16.mxu0 %v5787_v11  ;;  %v6969_v29 = vld [vmem:[%s7393_s1 + $0x600] sm:$0xff]   ;;  %v5802_v10 = vld [vmem:[%s7394_s0 + $0x430] ss:$100 sps:$4 sm:$0xff]  }
 0x13d   :  { %3768 = vmatprep.mubr.bf16.mxu1 %v5789_v15  ;;  %5216 = vmatpush3.bf16.msra.mxu0 %v5815_v17  ;;  %v5809_v17 = vld [vmem:[%s7394_s0 + $0x4fc] ss:$100 sps:$4 sm:$0xff]  }
 0x13e   :  { %v6964_v42 = vadd.f32 %v4776_v34, %v3063_v38  ;;  %v4713_v44 = vpop.f32.mrb[36].mxu0  ;;  %5280 = vmatpush3.bf16.msra.mxu1 %v5816_v27  ;;  %5217 = vmatprep.subr.bf16.mxu0 %v5823_v33  ;;  %v5811_v27 = vld [vmem:[%s7394_s0 + $0x4f0] ss:$100 sps:$4 sm:$0xff]  }
 0x13f   :  { %v4777_v45 = vpop.f32.mrb[36].mxu1  ;;  %v4714_v46 = vpop.f32.mrb[37].mxu0  ;;  %5281 = vmatprep.subr.bf16.mxu1 %v5824_v36 }
 0x140   :  { %v4715_v50 = vadd.f32 %v4714_v46, %v4713_v44  ;;  %v4778_v52 = vpop.f32.mrb[37].mxu1  ;;  %v4716_v53 = vpop.f32.mrb[38].mxu0 }
 0x141   :  { %v4779_v54 = vadd.f32 %v4778_v52, %v4777_v45  ;;  %v4780_v55 = vpop.f32.mrb[38].mxu1  ;;  %v4717_v56 = vpop.f32.mrb[39].mxu0  ;;  %5218 = vmatpush3.bf16.msra.mxu0 %v5825_v26  ;;  %v5819_v26 = vld [vmem:[%s7394_s0 + $0x5c4] ss:$100 sps:$4 sm:$0xff]  }
 0x142   :  { %v3068_v58 = vadd.f32 %v4715_v50, %v6755_v49  ;;  %v4718_v59 = vadd.f32 %v4717_v56, %v4716_v53  ;;  %v4781_v60 = vpop.f32.mrb[39].mxu1  ;;  %5282 = vmatpush3.bf16.msra.mxu1 %v5826_v40  ;;  %5347 = vmatprep.subr.bf16.mxu0 %v6969_v29  ;;  %v5801_v49 = vld [vmem:[%s7394_s0 + $0x428] ss:$100 sps:$4 sm:$0xff]  }
 0x143   :  { %v4782_v61 = vadd.f32 %v4781_v60, %v4780_v55  ;;  %3672 = vmatmul.mubr.bf16.gmra.mrb[144].mxu0 %v5791_v39  ;;  %5379 = vmatprep.subr.bf16.mxu1 %v6969_v29  ;;  %v5822_v60 = vld [vmem:[%s7394_s0 + $0x5c0] ss:$100 sps:$4 sm:$0xff]  }
 0x144   :  { %v6983_v63 = vadd.f32 %v4779_v54, %v3068_v58  ;;  %v3071_v0 = vadd.f32 %v4718_v59, %v6757_v51  ;;  %3769 = vmatmul.mubr.bf16.gmra.mrb[144].mxu1 %v5792_v47  ;;  %3679 = vmatprep.mubr.bf16.mxu0 %v5797_v48  ;;  %v5807_v51 = vld [vmem:[%s7394_s0 + $0x4f4] ss:$100 sps:$4 sm:$0xff]  }
 0x145   :  { %3776 = vmatprep.mubr.bf16.mxu1 %v5799_v57 }
 0x146   :  { %v6986_v2 = vadd.f32 %v4782_v61, %v3071_v0  ;;  %v4719_v6 = vpop.f32.mrb[40].mxu0 }
 0x147   :  { %v4783_v8 = vpop.f32.mrb[40].mxu1  ;;  %v4720_v9 = vpop.f32.mrb[41].mxu0 }
 0x148   :  { %v4721_v11 = vadd.f32 %v4720_v9, %v4719_v6  ;;  %v4784_v12 = vpop.f32.mrb[41].mxu1  ;;  %v4722_v13 = vpop.f32.mrb[42].mxu0 }
 0x149   :  { %v4785_v14 = vadd.f32 %v4784_v12, %v4783_v8  ;;  %v4786_v15 = vpop.f32.mrb[42].mxu1  ;;  %v4723_v16 = vpop.f32.mrb[43].mxu0 }
 0x14a   :  { %v3076_v18 = vadd.f32 %v4721_v11, %v6771_v3  ;;  %v4724_v19 = vadd.f32 %v4723_v16, %v4722_v13  ;;  %v4787_v20 = vpop.f32.mrb[43].mxu1  ;;  %v5812_v3 = vld [vmem:[%s7394_s0 + $0x4f8] ss:$100 sps:$4 sm:$0xff]  }
 0x14b   :  { %v4788_v22 = vadd.f32 %v4787_v20, %v4786_v15  ;;  %3680 = vmatmul.mubr.bf16.gmra.mrb[148].mxu0 %v5801_v49  ;;  %v5832_v49 = vld [vmem:[%s7394_s0 + $0x5c] ss:$100 sps:$4 sm:$0xff]  }
 0x14c   :  { %v7001_v24 = vadd.f32 %v4785_v14, %v3076_v18  ;;  %v3079_v25 = vadd.f32 %v4724_v19, %v6773_v5  ;;  %3777 = vmatmul.mubr.bf16.gmra.mrb[148].mxu1 %v5802_v10  ;;  %3687 = vmatprep.mubr.bf16.mxu0 %v5807_v51  ;;  %v5817_v5 = vld [vmem:[%s7394_s0 + $0x5bc] ss:$100 sps:$4 sm:$0xff]  }
 0x14d   :  { %3784 = vmatprep.mubr.bf16.mxu1 %v5809_v17  ;;  %v5830_v20 = vld [vmem:[%s7394_s0 + $0x58] ss:$100 sps:$4 sm:$0xff]  }
 0x14e   :  { %v7007_v28 = vadd.f32 %v4788_v22, %v3079_v25  ;;  %v4725_v30 = vpop.f32.mrb[44].mxu0 }
 0x14f   :  { %v4789_v31 = vpop.f32.mrb[44].mxu1  ;;  %v4726_v33 = vpop.f32.mrb[45].mxu0 }
 0x150   :  { %v4727_v34 = vadd.f32 %v4726_v33, %v4725_v30  ;;  %v4790_v36 = vpop.f32.mrb[45].mxu1  ;;  %v4728_v38 = vpop.f32.mrb[46].mxu0  ;;  %v5836_v33 = vld [vmem:[%s7394_s0 + $0x124] ss:$100 sps:$4 sm:$0xff]  }
 0x151   :  { %v4791_v39 = vadd.f32 %v4790_v36, %v4789_v31  ;;  %v4792_v40 = vpop.f32.mrb[46].mxu1  ;;  %v4729_v44 = vpop.f32.mrb[47].mxu0 }
 0x152   :  { %v3084_v45 = vadd.f32 %v4727_v34, %v6787_v21  ;;  %v4730_v46 = vadd.f32 %v4729_v44, %v4728_v38  ;;  %v4793_v47 = vpop.f32.mrb[47].mxu1  ;;  %v5821_v21 = vld [vmem:[%s7394_s0 + $0x5b8] ss:$100 sps:$4 sm:$0xff]  }
 0x153   :  { %v4794_v48 = vadd.f32 %v4793_v47, %v4792_v40  ;;  %3688 = vmatmul.mubr.bf16.gmra.mrb[152].mxu0 %v5811_v27  ;;  %v5834_v27 = vld [vmem:[%s7394_s0 + $0x11c] ss:$100 sps:$4 sm:$0xff]  }
 0x154   :  { %v7019_v50 = vadd.f32 %v4791_v39, %v3084_v45  ;;  %v3087_v52 = vadd.f32 %v4730_v46, %v6789_v23  ;;  %3785 = vmatmul.mubr.bf16.gmra.mrb[152].mxu1 %v5812_v3  ;;  %3695 = vmatprep.mubr.bf16.mxu0 %v5817_v5  ;;  %v5829_v23 = vld [vmem:[%s7394_s0 + $0x54] ss:$100 sps:$4 sm:$0xff]   ;;  %v5840_v5 = vld [vmem:[%s7393_s1 + $0x608] sm:$0xff]   ;;  %v5839_v47 = vld [vmem:[%s7394_s0 + $0x120] ss:$100 sps:$4 sm:$0xff]  }
 0x155   :  { %3792 = vmatprep.mubr.bf16.mxu1 %v5819_v26 }
 0x156   :  { %v7022_v53 = vadd.f32 %v4794_v48, %v3087_v52  ;;  %v4731_v54 = vpop.f32.mrb[48].mxu0  ;;  %v5841_v48 = vld [vmem:[%s7394_s0 + $0x1e4] ss:$100 sps:$4 sm:$0xff]  }
 0x157   :  { %v4795_v55 = vpop.f32.mrb[48].mxu1  ;;  %v4732_v56 = vpop.f32.mrb[49].mxu0 }
 0x158   :  { %v4733_v57 = vadd.f32 %v4732_v56, %v4731_v54  ;;  %v4796_v58 = vpop.f32.mrb[49].mxu1  ;;  %v4734_v59 = vpop.f32.mrb[50].mxu0  ;;  %v5843_v56 = vld [vmem:[%s7394_s0 + $0x1ec] ss:$100 sps:$4 sm:$0xff]  }
 0x159   :  { %v4797_v61 = vadd.f32 %v4796_v58, %v4795_v55  ;;  %v4798_v0 = vpop.f32.mrb[50].mxu1  ;;  %v4735_v6 = vpop.f32.mrb[51].mxu0 }
 0x15a   :  { %v3092_v8 = vadd.f32 %v4733_v57, %v6803_v41  ;;  %v4736_v9 = vadd.f32 %v4735_v6, %v4734_v59  ;;  %v4799_v10 = vpop.f32.mrb[51].mxu1  ;;  %v5827_v41 = vld [vmem:[%s7394_s0 + $0x50] ss:$100 sps:$4 sm:$0xff]   ;;  %v5854_v59 = vld [vmem:[%s7393_s1 + $0x618] sm:$0xff]   ;;  %v5861_v6 = vld [vmem:[%s7393_s1 + $0x620] sm:$0xff]  }
 0x15b   :  { %v4800_v51 = vadd.f32 %v4799_v10, %v4798_v0  ;;  %3696 = vmatmul.mubr.bf16.gmra.mrb[156].mxu0 %v5821_v21 }
 0x15c   :  { %v7037_v11 = vadd.f32 %v4797_v61, %v3092_v8  ;;  %v3095_v12 = vadd.f32 %v4736_v9, %v6805_v43  ;;  %3793 = vmatmul.mubr.bf16.gmra.mrb[156].mxu1 %v5822_v60  ;;  %3833 = vmatprep.mubr.bf16.mxu0 %v5829_v23  ;;  %v5845_v9 = vld [vmem:[%s7394_s0 + $0x1e0] ss:$100 sps:$4 sm:$0xff]  }
 0x15d   :  { %3930 = vmatprep.mubr.bf16.mxu1 %v5832_v49 }
 0x15e   :  { %v7040_v13 = vadd.f32 %v4800_v51, %v3095_v12  ;;  %v4737_v14 = vpop.f32.mrb[52].mxu0  ;;  %v5846_v12 = vld [vmem:[%s7394_s0 + $0x1e8] ss:$100 sps:$4 sm:$0xff]  }
 0x15f   :  { %v4801_v15 = vpop.f32.mrb[52].mxu1  ;;  %v4738_v16 = vpop.f32.mrb[53].mxu0 }
 0x160   :  { %v4739_v17 = vadd.f32 %v4738_v16, %v4737_v14  ;;  %v4802_v18 = vpop.f32.mrb[53].mxu1  ;;  %v4740_v19 = vpop.f32.mrb[54].mxu0  ;;  %v5848_v14 = vld [vmem:[%s7394_s0 + $0x2ac] ss:$100 sps:$4 sm:$0xff]  }
 0x161   :  { %v4803_v43 = vadd.f32 %v4802_v18, %v4801_v15  ;;  %v4804_v22 = vpop.f32.mrb[54].mxu1  ;;  %v4741_v25 = vpop.f32.mrb[55].mxu0 }
 0x162   :  { %v3100_v30 = vadd.f32 %v4739_v17, %v6831_v1  ;;  %v4742_v3 = vadd.f32 %v4741_v25, %v4740_v19  ;;  %v4805_v31 = vpop.f32.mrb[55].mxu1  ;;  %v5847_v1 = vld [vmem:[%s7393_s1 + $0x610] sm:$0xff]  }
 0x163   :  { %v4806_v34 = vadd.f32 %v4805_v31, %v4804_v22  ;;  %3834 = vmatmul.mubr.bf16.vlgmr.msra.gmra.mrb[160].mxu0 %v5827_v41  ;;  %v5850_v17 = vld [vmem:[%s7394_s0 + $0x2b4] ss:$100 sps:$4 sm:$0xff]  }
 0x164   :  { %v7058_v36 = vadd.f32 %v4803_v43, %v3100_v30  ;;  %v3103_v38 = vadd.f32 %v4742_v3, %v6839_v7  ;;  %3931 = vmatmul.mubr.bf16.vlgmr.msra.gmra.mrb[160].mxu1 %v5830_v20  ;;  %5348 = vmatpush3.bf16.msra.mxu0 %v6969_v29  ;;  %v5838_v7 = vld [vmem:[%s7394_s0 + $0x118] ss:$100 sps:$4 sm:$0xff]   ;;  %v5868_v43 = vld [vmem:[%s7393_s1 + $0x628] sm:$0xff]   ;;  %v5875_v3 = vld [vmem:[%s7393_s1 + $0x630] sm:$0xff]  }
 0x165   :  { %5387 = vmatpush3.bf16.msra.mxu1 %v6969_v29  ;;  %3841 = vmatprep.mubr.bf16.mxu0 %v5834_v27 }
 0x166   :  { %v7066_v26 = vadd.f32 %v4806_v34, %v3103_v38  ;;  %v4743_v39 = vpop.f32.mrb[56].mxu0  ;;  %3938 = vmatprep.mubr.bf16.mxu1 %v5836_v33  ;;  %5349 = vmatprep.subr.bf16.mxu0 %v5840_v5 }
 0x167   :  { %v4807_v40 = vpop.f32.mrb[56].mxu1  ;;  %v4744_v44 = vpop.f32.mrb[57].mxu0  ;;  %5380 = vmatprep.subr.bf16.mxu1 %v5840_v5 }
 0x168   :  { %v4745_v45 = vadd.f32 %v4744_v44, %v4743_v39  ;;  %v4808_v46 = vpop.f32.mrb[57].mxu1  ;;  %v4746_v29 = vpop.f32.mrb[58].mxu0  ;;  %5350 = vmatpush3.bf16.msra.mxu0 %v5840_v5  ;;  %v5855_v39 = vld [vmem:[%s7394_s0 + $0x374] ss:$100 sps:$4 sm:$0xff]  }
 0x169   :  { %v4809_v52 = vadd.f32 %v4808_v46, %v4807_v40  ;;  %v4810_v54 = vpop.f32.mrb[58].mxu1  ;;  %v4747_v55 = vpop.f32.mrb[59].mxu0  ;;  %5388 = vmatpush3.bf16.msra.mxu1 %v5840_v5  ;;  %5351 = vmatprep.subr.bf16.mxu0 %v5847_v1  ;;  %v5852_v5 = vld [vmem:[%s7394_s0 + $0x2a8] ss:$100 sps:$4 sm:$0xff]  }
 0x16a   :  { %v3108_v21 = vadd.f32 %v4745_v45, %v6868_v32  ;;  %v4748_v57 = vadd.f32 %v4747_v55, %v4746_v29  ;;  %v4811_v58 = vpop.f32.mrb[59].mxu1  ;;  %5381 = vmatprep.subr.bf16.mxu1 %v5847_v1  ;;  %v5857_v45 = vld [vmem:[%s7394_s0 + $0x37c] ss:$100 sps:$4 sm:$0xff]  }
 0x16b   :  { %v4812_v60 = vadd.f32 %v4811_v58, %v4810_v54  ;;  %3842 = vmatmul.mubr.bf16.gmra.mrb[164].mxu0 %v5838_v7  ;;  %v5859_v58 = vld [vmem:[%s7394_s0 + $0x370] ss:$100 sps:$4 sm:$0xff]  }
 0x16c   :  { %v7084_v23 = vadd.f32 %v4809_v52, %v3108_v21  ;;  %v3111_v61 = vadd.f32 %v4748_v57, %v6873_v35  ;;  %3939 = vmatmul.mubr.bf16.gmra.mrb[164].mxu1 %v5839_v47  ;;  %3849 = vmatprep.mubr.bf16.mxu0 %v5841_v48  ;;  %v5882_v48 = vld [vmem:[%s7393_s1 + $0x638] sm:$0xff]  }
 0x16d   :  { %3946 = vmatprep.mubr.bf16.mxu1 %v5843_v56  ;;  %5352 = vmatpush3.bf16.msra.mxu0 %v5847_v1 }
 0x16e   :  { %v7087_v0 = vadd.f32 %v4812_v60, %v3111_v61  ;;  %v4749_v32 = vpop.f32.mrb[60].mxu0  ;;  %5389 = vmatpush3.bf16.msra.mxu1 %v5847_v1  ;;  %5353 = vmatprep.subr.bf16.mxu0 %v5854_v59  ;;  %v5853_v1 = vld [vmem:[%s7394_s0 + $0x2b0] ss:$100 sps:$4 sm:$0xff]  }
 0x16f   :  { %v4813_v49 = vpop.f32.mrb[60].mxu1  ;;  %v4750_v8 = vpop.f32.mrb[61].mxu0  ;;  %5382 = vmatprep.subr.bf16.mxu1 %v5854_v59 }
 0x170   :  { %v4751_v35 = vadd.f32 %v4750_v8, %v4749_v32  ;;  %v4814_v10 = vpop.f32.mrb[61].mxu1  ;;  %v4752_v51 = vpop.f32.mrb[62].mxu0  ;;  %v5862_v32 = vld [vmem:[%s7394_s0 + $0x43c] ss:$100 sps:$4 sm:$0xff]  }
 0x171   :  { %v4815_v15 = vadd.f32 %v4814_v10, %v4813_v49  ;;  %v4816_v16 = vpop.f32.mrb[62].mxu1  ;;  %v4753_v41 = vpop.f32.mrb[63].mxu0  ;;  %5354 = vmatpush3.bf16.msra.mxu0 %v5854_v59 }
 0x172   :  { %v3116_v18 = vadd.f32 %v4751_v35, %v6908_v62  ;;  %v4754_v19 = vadd.f32 %v4753_v41, %v4752_v51  ;;  %v4817_v20 = vpop.f32.mrb[63].mxu1  ;;  %5390 = vmatpush3.bf16.msra.mxu1 %v5854_v59  ;;  %5355 = vmatprep.subr.bf16.mxu0 %v5861_v6 }
 0x173   :  { %v4818_v22 = vadd.f32 %v4817_v20, %v4816_v16  ;;  %3850 = vmatmul.mubr.bf16.gmra.mrb[168].mxu0 %v5845_v9  ;;  %5383 = vmatprep.subr.bf16.mxu1 %v5861_v6  ;;  %v5864_v9 = vld [vmem:[%s7394_s0 + $0x444] ss:$100 sps:$4 sm:$0xff]  }
 0x174   :  { %v7108_v25 = vadd.f32 %v4815_v15, %v3116_v18  ;;  %v3119_v27 = vadd.f32 %v4754_v19, %v6916_v4  ;;  %3947 = vmatmul.mubr.bf16.gmra.mrb[168].mxu1 %v5846_v12  ;;  %3857 = vmatprep.mubr.bf16.mxu0 %v5848_v14 }
 0x175   :  { %3954 = vmatprep.mubr.bf16.mxu1 %v5850_v17  ;;  %5356 = vmatpush3.bf16.msra.mxu0 %v5861_v6 }
 0x176   :  { %v7111_v62 = vadd.f32 %v4818_v22, %v3119_v27  ;;  %v4835_v30 = vpop.f32.mrb[64].mxu0  ;;  %5391 = vmatpush3.bf16.msra.mxu1 %v5861_v6  ;;  %5357 = vmatprep.subr.bf16.mxu0 %v5868_v43  ;;  %v5867_v22 = vld [vmem:[%s7394_s0 + $0x440] ss:$100 sps:$4 sm:$0xff]  }
 0x177   :  { %v4899_v31 = vpop.f32.mrb[64].mxu1  ;;  %v4836_v33 = vpop.f32.mrb[65].mxu0  ;;  %5384 = vmatprep.subr.bf16.mxu1 %v5868_v43 }
 0x178   :  { %v4837_v4 = vadd.f32 %v4836_v33, %v4835_v30  ;;  %v4900_v34 = vpop.f32.mrb[65].mxu1  ;;  %v4838_v38 = vpop.f32.mrb[66].mxu0 }
 0x179   :  { %v4901_v40 = vadd.f32 %v4900_v34, %v4899_v31  ;;  %v4902_v44 = vpop.f32.mrb[66].mxu1  ;;  %v4839_v7 = vpop.f32.mrb[67].mxu0  ;;  %5358 = vmatpush3.bf16.msra.mxu0 %v5868_v43  ;;  %v5871_v31 = vld [vmem:[%s7394_s0 + $0x50c] ss:$100 sps:$4 sm:$0xff]  }
 0x17a   :  { %v3254_v46 = vadd.f32 %v4837_v4, %v6952_v37  ;;  %v4840_v29 = vadd.f32 %v4839_v7, %v4838_v38  ;;  %v4903_v47 = vpop.f32.mrb[67].mxu1  ;;  %5392 = vmatpush3.bf16.msra.mxu1 %v5868_v43  ;;  %5359 = vmatprep.subr.bf16.mxu0 %v5875_v3 }
 0x17b   :  { %v4904_v52 = vadd.f32 %v4903_v47, %v4902_v44  ;;  %3858 = vmatmul.mubr.bf16.gmra.mrb[172].mxu0 %v5852_v5  ;;  %5385 = vmatprep.subr.bf16.mxu1 %v5875_v3  ;;  %v5874_v47 = vld [vmem:[%s7394_s0 + $0x508] ss:$100 sps:$4 sm:$0xff]  }
 0x17c   :  { %v7132_v54 = vadd.f32 %v4901_v40, %v3254_v46  ;;  %v3257_v55 = vadd.f32 %v4840_v29, %v6964_v42  ;;  %3955 = vmatmul.mubr.bf16.gmra.mrb[172].mxu1 %v5853_v1  ;;  %3865 = vmatprep.mubr.bf16.mxu0 %v5855_v39  ;;  %v5860_v42 = vld [vmem:[%s7394_s0 + $0x378] ss:$100 sps:$4 sm:$0xff]  }
 0x17d   :  { %3962 = vmatprep.mubr.bf16.mxu1 %v5857_v45  ;;  %5360 = vmatpush3.bf16.msra.mxu0 %v5875_v3 }
 0x17e   :  { %v7135_v37 = vadd.f32 %v4904_v52, %v3257_v55  ;;  %v4841_v56 = vpop.f32.mrb[68].mxu0  ;;  %5393 = vmatpush3.bf16.msra.mxu1 %v5875_v3  ;;  %5361 = vmatprep.subr.bf16.mxu0 %v5882_v48 }
 0x17f   :  { %v4905_v21 = vpop.f32.mrb[68].mxu1  ;;  %v4842_v57 = vpop.f32.mrb[69].mxu0  ;;  %5386 = vmatprep.subr.bf16.mxu1 %v5882_v48 }
 0x180   :  { %v4843_v59 = vadd.f32 %v4842_v57, %v4841_v56  ;;  %v4906_v60 = vpop.f32.mrb[69].mxu1  ;;  %v4844_v61 = vpop.f32.mrb[70].mxu0  ;;  %v5878_v56 = vld [vmem:[%s7394_s0 + $0x5d4] ss:$100 sps:$4 sm:$0xff]  }
 0x181   :  { %v4907_v6 = vadd.f32 %v4906_v60, %v4905_v21  ;;  %v4908_v49 = vpop.f32.mrb[70].mxu1  ;;  %v4845_v8 = vpop.f32.mrb[71].mxu0  ;;  %5362 = vmatpush3.bf16.msra.mxu0 %v5882_v48 }
 0x182   :  { %v3262_v35 = vadd.f32 %v4843_v59, %v6983_v63  ;;  %v4846_v10 = vadd.f32 %v4845_v8, %v4844_v61  ;;  %v4909_v51 = vpop.f32.mrb[71].mxu1  ;;  %5394 = vmatpush3.bf16.msra.mxu1 %v5882_v48  ;;  %v5866_v63 = vld [vmem:[%s7394_s0 + $0x438] ss:$100 sps:$4 sm:$0xff]  }
 0x183   :  { %v4910_v12 = vadd.f32 %v4909_v51, %v4908_v49  ;;  %3866 = vmatmul.mubr.bf16.gmra.mrb[176].mxu0 %v5859_v58 }
 0x184   :  { %v7150_v14 = vadd.f32 %v4907_v6, %v3262_v35  ;;  %v3265_v15 = vadd.f32 %v4846_v10, %v6986_v2  ;;  %3963 = vmatmul.mubr.bf16.gmra.mrb[176].mxu1 %v5860_v42  ;;  %3873 = vmatprep.mubr.bf16.mxu0 %v5862_v32  ;;  %v5869_v2 = vld [vmem:[%s7394_s0 + $0x504] ss:$100 sps:$4 sm:$0xff]   ;;  %v5881_v10 = vld [vmem:[%s7394_s0 + $0x5d0] ss:$100 sps:$4 sm:$0xff]  }
 0x185   :  { %3970 = vmatprep.mubr.bf16.mxu1 %v5864_v9 }
 0x186   :  { %v7153_v16 = vadd.f32 %v4910_v12, %v3265_v15  ;;  %v4847_v41 = vpop.f32.mrb[72].mxu0 }
 0x187   :  { %v4911_v17 = vpop.f32.mrb[72].mxu1  ;;  %v4848_v18 = vpop.f32.mrb[73].mxu0 }
 0x188   :  { %v4849_v19 = vadd.f32 %v4848_v18, %v4847_v41  ;;  %v4912_v20 = vpop.f32.mrb[73].mxu1  ;;  %v4850_v43 = vpop.f32.mrb[74].mxu0  ;;  %v5884_v41 = vld [vmem:[%s7394_s0 + $0x380] ss:$100 sps:$4 sm:$0xff]  }
 0x189   :  { %v4913_v27 = vadd.f32 %v4912_v20, %v4911_v17  ;;  %v4914_v30 = vpop.f32.mrb[74].mxu1  ;;  %v4851_v3 = vpop.f32.mrb[75].mxu0 }
 0x18a   :  { %v3270_v33 = vadd.f32 %v4849_v19, %v7001_v24  ;;  %v4852_v5 = vadd.f32 %v4851_v3, %v4850_v43  ;;  %v4915_v4 = vpop.f32.mrb[75].mxu1  ;;  %v5873_v24 = vld [vmem:[%s7394_s0 + $0x500] ss:$100 sps:$4 sm:$0xff]  }
 0x18b   :  { %v4916_v34 = vadd.f32 %v4915_v4, %v4914_v30  ;;  %3874 = vmatmul.mubr.bf16.gmra.mrb[180].mxu0 %v5866_v63 }
 0x18c   :  { %v7168_v38 = vadd.f32 %v4913_v27, %v3270_v33  ;;  %v3273_v1 = vadd.f32 %v4852_v5, %v7007_v28  ;;  %3971 = vmatmul.mubr.bf16.gmra.mrb[180].mxu1 %v5867_v22  ;;  %3881 = vmatprep.mubr.bf16.mxu0 %v5869_v2  ;;  %v5876_v28 = vld [vmem:[%s7394_s0 + $0x5cc] ss:$100 sps:$4 sm:$0xff]  }
 0x18d   :  { %3978 = vmatprep.mubr.bf16.mxu1 %v5871_v31  ;;  %v5886_v5 = vld [vmem:[%s7394_s0 + $0x448] ss:$100 sps:$4 sm:$0xff]  }
 0x18e   :  { %v7171_v39 = vadd.f32 %v4916_v34, %v3273_v1  ;;  %v4853_v40 = vpop.f32.mrb[76].mxu0 }
 0x18f   :  { %v4917_v44 = vpop.f32.mrb[76].mxu1  ;;  %v4854_v7 = vpop.f32.mrb[77].mxu0 }
 0x190   :  { %v4855_v45 = vadd.f32 %v4854_v7, %v4853_v40  ;;  %v4918_v46 = vpop.f32.mrb[77].mxu1  ;;  %v4856_v29 = vpop.f32.mrb[78].mxu0  ;;  %v5888_v40 = vld [vmem:[%s7394_s0 + $0x510] ss:$100 sps:$4 sm:$0xff]  }
 0x191   :  { %v4919_v48 = vadd.f32 %v4918_v46, %v4917_v44  ;;  %v4920_v52 = vpop.f32.mrb[78].mxu1  ;;  %v4857_v55 = vpop.f32.mrb[79].mxu0 }
 0x192   :  { %v3278_v21 = vadd.f32 %v4855_v45, %v7019_v50  ;;  %v4858_v57 = vadd.f32 %v4857_v55, %v4856_v29  ;;  %v4921_v58 = vpop.f32.mrb[79].mxu1  ;;  %v5880_v50 = vld [vmem:[%s7394_s0 + $0x5c8] ss:$100 sps:$4 sm:$0xff]  }
 0x193   :  { %v4922_v59 = vadd.f32 %v4921_v58, %v4920_v52  ;;  %3882 = vmatmul.mubr.bf16.gmra.mrb[184].mxu0 %v5873_v24 }
 0x194   :  { %v7186_v60 = vadd.f32 %v4919_v48, %v3278_v21  ;;  %v3281_v61 = vadd.f32 %v4858_v57, %v7022_v53  ;;  %3979 = vmatmul.mubr.bf16.gmra.mrb[184].mxu1 %v5874_v47  ;;  %3889 = vmatprep.mubr.bf16.mxu0 %v5876_v28  ;;  %v5883_v53 = vld [vmem:[%s7394_s0 + $0x60] ss:$100 sps:$4 sm:$0xff]   ;;  %v5890_v57 = vld [vmem:[%s7394_s0 + $0x5d8] ss:$100 sps:$4 sm:$0xff]  }
 0x195   :  { %3986 = vmatprep.mubr.bf16.mxu1 %v5878_v56 }
 0x196   :  { %v7189_v42 = vadd.f32 %v4922_v59, %v3281_v61  ;;  %v4859_v32 = vpop.f32.mrb[80].mxu0 }
 0x197   :  { %v4923_v6 = vpop.f32.mrb[80].mxu1  ;;  %v4860_v49 = vpop.f32.mrb[81].mxu0 }
 0x198   :  { %v4861_v8 = vadd.f32 %v4860_v49, %v4859_v32  ;;  %v4924_v9 = vpop.f32.mrb[81].mxu1  ;;  %v4862_v35 = vpop.f32.mrb[82].mxu0 }
 0x199   :  { %v4925_v51 = vadd.f32 %v4924_v9, %v4923_v6  ;;  %v4926_v12 = vpop.f32.mrb[82].mxu1  ;;  %v4863_v15 = vpop.f32.mrb[83].mxu0 }
 0x19a   :  { %v3286_v17 = vadd.f32 %v4861_v8, %v7037_v11  ;;  %v4864_v18 = vadd.f32 %v4863_v15, %v4862_v35  ;;  %v4927_v63 = vpop.f32.mrb[83].mxu1  ;;  %v5885_v11 = vld [vmem:[%s7394_s0 + $0x128] ss:$100 sps:$4 sm:$0xff]  }
 0x19b   :  { %v4928_v19 = vadd.f32 %v4927_v63, %v4926_v12  ;;  %3890 = vmatmul.mubr.bf16.gmra.mrb[188].mxu0 %v5880_v50 }
 0x19c   :  { %v7204_v20 = vadd.f32 %v4925_v51, %v3286_v17  ;;  %v3289_v43 = vadd.f32 %v4864_v18, %v7040_v13  ;;  %3987 = vmatmul.mubr.bf16.gmra.mrb[188].mxu1 %v5881_v10  ;;  %5363 = vmatprep.mubr.bf16.mxu0 %v5883_v53  ;;  %v5887_v13 = vld [vmem:[%s7394_s0 + $0x1f0] ss:$100 sps:$4 sm:$0xff]  }
 0x19d   :  { %5371 = vmatprep.mubr.bf16.mxu1 %v5884_v41 }
 0x19e   :  { %v7207_v22 = vadd.f32 %v4928_v19, %v3289_v43  ;;  %v4865_v2 = vpop.f32.mrb[84].mxu0 }
 0x19f   :  { %v4929_v27 = vpop.f32.mrb[84].mxu1  ;;  %v4866_v30 = vpop.f32.mrb[85].mxu0 }
 0x1a0   :  { %v4867_v3 = vadd.f32 %v4866_v30, %v4865_v2  ;;  %v4930_v31 = vpop.f32.mrb[85].mxu1  ;;  %v4868_v33 = vpop.f32.mrb[86].mxu0 }
 0x1a1   :  { %v4931_v4 = vadd.f32 %v4930_v31, %v4929_v27  ;;  %v4932_v34 = vpop.f32.mrb[86].mxu1  ;;  %v4869_v1 = vpop.f32.mrb[87].mxu0 }
 0x1a2   :  { %v3294_v44 = vadd.f32 %v4867_v3, %v7058_v36  ;;  %v4870_v7 = vadd.f32 %v4869_v1, %v4868_v33  ;;  %v4933_v24 = vpop.f32.mrb[87].mxu1  ;;  %v5889_v36 = vld [vmem:[%s7394_s0 + $0x2b8] ss:$100 sps:$4 sm:$0xff]  }
 0x1a3   :  { %v4934_v45 = vadd.f32 %v4933_v24, %v4932_v34  ;;  %5364 = vmatmul.mubr.bf16.vlgmr.msra.gmra.mrb[192].mxu0 %v5885_v11 }
 0x1a4   :  { %v7222_v46 = vadd.f32 %v4931_v4, %v3294_v44  ;;  %v3297_v29 = vadd.f32 %v4870_v7, %v7066_v26  ;;  %5372 = vmatmul.mubr.bf16.vlgmr.msra.gmra.mrb[192].mxu1 %v5886_v5  ;;  %5367 = vmatprep.mubr.bf16.mxu0 %v5887_v13 }
 0x1a5   :  { %5375 = vmatprep.mubr.bf16.mxu1 %v5888_v40 }
 0x1a6   :  { %v7225_v47 = vadd.f32 %v4934_v45, %v3297_v29  ;;  %v4871_v28 = vpop.f32.mrb[88].mxu0 }
 0x1a7   :  { %v4935_v48 = vpop.f32.mrb[88].mxu1  ;;  %v4872_v52 = vpop.f32.mrb[89].mxu0 }
 0x1a8   :  { %v4873_v55 = vadd.f32 %v4872_v52, %v4871_v28  ;;  %v4936_v56 = vpop.f32.mrb[89].mxu1  ;;  %v4874_v21 = vpop.f32.mrb[90].mxu0 }
 0x1a9   :  { %v4937_v26 = vadd.f32 %v4936_v56, %v4935_v48  ;;  %v4938_v58 = vpop.f32.mrb[90].mxu1  ;;  %v4875_v59 = vpop.f32.mrb[91].mxu0 }
 0x1aa   :  { %v3302_v61 = vadd.f32 %v4873_v55, %v7084_v23  ;;  %v4876_v32 = vadd.f32 %v4875_v59, %v4874_v21  ;;  %v4939_v6 = vpop.f32.mrb[91].mxu1 }
 0x1ab   :  { %v4940_v49 = vadd.f32 %v4939_v6, %v4938_v58  ;;  %5368 = vmatmul.mubr.bf16.gmra.mrb[196].mxu0 %v5889_v36 }
 0x1ac   :  { %v7234_v50 = vadd.f32 %v4937_v26, %v3302_v61  ;;  %v3305_v8 = vadd.f32 %v4876_v32, %v7087_v0  ;;  %5376 = vmatmul.mubr.bf16.gmra.mrb[196].mxu1 %v5890_v57 }
 0x1ae   :  { %v7237_v9 = vadd.f32 %v4940_v49, %v3305_v8  ;;  %v4877_v35 = vpop.f32.mrb[92].mxu0 }
 0x1af   :  { %v4941_v10 = vpop.f32.mrb[92].mxu1  ;;  %v4878_v53 = vpop.f32.mrb[93].mxu0 }
 0x1b0   :  { %v4879_v51 = vadd.f32 %v4878_v53, %v4877_v35  ;;  %v4942_v12 = vpop.f32.mrb[93].mxu1  ;;  %v4880_v15 = vpop.f32.mrb[94].mxu0 }
 0x1b1   :  { %v4943_v41 = vadd.f32 %v4942_v12, %v4941_v10  ;;  %v4944_v17 = vpop.f32.mrb[94].mxu1  ;;  %v4881_v23 = vpop.f32.mrb[95].mxu0 }
 0x1b2   :  { %v3310_v18 = vadd.f32 %v4879_v51, %v7108_v25  ;;  %v4882_v63 = vadd.f32 %v4881_v23, %v4880_v15  ;;  %v4945_v19 = vpop.f32.mrb[95].mxu1 }
 0x1b3   :  { %v4946_v43 = vadd.f32 %v4945_v19, %v4944_v17 }
 0x1b4   :  { %v7240_v2 = vadd.f32 %v4943_v41, %v3310_v18  ;;  %v3313_v0 = vadd.f32 %v4882_v63, %v7111_v62 }
 0x1b6   :  { %v7243_v27 = vadd.f32 %v4946_v43, %v3313_v0  ;;  %v4963_v30 = vpop.f32.mrb[96].mxu0 }
 0x1b7   :  { %v5027_v11 = vpop.f32.mrb[96].mxu1  ;;  %v4964_v3 = vpop.f32.mrb[97].mxu0 }
 0x1b8   :  { %v4965_v31 = vadd.f32 %v4964_v3, %v4963_v30  ;;  %v5028_v33 = vpop.f32.mrb[97].mxu1  ;;  %v4966_v5 = vpop.f32.mrb[98].mxu0 }
 0x1b9   :  { %v5029_v13 = vadd.f32 %v5028_v33, %v5027_v11  ;;  %v5030_v4 = vpop.f32.mrb[98].mxu1  ;;  %v4967_v34 = vpop.f32.mrb[99].mxu0 }
 0x1ba   :  { %v3448_v25 = vadd.f32 %v4965_v31, %v7132_v54  ;;  %v4968_v1 = vadd.f32 %v4967_v34, %v4966_v5  ;;  %v5031_v40 = vpop.f32.mrb[99].mxu1 }
 0x1bb   :  { %v5032_v44 = vadd.f32 %v5031_v40, %v5030_v4 }
 0x1bc   :  { %v7246_v7 = vadd.f32 %v5029_v13, %v3448_v25  ;;  %v3451_v62 = vadd.f32 %v4968_v1, %v7135_v37 }
 0x1be   :  { %v7249_v24 = vadd.f32 %v5032_v44, %v3451_v62  ;;  %v4969_v45 = vpop.f32.mrb[100].mxu0 }
 0x1bf   :  { %v5033_v29 = vpop.f32.mrb[100].mxu1  ;;  %v4970_v28 = vpop.f32.mrb[101].mxu0 }
 0x1c0   :  { %v4971_v48 = vadd.f32 %v4970_v28, %v4969_v45  ;;  %v5034_v52 = vpop.f32.mrb[101].mxu1  ;;  %v4972_v36 = vpop.f32.mrb[102].mxu0 }
 0x1c1   :  { %v5035_v55 = vadd.f32 %v5034_v52, %v5033_v29  ;;  %v5036_v56 = vpop.f32.mrb[102].mxu1  ;;  %v4973_v21 = vpop.f32.mrb[103].mxu0 }
 0x1c2   :  { %v3456_v54 = vadd.f32 %v4971_v48, %v7150_v14  ;;  %v4974_v57 = vadd.f32 %v4973_v21, %v4972_v36  ;;  %v5037_v26 = vpop.f32.mrb[103].mxu1 }
 0x1c3   :  { %v5038_v58 = vadd.f32 %v5037_v26, %v5036_v56 }
 0x1c4   :  { %v7252_v59 = vadd.f32 %v5035_v55, %v3456_v54  ;;  %v3459_v37 = vadd.f32 %v4974_v57, %v7153_v16 }
 0x1c6   :  { %v7255_v61 = vadd.f32 %v5038_v58, %v3459_v37  ;;  %v4975_v32 = vpop.f32.mrb[104].mxu0 }
 0x1c7   :  { %v5039_v6 = vpop.f32.mrb[104].mxu1  ;;  %v4976_v49 = vpop.f32.mrb[105].mxu0 }
 0x1c8   :  { %v4977_v8 = vadd.f32 %v4976_v49, %v4975_v32  ;;  %v5040_v35 = vpop.f32.mrb[105].mxu1  ;;  %v4978_v10 = vpop.f32.mrb[106].mxu0 }
 0x1c9   :  { %v5041_v53 = vadd.f32 %v5040_v35, %v5039_v6  ;;  %v5042_v51 = vpop.f32.mrb[106].mxu1  ;;  %v4979_v12 = vpop.f32.mrb[107].mxu0 }
 0x1ca   :  { %v3464_v14 = vadd.f32 %v4977_v8, %v7168_v38  ;;  %v4980_v15 = vadd.f32 %v4979_v12, %v4978_v10  ;;  %v5043_v41 = vpop.f32.mrb[107].mxu1 }
 0x1cb   :  { %v5044_v17 = vadd.f32 %v5043_v41, %v5042_v51 }
 0x1cc   :  { %v7258_v23 = vadd.f32 %v5041_v53, %v3464_v14  ;;  %v3467_v16 = vadd.f32 %v4980_v15, %v7171_v39 }
 0x1ce   :  { %v7261_v18 = vadd.f32 %v5044_v17, %v3467_v16  ;;  %v4981_v63 = vpop.f32.mrb[108].mxu0 }
 0x1cf   :  { %v5045_v19 = vpop.f32.mrb[108].mxu1  ;;  %v4982_v43 = vpop.f32.mrb[109].mxu0 }
 0x1d0   :  { %v4983_v0 = vadd.f32 %v4982_v43, %v4981_v63  ;;  %v5046_v30 = vpop.f32.mrb[109].mxu1  ;;  %v4984_v11 = vpop.f32.mrb[110].mxu0 }
 0x1d1   :  { %v5047_v3 = vadd.f32 %v5046_v30, %v5045_v19  ;;  %v5048_v31 = vpop.f32.mrb[110].mxu1  ;;  %v4985_v33 = vpop.f32.mrb[111].mxu0 }
 0x1d2   :  { %v3472_v38 = vadd.f32 %v4983_v0, %v7186_v60  ;;  %v4986_v5 = vadd.f32 %v4985_v33, %v4984_v11  ;;  %v5049_v13 = vpop.f32.mrb[111].mxu1 }
 0x1d3   :  { %v5050_v4 = vadd.f32 %v5049_v13, %v5048_v31 }
 0x1d4   :  { %v7264_v34 = vadd.f32 %v5047_v3, %v3472_v38  ;;  %v3475_v39 = vadd.f32 %v4986_v5, %v7189_v42 }
 0x1d6   :  { %v7267_v25 = vadd.f32 %v5050_v4, %v3475_v39  ;;  %v4987_v1 = vpop.f32.mrb[112].mxu0 }
 0x1d7   :  { %v5051_v40 = vpop.f32.mrb[112].mxu1  ;;  %v4988_v44 = vpop.f32.mrb[113].mxu0 }
 0x1d8   :  { %v4989_v62 = vadd.f32 %v4988_v44, %v4987_v1  ;;  %v5052_v45 = vpop.f32.mrb[113].mxu1  ;;  %v4990_v29 = vpop.f32.mrb[114].mxu0 }
 0x1d9   :  { %v5053_v28 = vadd.f32 %v5052_v45, %v5051_v40  ;;  %v5054_v48 = vpop.f32.mrb[114].mxu1  ;;  %v4991_v52 = vpop.f32.mrb[115].mxu0 }
 0x1da   :  { %v3480_v60 = vadd.f32 %v4989_v62, %v7204_v20  ;;  %v4992_v36 = vadd.f32 %v4991_v52, %v4990_v29  ;;  %v5055_v55 = vpop.f32.mrb[115].mxu1 }
 0x1db   :  { %v5056_v56 = vadd.f32 %v5055_v55, %v5054_v48 }
 0x1dc   :  { %v7270_v21 = vadd.f32 %v5053_v28, %v3480_v60  ;;  %v3483_v42 = vadd.f32 %v4992_v36, %v7207_v22 }
 0x1de   :  { %v7273_v54 = vadd.f32 %v5056_v56, %v3483_v42  ;;  %v4993_v57 = vpop.f32.mrb[116].mxu0 }
 0x1df   :  { %v5057_v26 = vpop.f32.mrb[116].mxu1  ;;  %v4994_v58 = vpop.f32.mrb[117].mxu0 }
 0x1e0   :  { %v4995_v37 = vadd.f32 %v4994_v58, %v4993_v57  ;;  %v5058_v32 = vpop.f32.mrb[117].mxu1  ;;  %v4996_v6 = vpop.f32.mrb[118].mxu0 }
 0x1e1   :  { %v5059_v49 = vadd.f32 %v5058_v32, %v5057_v26  ;;  %v5060_v8 = vpop.f32.mrb[118].mxu1  ;;  %v4997_v35 = vpop.f32.mrb[119].mxu0 }
 0x1e2   :  { %v3488_v20 = vadd.f32 %v4995_v37, %v7222_v46  ;;  %v4998_v10 = vadd.f32 %v4997_v35, %v4996_v6  ;;  %v5061_v53 = vpop.f32.mrb[119].mxu1 }
 0x1e3   :  { %v5062_v51 = vadd.f32 %v5061_v53, %v5060_v8 }
 0x1e4   :  { %v7276_v12 = vadd.f32 %v5059_v49, %v3488_v20  ;;  %v3491_v22 = vadd.f32 %v4998_v10, %v7225_v47 }
 0x1e6   :  { %v7279_v14 = vadd.f32 %v5062_v51, %v3491_v22  ;;  %v4999_v15 = vpop.f32.mrb[120].mxu0 }
 0x1e7   :  { %v5063_v41 = vpop.f32.mrb[120].mxu1  ;;  %v5000_v17 = vpop.f32.mrb[121].mxu0 }
 0x1e8   :  { %v5001_v16 = vadd.f32 %v5000_v17, %v4999_v15  ;;  %v5064_v63 = vpop.f32.mrb[121].mxu1  ;;  %v5002_v19 = vpop.f32.mrb[122].mxu0 }
 0x1e9   :  { %v5065_v43 = vadd.f32 %v5064_v63, %v5063_v41  ;;  %v5066_v0 = vpop.f32.mrb[122].mxu1  ;;  %v5003_v30 = vpop.f32.mrb[123].mxu0 }
 0x1ea   :  { %v3496_v46 = vadd.f32 %v5001_v16, %v7234_v50  ;;  %v5004_v11 = vadd.f32 %v5003_v30, %v5002_v19  ;;  %v5067_v3 = vpop.f32.mrb[123].mxu1 }
 0x1eb   :  { %v5068_v31 = vadd.f32 %v5067_v3, %v5066_v0 }
 0x1ec   :  { %v7282_v33 = vadd.f32 %v5065_v43, %v3496_v46  ;;  %v3499_v47 = vadd.f32 %v5004_v11, %v7237_v9 }
 0x1ee   :  { %v7285_v38 = vadd.f32 %v5068_v31, %v3499_v47  ;;  %v5005_v5 = vpop.f32.mrb[124].mxu0 }
 0x1ef   :  { %v5069_v13 = vpop.f32.mrb[124].mxu1  ;;  %v5006_v4 = vpop.f32.mrb[125].mxu0 }
 0x1f0   :  { %v5007_v39 = vadd.f32 %v5006_v4, %v5005_v5  ;;  %v5070_v1 = vpop.f32.mrb[125].mxu1  ;;  %v5008_v40 = vpop.f32.mrb[126].mxu0 }
 0x1f1   :  { %v5071_v44 = vadd.f32 %v5070_v1, %v5069_v13  ;;  %v5072_v62 = vpop.f32.mrb[126].mxu1  ;;  %v5009_v45 = vpop.f32.mrb[127].mxu0 }
 0x1f2   :  { %v3504_v50 = vadd.f32 %v5007_v39, %v7240_v2  ;;  %v5010_v29 = vadd.f32 %v5009_v45, %v5008_v40  ;;  %v5073_v28 = vpop.f32.mrb[127].mxu1 }
 0x1f3   :  { %v5074_v48 = vadd.f32 %v5073_v28, %v5072_v62 }
 0x1f4   :  { %v7288_v52 = vadd.f32 %v5071_v44, %v3504_v50  ;;  %v3507_v9 = vadd.f32 %v5010_v29, %v7243_v27 }
 0x1f6   :  { %v7291_v60 = vadd.f32 %v5074_v48, %v3507_v9  ;;  %v5091_v36 = vpop.f32.mrb[128].mxu0 }
 0x1f7   :  { %v5155_v55 = vpop.f32.mrb[128].mxu1  ;;  %v5092_v56 = vpop.f32.mrb[129].mxu0 }
 0x1f8   :  { %v5093_v42 = vadd.f32 %v5092_v56, %v5091_v36  ;;  %v5156_v57 = vpop.f32.mrb[129].mxu1  ;;  %v5094_v26 = vpop.f32.mrb[130].mxu0 }
 0x1f9   :  { %v5157_v58 = vadd.f32 %v5156_v57, %v5155_v55  ;;  %v5158_v37 = vpop.f32.mrb[130].mxu1  ;;  %v5095_v32 = vpop.f32.mrb[131].mxu0 }
 0x1fa   :  { %v3642_v2 = vadd.f32 %v5093_v42, %v7246_v7  ;;  %v5096_v6 = vadd.f32 %v5095_v32, %v5094_v26  ;;  %v5159_v49 = vpop.f32.mrb[131].mxu1 }
 0x1fb   :  { %v5160_v8 = vadd.f32 %v5159_v49, %v5158_v37 }
 0x1fc   :  { %v7294_v35 = vadd.f32 %v5157_v58, %v3642_v2  ;;  %v3645_v27 = vadd.f32 %v5096_v6, %v7249_v24 }
 0x1fe   :  { %v7297_v20 = vadd.f32 %v5160_v8, %v3645_v27  ;;  %v5097_v10 = vpop.f32.mrb[132].mxu0 }
 0x1ff   :  { %v5161_v53 = vpop.f32.mrb[132].mxu1  ;;  %v5098_v51 = vpop.f32.mrb[133].mxu0 }
 0x200   :  { %v5099_v22 = vadd.f32 %v5098_v51, %v5097_v10  ;;  %v5162_v15 = vpop.f32.mrb[133].mxu1  ;;  %v5100_v41 = vpop.f32.mrb[134].mxu0 }
 0x201   :  { %v5163_v17 = vadd.f32 %v5162_v15, %v5161_v53  ;;  %v5164_v16 = vpop.f32.mrb[134].mxu1  ;;  %v5101_v63 = vpop.f32.mrb[135].mxu0 }
 0x202   :  { %v3650_v7 = vadd.f32 %v5099_v22, %v7252_v59  ;;  %v5102_v19 = vadd.f32 %v5101_v63, %v5100_v41  ;;  %v5165_v43 = vpop.f32.mrb[135].mxu1 }
 0x203   :  { %v5166_v0 = vadd.f32 %v5165_v43, %v5164_v16 }
 0x204   :  { %v7300_v30 = vadd.f32 %v5163_v17, %v3650_v7  ;;  %v3653_v24 = vadd.f32 %v5102_v19, %v7255_v61 }
 0x206   :  { %v7303_v46 = vadd.f32 %v5166_v0, %v3653_v24  ;;  %v5103_v11 = vpop.f32.mrb[136].mxu0 }
 0x207   :  { %v5167_v3 = vpop.f32.mrb[136].mxu1  ;;  %v5104_v31 = vpop.f32.mrb[137].mxu0 }
 0x208   :  { %v5105_v47 = vadd.f32 %v5104_v31, %v5103_v11  ;;  %v5168_v5 = vpop.f32.mrb[137].mxu1  ;;  %v5106_v13 = vpop.f32.mrb[138].mxu0 }
 0x209   :  { %v5169_v4 = vadd.f32 %v5168_v5, %v5167_v3  ;;  %v5170_v39 = vpop.f32.mrb[138].mxu1  ;;  %v5107_v1 = vpop.f32.mrb[139].mxu0 }
 0x20a   :  { %v3658_v59 = vadd.f32 %v5105_v47, %v7258_v23  ;;  %v5108_v40 = vadd.f32 %v5107_v1, %v5106_v13  ;;  %v5171_v44 = vpop.f32.mrb[139].mxu1 }
 0x20b   :  { %v5172_v62 = vadd.f32 %v5171_v44, %v5170_v39 }
 0x20c   :  { %v7306_v45 = vadd.f32 %v5169_v4, %v3658_v59  ;;  %v3661_v61 = vadd.f32 %v5108_v40, %v7261_v18 }
 0x20e   :  { %v7309_v50 = vadd.f32 %v5172_v62, %v3661_v61  ;;  %v5109_v29 = vpop.f32.mrb[140].mxu0 }
 0x20f   :  { %v5173_v28 = vpop.f32.mrb[140].mxu1  ;;  %v5110_v48 = vpop.f32.mrb[141].mxu0 }
 0x210   :  { %v5111_v9 = vadd.f32 %v5110_v48, %v5109_v29  ;;  %v5174_v36 = vpop.f32.mrb[141].mxu1  ;;  %v5112_v55 = vpop.f32.mrb[142].mxu0 }
 0x211   :  { %v5175_v56 = vadd.f32 %v5174_v36, %v5173_v28  ;;  %v5176_v42 = vpop.f32.mrb[142].mxu1  ;;  %v5113_v57 = vpop.f32.mrb[143].mxu0 }
 0x212   :  { %v3666_v23 = vadd.f32 %v5111_v9, %v7264_v34  ;;  %v5114_v26 = vadd.f32 %v5113_v57, %v5112_v55  ;;  %v5177_v58 = vpop.f32.mrb[143].mxu1 }
 0x213   :  { %v5178_v37 = vadd.f32 %v5177_v58, %v5176_v42 }
 0x214   :  { %v7312_v32 = vadd.f32 %v5175_v56, %v3666_v23  ;;  %v3669_v18 = vadd.f32 %v5114_v26, %v7267_v25 }
 0x216   :  { %v7315_v2 = vadd.f32 %v5178_v37, %v3669_v18  ;;  %v5115_v6 = vpop.f32.mrb[144].mxu0 }
 0x217   :  { %v5179_v49 = vpop.f32.mrb[144].mxu1  ;;  %v5116_v8 = vpop.f32.mrb[145].mxu0 }
 0x218   :  { %v5117_v27 = vadd.f32 %v5116_v8, %v5115_v6  ;;  %v5180_v10 = vpop.f32.mrb[145].mxu1  ;;  %v5118_v53 = vpop.f32.mrb[146].mxu0 }
 0x219   :  { %v5181_v51 = vadd.f32 %v5180_v10, %v5179_v49  ;;  %v5182_v22 = vpop.f32.mrb[146].mxu1  ;;  %v5119_v15 = vpop.f32.mrb[147].mxu0 }
 0x21a   :  { %v3674_v34 = vadd.f32 %v5117_v27, %v7270_v21  ;;  %v5120_v41 = vadd.f32 %v5119_v15, %v5118_v53  ;;  %v5183_v17 = vpop.f32.mrb[147].mxu1 }
 0x21b   :  { %v5184_v16 = vadd.f32 %v5183_v17, %v5182_v22 }
 0x21c   :  { %v7318_v63 = vadd.f32 %v5181_v51, %v3674_v34  ;;  %v3677_v25 = vadd.f32 %v5120_v41, %v7273_v54 }
 0x21e   :  { %v7321_v7 = vadd.f32 %v5184_v16, %v3677_v25  ;;  %v5121_v19 = vpop.f32.mrb[148].mxu0 }
 0x21f   :  { %v5185_v43 = vpop.f32.mrb[148].mxu1  ;;  %v5122_v0 = vpop.f32.mrb[149].mxu0 }
 0x220   :  { %v5123_v24 = vadd.f32 %v5122_v0, %v5121_v19  ;;  %v5186_v11 = vpop.f32.mrb[149].mxu1  ;;  %v5124_v3 = vpop.f32.mrb[150].mxu0 }
 0x221   :  { %v5187_v31 = vadd.f32 %v5186_v11, %v5185_v43  ;;  %v5188_v47 = vpop.f32.mrb[150].mxu1  ;;  %v5125_v5 = vpop.f32.mrb[151].mxu0 }
 0x222   :  { %v3682_v21 = vadd.f32 %v5123_v24, %v7276_v12  ;;  %v5126_v13 = vadd.f32 %v5125_v5, %v5124_v3  ;;  %v5189_v4 = vpop.f32.mrb[151].mxu1 }
 0x223   :  { %v5190_v39 = vadd.f32 %v5189_v4, %v5188_v47 }
 0x224   :  { %v7324_v1 = vadd.f32 %v5187_v31, %v3682_v21  ;;  %v3685_v54 = vadd.f32 %v5126_v13, %v7279_v14 }
 0x226   :  { %v7327_v59 = vadd.f32 %v5190_v39, %v3685_v54  ;;  %v5127_v40 = vpop.f32.mrb[152].mxu0 }
 0x227   :  { %v5191_v44 = vpop.f32.mrb[152].mxu1  ;;  %v5128_v62 = vpop.f32.mrb[153].mxu0 }
 0x228   :  { %v5129_v61 = vadd.f32 %v5128_v62, %v5127_v40  ;;  %v5192_v29 = vpop.f32.mrb[153].mxu1  ;;  %v5130_v28 = vpop.f32.mrb[154].mxu0 }
 0x229   :  { %v5193_v48 = vadd.f32 %v5192_v29, %v5191_v44  ;;  %v5194_v9 = vpop.f32.mrb[154].mxu1  ;;  %v5131_v36 = vpop.f32.mrb[155].mxu0 }
 0x22a   :  { %v3690_v12 = vadd.f32 %v5129_v61, %v7282_v33  ;;  %v5132_v55 = vadd.f32 %v5131_v36, %v5130_v28  ;;  %v5195_v56 = vpop.f32.mrb[155].mxu1 }
 0x22b   :  { %v5196_v42 = vadd.f32 %v5195_v56, %v5194_v9 }
 0x22c   :  { %v7330_v57 = vadd.f32 %v5193_v48, %v3690_v12  ;;  %v3693_v14 = vadd.f32 %v5132_v55, %v7285_v38 }
 0x22e   :  { %v7333_v23 = vadd.f32 %v5196_v42, %v3693_v14  ;;  %v5133_v26 = vpop.f32.mrb[156].mxu0 }
 0x22f   :  { %v5197_v58 = vpop.f32.mrb[156].mxu1  ;;  %v5134_v37 = vpop.f32.mrb[157].mxu0 }
 0x230   :  { %v5135_v18 = vadd.f32 %v5134_v37, %v5133_v26  ;;  %v5198_v6 = vpop.f32.mrb[157].mxu1  ;;  %v5136_v49 = vpop.f32.mrb[158].mxu0 }
 0x231   :  { %v5199_v8 = vadd.f32 %v5198_v6, %v5197_v58  ;;  %v5200_v27 = vpop.f32.mrb[158].mxu1  ;;  %v5137_v10 = vpop.f32.mrb[159].mxu0 }
 0x232   :  { %v3698_v33 = vadd.f32 %v5135_v18, %v7288_v52  ;;  %v5138_v53 = vadd.f32 %v5137_v10, %v5136_v49  ;;  %v5201_v51 = vpop.f32.mrb[159].mxu1 }
 0x233   :  { %v5202_v22 = vadd.f32 %v5201_v51, %v5200_v27 }
 0x234   :  { %v7336_v15 = vadd.f32 %v5199_v8, %v3698_v33  ;;  %v3701_v38 = vadd.f32 %v5138_v53, %v7291_v60 }
 0x236   :  { %v7339_v34 = vadd.f32 %v5202_v22, %v3701_v38  ;;  %v5219_v41 = vpop.f32.mrb[160].mxu0 }
 0x237   :  { %v5283_v17 = vpop.f32.mrb[160].mxu1  ;;  %v5220_v16 = vpop.f32.mrb[161].mxu0 }
 0x238   :  { %v5221_v25 = vadd.f32 %v5220_v16, %v5219_v41  ;;  %v5284_v19 = vpop.f32.mrb[161].mxu1  ;;  %v5222_v43 = vpop.f32.mrb[162].mxu0 }
 0x239   :  { %v5285_v0 = vadd.f32 %v5284_v19, %v5283_v17  ;;  %v5286_v24 = vpop.f32.mrb[162].mxu1  ;;  %v5223_v11 = vpop.f32.mrb[163].mxu0 }
 0x23a   :  { %v3836_v52 = vadd.f32 %v5221_v25, %v7294_v35  ;;  %v5224_v3 = vadd.f32 %v5223_v11, %v5222_v43  ;;  %v5287_v31 = vpop.f32.mrb[163].mxu1 }
 0x23b   :  { %v5288_v47 = vadd.f32 %v5287_v31, %v5286_v24 }
 0x23c   :  { %v3839_v5 = vadd.f32 %v5224_v3, %v7297_v20  ;;  %v7343_v21 = vadd.f32 %v5285_v0, %v3836_v52 }
 0x23e   :  { %v5225_v60 = vpop.f32.mrb[164].mxu0  ;;  %v7345_v13 = vadd.f32 %v5288_v47, %v3839_v5 }
 0x23f   :  { %v5289_v4 = vpop.f32.mrb[164].mxu1  ;;  %v5226_v39 = vpop.f32.mrb[165].mxu0 }
 0x240   :  { %v5227_v54 = vadd.f32 %v5226_v39, %v5225_v60  ;;  %v5290_v40 = vpop.f32.mrb[165].mxu1  ;;  %v5228_v44 = vpop.f32.mrb[166].mxu0 }
 0x241   :  { %v5291_v62 = vadd.f32 %v5290_v40, %v5289_v4  ;;  %v5292_v61 = vpop.f32.mrb[166].mxu1  ;;  %v5229_v29 = vpop.f32.mrb[167].mxu0 }
 0x242   :  { %v3844_v35 = vadd.f32 %v5227_v54, %v7300_v30  ;;  %v5230_v28 = vadd.f32 %v5229_v29, %v5228_v44  ;;  %v5293_v48 = vpop.f32.mrb[167].mxu1 }
 0x243   :  { %v5294_v9 = vadd.f32 %v5293_v48, %v5292_v61 }
 0x244   :  { %v3847_v20 = vadd.f32 %v5230_v28, %v7303_v46  ;;  %v7349_v36 = vadd.f32 %v5291_v62, %v3844_v35 }
 0x246   :  { %v5231_v12 = vpop.f32.mrb[168].mxu0  ;;  %v7351_v55 = vadd.f32 %v5294_v9, %v3847_v20 }
 0x247   :  { %v5295_v56 = vpop.f32.mrb[168].mxu1  ;;  %v5232_v42 = vpop.f32.mrb[169].mxu0 }
 0x248   :  { %v5233_v14 = vadd.f32 %v5232_v42, %v5231_v12  ;;  %v5296_v26 = vpop.f32.mrb[169].mxu1  ;;  %v5234_v58 = vpop.f32.mrb[170].mxu0 }
 0x249   :  { %v5297_v37 = vadd.f32 %v5296_v26, %v5295_v56  ;;  %v5298_v18 = vpop.f32.mrb[170].mxu1  ;;  %v5235_v6 = vpop.f32.mrb[171].mxu0 }
 0x24a   :  { %v3852_v30 = vadd.f32 %v5233_v14, %v7306_v45  ;;  %v5236_v49 = vadd.f32 %v5235_v6, %v5234_v58  ;;  %v5299_v8 = vpop.f32.mrb[171].mxu1 }
 0x24b   :  { %v5300_v27 = vadd.f32 %v5299_v8, %v5298_v18 }
 0x24c   :  { %v3855_v46 = vadd.f32 %v5236_v49, %v7309_v50  ;;  %v7355_v10 = vadd.f32 %v5297_v37, %v3852_v30 }
 0x24e   :  { %v5237_v33 = vpop.f32.mrb[172].mxu0  ;;  %v7357_v53 = vadd.f32 %v5300_v27, %v3855_v46 }
 0x24f   :  { %v5301_v51 = vpop.f32.mrb[172].mxu1  ;;  %v5238_v22 = vpop.f32.mrb[173].mxu0 }
 0x250   :  { %v5239_v38 = vadd.f32 %v5238_v22, %v5237_v33  ;;  %v5302_v41 = vpop.f32.mrb[173].mxu1  ;;  %v5240_v17 = vpop.f32.mrb[174].mxu0 }
 0x251   :  { %v5303_v16 = vadd.f32 %v5302_v41, %v5301_v51  ;;  %v5304_v25 = vpop.f32.mrb[174].mxu1  ;;  %v5241_v19 = vpop.f32.mrb[175].mxu0 }
 0x252   :  { %v3860_v45 = vadd.f32 %v5239_v38, %v7312_v32  ;;  %v5242_v43 = vadd.f32 %v5241_v19, %v5240_v17  ;;  %v5305_v0 = vpop.f32.mrb[175].mxu1 }
 0x253   :  { %v5306_v24 = vadd.f32 %v5305_v0, %v5304_v25 }
 0x254   :  { %v3863_v50 = vadd.f32 %v5242_v43, %v7315_v2  ;;  %v7361_v11 = vadd.f32 %v5303_v16, %v3860_v45 }
 0x256   :  { %v5243_v52 = vpop.f32.mrb[176].mxu0  ;;  %v7363_v3 = vadd.f32 %v5306_v24, %v3863_v50 }
 0x257   :  { %v5307_v31 = vpop.f32.mrb[176].mxu1  ;;  %v5244_v47 = vpop.f32.mrb[177].mxu0 }
 0x258   :  { %v5245_v5 = vadd.f32 %v5244_v47, %v5243_v52  ;;  %v5308_v60 = vpop.f32.mrb[177].mxu1  ;;  %v5246_v4 = vpop.f32.mrb[178].mxu0 }
 0x259   :  { %v5309_v39 = vadd.f32 %v5308_v60, %v5307_v31  ;;  %v5310_v54 = vpop.f32.mrb[178].mxu1  ;;  %v5247_v40 = vpop.f32.mrb[179].mxu0 }
 0x25a   :  { %v3868_v32 = vadd.f32 %v5245_v5, %v7318_v63  ;;  %v5248_v44 = vadd.f32 %v5247_v40, %v5246_v4  ;;  %v5311_v62 = vpop.f32.mrb[179].mxu1 }
 0x25b   :  { %v5312_v61 = vadd.f32 %v5311_v62, %v5310_v54 }
 0x25c   :  { %v3871_v2 = vadd.f32 %v5248_v44, %v7321_v7  ;;  %v3965_v29 = vadd.f32 %v5309_v39, %v3868_v32 }
 0x25e   :  { %v5249_v35 = vpop.f32.mrb[180].mxu0  ;;  %v7367_v28 = vadd.f32 %v5312_v61, %v3871_v2 }
 0x25f   :  { %v5313_v48 = vpop.f32.mrb[180].mxu1  ;;  %v5250_v9 = vpop.f32.mrb[181].mxu0 }
 0x260   :  { %v5251_v20 = vadd.f32 %v5250_v9, %v5249_v35  ;;  %v5314_v12 = vpop.f32.mrb[181].mxu1  ;;  %v5252_v56 = vpop.f32.mrb[182].mxu0 }
 0x261   :  { %v5315_v42 = vadd.f32 %v5314_v12, %v5313_v48  ;;  %v5316_v14 = vpop.f32.mrb[182].mxu1  ;;  %v5253_v26 = vpop.f32.mrb[183].mxu0 }
 0x262   :  { %v3876_v58 = vadd.f32 %v5251_v20, %v7324_v1  ;;  %v5254_v63 = vadd.f32 %v5253_v26, %v5252_v56  ;;  %v5317_v37 = vpop.f32.mrb[183].mxu1 }
 0x263   :  { %v5318_v18 = vadd.f32 %v5317_v37, %v5316_v14 }
 0x264   :  { %v3879_v6 = vadd.f32 %v5254_v63, %v7327_v59  ;;  %v3973_v7 = vadd.f32 %v5315_v42, %v3876_v58 }
 0x266   :  { %v5255_v30 = vpop.f32.mrb[184].mxu0  ;;  %v3976_v49 = vadd.f32 %v5318_v18, %v3879_v6 }
 0x267   :  { %v5319_v8 = vpop.f32.mrb[184].mxu1  ;;  %v5256_v27 = vpop.f32.mrb[185].mxu0 }
 0x268   :  { %v5257_v46 = vadd.f32 %v5256_v27, %v5255_v30  ;;  %v5320_v33 = vpop.f32.mrb[185].mxu1  ;;  %v5258_v51 = vpop.f32.mrb[186].mxu0 }
 0x269   :  { %v5321_v22 = vadd.f32 %v5320_v33, %v5319_v8  ;;  %v5322_v38 = vpop.f32.mrb[186].mxu1  ;;  %v5259_v41 = vpop.f32.mrb[187].mxu0 }
 0x26a   :  { %v3884_v17 = vadd.f32 %v5257_v46, %v7330_v57  ;;  %v5260_v16 = vadd.f32 %v5259_v41, %v5258_v51  ;;  %v5323_v1 = vpop.f32.mrb[187].mxu1 }
 0x26b   :  { %v5324_v25 = vadd.f32 %v5323_v1, %v5322_v38 }
 0x26c   :  { %v3887_v19 = vadd.f32 %v5260_v16, %v7333_v23  ;;  %v3981_v45 = vadd.f32 %v5321_v22, %v3884_v17 }
 0x26e   :  { %v5261_v59 = vpop.f32.mrb[188].mxu0  ;;  %v3984_v43 = vadd.f32 %v5324_v25, %v3887_v19 }
 0x26f   :  { %v5325_v0 = vpop.f32.mrb[188].mxu1  ;;  %v5262_v24 = vpop.f32.mrb[189].mxu0 }
 0x270   :  { %v5263_v50 = vadd.f32 %v5262_v24, %v5261_v59  ;;  %v5326_v52 = vpop.f32.mrb[189].mxu1  ;;  %v5264_v31 = vpop.f32.mrb[190].mxu0 }
 0x271   :  { %v5327_v47 = vadd.f32 %v5326_v52, %v5325_v0  ;;  %v5328_v5 = vpop.f32.mrb[190].mxu1  ;;  %v5265_v60 = vpop.f32.mrb[191].mxu0 }
 0x272   :  { %v3892_v4 = vadd.f32 %v5263_v50, %v7336_v15  ;;  %v5266_v39 = vadd.f32 %v5265_v60, %v5264_v31  ;;  %v5329_v57 = vpop.f32.mrb[191].mxu1 }
 0x273   :  { %v5330_v54 = vadd.f32 %v5329_v57, %v5328_v5 }
 0x274   :  { %v3895_v40 = vadd.f32 %v5266_v39, %v7339_v34  ;;  %v3989_v32 = vadd.f32 %v5327_v47, %v3892_v4 }
 0x276   :  { %v5365_v23 = vpop.f32.mrb[192].mxu0  ;;  %v3992_v44 = vadd.f32 %v5330_v54, %v3895_v40 }
 0x277   :  { %v4038_v62 = vadd.f32 %v5365_v23, %v7349_v36  ;;  %v5373_v61 = vpop.f32.mrb[192].mxu1  ;;  %v4029_v2 = vpop.f32.mrb[193].mxu0 }
 0x278   :  { %v4070_v35 = vadd.f32 %v5373_v61, %v3973_v7  ;;  %v4030_v48 = vadd.f32 %v4029_v2, %v7343_v21  ;;  %v4061_v9 = vpop.f32.mrb[193].mxu1  ;;  %v5366_v20 = vpop.f32.mrb[194].mxu0 }
 0x279   :  { %v4062_v12 = vadd.f32 %v4061_v9, %v3965_v29  ;;  %v4041_v15 = vadd.f32 %v5366_v20, %v7351_v55  ;;  %v5374_v56 = vpop.f32.mrb[194].mxu1  ;;  %v4032_v42 = vpop.f32.mrb[195].mxu0 }
 0x27a   :  { %v4073_v14 = vadd.f32 %v5374_v56, %v3976_v49  ;;  %v4033_v34 = vadd.f32 %v4032_v42, %v7345_v13  ;;  %v4064_v26 = vpop.f32.mrb[195].mxu1 }
 0x27b   :  { %v4065_v58 = vadd.f32 %v4064_v26, %v7367_v28 }
 0x27e   :  { %v5369_v63 = vpop.f32.mrb[196].mxu0 }
 0x27f   :  { %v4054_v36 = vadd.f32 %v5369_v63, %v7361_v11  ;;  %v5377_v37 = vpop.f32.mrb[196].mxu1  ;;  %v4045_v18 = vpop.f32.mrb[197].mxu0  ;;  %v4543_v11 = vld [vmem:[%s7395_s2] ss:$0 sm:$0xff] }
 0x280   :  { %v4086_v6 = vadd.f32 %v5377_v37, %v3989_v32  ;;  %v4046_v21 = vadd.f32 %v4045_v18, %v7355_v10  ;;  %v4077_v7 = vpop.f32.mrb[197].mxu1  ;;  %v5370_v29 = vpop.f32.mrb[198].mxu0 }
 0x281   :  { %v4094_v30 = vmax.f32 %v4038_v62, %v4054_v36  ;;  %v4078_v55 = vadd.f32 %v4077_v7, %v3981_v45  ;;  %v4057_v8 = vadd.f32 %v5370_v29, %v7363_v3  ;;  %v5378_v49 = vpop.f32.mrb[198].mxu1  ;;  %v4048_v27 = vpop.f32.mrb[199].mxu0 }
 0x282   :  { %v4098_v13 = vmax.f32 %v4070_v35, %v4086_v6  ;;  %v4092_v46 = vmax.f32 %v4030_v48, %v4046_v21  ;;  %v4089_v33 = vadd.f32 %v5378_v49, %v3992_v44  ;;  %v4049_v28 = vadd.f32 %v4048_v27, %v7357_v53  ;;  %v4080_v51 = vpop.f32.mrb[199].mxu1 }
 0x283   :  { %v4096_v22 = vmax.f32 %v4062_v12, %v4078_v55  ;;  %v4095_v10 = vmax.f32 %v4041_v15, %v4057_v8  ;;  %v4081_v38 = vadd.f32 %v4080_v51, %v3984_v43 }
 0x284   :  { %v4102_v41 = vmax.f32 %v4094_v30, %v4098_v13  ;;  %v4099_v17 = vmax.f32 %v4073_v14, %v4089_v33  ;;  %v4093_v16 = vmax.f32 %v4033_v34, %v4049_v28 }
 0x285   :  { %v4100_v1 = vmax.f32 %v4092_v46, %v4096_v22  ;;  %v4097_v3 = vmax.f32 %v4065_v58, %v4081_v38 }
 0x286   :  { %v4113_v25 = vadd.f32 %v4543_v11, %v4102_v41  ;;  %v4103_v19 = vmax.f32 %v4095_v10, %v4099_v17 }
 0x287   :  { %v4111_v45 = vadd.f32 %v4543_v11, %v4100_v1  ;;  %v4101_v59 = vmax.f32 %v4093_v16, %v4097_v3 }
 0x288   :  { %v4114_v0 = vadd.f32 %v4543_v11, %v4103_v19  ;;  %v4117_v53 = vmax.f32 %v4113_v25, 0.0 }
 0x289   :  { %v4112_v24 = vadd.f32 %v4543_v11, %v4101_v59  ;;  %v4115_v52 = vmax.f32 %v4111_v45, 0.0 }
 0x28a   :  { %v4118_v50 = vmax.f32 %v4114_v0, 0.0 }
 0x28b   :  { %v4116_v31 = vmax.f32 %v4112_v24, 0.0 }
 0x28c   :  { %v4560_v47 = vpack.c.bf16 %v4118_v50, %v4117_v53 }
 0x28d   :  { %v4555_v5 = vpack.c.bf16 %v4116_v31, %v4115_v52 }
 0x28e   :  { %4562 = vst [vmem:[%s7396_s3 + $0x8] sm:$0xff] %v4560_v47  }
 0x28f   :  { %4556 = vst [vmem:[%s7396_s3] sm:$0xff] %v4555_v5  }

</bundles_post_ra>
